<compile_context>
chip_gen: v5e
topology: v5e:2x2
jax: 0.10.0
libtpu: 0.0.40
codegen_flags: <defaults>
</compile_context>

<pallas_src>
import functools
import math

import jax
import jax.numpy as jnp
from jax.experimental import pallas as pl
from jax.experimental.pallas import tpu as pltpu

NEG_INF_FILL = float(-(2 ** 32) + 1)
LN_EPS = 1e-8


def _layer_norm(x, gamma, beta):
    # layer_normalization: gamma*(x-mean)/(std+eps)+beta, std unbiased (ddof=1).
    h = x.shape[-1]
    mean = jnp.mean(x, axis=-1, keepdims=True)
    var = jnp.sum((x - mean) ** 2, axis=-1, keepdims=True) / (h - 1)
    std = jnp.sqrt(var)
    return gamma * (x - mean) * pl.reciprocal(std + LN_EPS, approx=True) + beta


def _att_mil_kernel(num_blocks, num_heads,
                    fea_ref, mask_ref,
                    wqkv_ref, bqkv_ref, w1_ref, b1_ref, w2_ref, vecs_ref,
                    out_ref, att_ref):
    # One grid step == one batch element; all blocks' weights stay in VMEM.
    x = fea_ref[0]                              # (T, H)
    m = mask_ref[0, 0]                          # (T,)
    t, h = x.shape
    dh = h // num_heads
    inv_sqrt_dh = 1.0 / math.sqrt(dh)
    key_invalid = (m == 0.0)[None, None, :]     # (1, 1, T_k), broadcast over heads/rows

    att_slabs = []                              # num_blocks * num_heads tiles of (T, T)
    for blk in range(num_blocks):
        vecs = vecs_ref[blk]                    # (5, H): [b2, gamma1, beta1, gamma2, beta2]
        b2, g1, be1, g2, be2 = (vecs[0:1], vecs[1:2], vecs[2:3],
                                vecs[3:4], vecs[4:5])

        # Fused Q/K/V projection: Linear + ReLU.
        qkv = jnp.maximum(
            jnp.dot(x, wqkv_ref[blk], preferred_element_type=jnp.float32)
            + bqkv_ref[blk], 0.0)               # (T, 3H)
        q = qkv[:, 0 * h:1 * h]
        k = qkv[:, 1 * h:2 * h]
        v = qkv[:, 2 * h:3 * h]

        # Heads as a batch dim for the score / context matmuls.
        q_h = jnp.stack([q[:, i * dh:(i + 1) * dh] for i in range(num_heads)], 0)
        k_h = jnp.stack([k[:, i * dh:(i + 1) * dh] for i in range(num_heads)], 0)
        v_h = jnp.stack([v[:, i * dh:(i + 1) * dh] for i in range(num_heads)], 0)

        s = jnp.einsum("hqd,hkd->hqk", q_h, k_h,
                       preferred_element_type=jnp.float32) * inv_sqrt_dh
        s = jnp.where(key_invalid, NEG_INF_FILL, s)
        s_max = jnp.max(s, axis=-1, keepdims=True)
        e = jnp.exp(s - s_max)
        p = e * pl.reciprocal(jnp.sum(e, axis=-1, keepdims=True), approx=True)

        ctx_h = jnp.einsum("hqk,hkd->hqd", p, v_h,
                           preferred_element_type=jnp.float32)      # (nh, T, dh)
        ctx = jnp.concatenate([ctx_h[i] for i in range(num_heads)], axis=-1)  # (T, H)

        # TODO(synk): dropout_rate is ignored (inference-mode identity dropout).
        attn_out = _layer_norm(ctx + x, g1, be1)

        # Feedforward (1x1 convs == per-token matmuls), residual, layernorm.
        h1 = jnp.maximum(
            jnp.dot(attn_out, w1_ref[blk], preferred_element_type=jnp.float32)
            + b1_ref[blk], 0.0)
        h2 = jnp.dot(h1, w2_ref[blk], preferred_element_type=jnp.float32) + b2
        x = _layer_norm(h2 + attn_out, g2, be2)

        for i in range(num_heads):
            att_slabs.append(p[i])              # (T, T) per head

    out_ref[0] = x
    # Lane-dense attention store: (T, num_blocks*num_heads*T) -> 128-wide for
    # the demo shapes, one unmasked store instead of many (T,16) partial stores.
    att_ref[0] = jnp.concatenate(att_slabs, axis=-1)


def att_model_mil_align(vis_fea, vis_mask, syb_fea, syb_mask, params, num_heads):
    # forward: concat visual + symbolic tokens, run all encoder blocks fused.
    fea = jnp.concatenate([vis_fea, syb_fea], axis=1)      # (B, T, H)
    mask = jnp.concatenate([vis_mask, syb_mask], axis=1)   # (B, T)
    mask3 = mask[:, None, :].astype(jnp.float32)           # (B, 1, T)

    b, t, h = fea.shape
    nb = params["wqkv"].shape[0]
    nh = num_heads

    kernel = functools.partial(_att_mil_kernel, nb, nh)
    full = lambda shape: pl.BlockSpec(shape, lambda i, _s=shape: (0,) * len(_s))
    in_specs = [
        pl.BlockSpec((1, t, h), lambda i: (i, 0, 0)),   # fea
        pl.BlockSpec((1, 1, t), lambda i: (i, 0, 0)),   # mask
        full((nb, h, 3 * h)),                           # Wq|Wk|Wv stacked over blocks
        full((nb, 1, 3 * h)),                           # bq|bk|bv
        full((nb, h, 4 * h)),                           # W1
        full((nb, 1, 4 * h)),                           # b1
        full((nb, 4 * h, h)),                           # W2
        full((nb, 5, h)),                               # [b2, g1, be1, g2, be2]
    ]
    out_specs = (
        pl.BlockSpec((1, t, h), lambda i: (i, 0, 0)),
        pl.BlockSpec((1, t, nb * nh * t), lambda i: (i, 0, 0)),
    )
    out_shape = (
        jax.ShapeDtypeStruct((b, t, h), jnp.float32),
        jax.ShapeDtypeStruct((b, t, nb * nh * t), jnp.float32),
    )

    fea_out, att = pl.pallas_call(
        kernel,
        grid=(b,),
        in_specs=in_specs,
        out_specs=out_specs,
        out_shape=out_shape,
        compiler_params=pltpu.CompilerParams(
            dimension_semantics=("parallel",)),
    )(fea, mask3,
      params["wqkv"], params["bqkv"], params["w1"], params["b1"],
      params["w2"], params["vecs"])

    # (B, T, nb*nh*T) -> per-block (nh*B, T, T), head-major like torch.cat(chunk).
    att = att.reshape(b, t, nb, nh, t)
    att = jnp.transpose(att, (2, 3, 0, 1, 4))            # (nb, nh, B, T, T)
    att_weights = [att[i].reshape(nh * b, t, t) for i in range(nb)]
    return fea_out, att_weights


def init_params(hidden_size, num_blocks, key):
    h = hidden_size
    wqkv, bqkv, w1, b1, w2, vecs = [], [], [], [], [], []
    for i in range(num_blocks):
        ks = jax.random.split(jax.random.fold_in(key, i), 5)
        wq = 0.02 * jax.random.normal(ks[0], (h, h), jnp.float32)
        wk = 0.02 * jax.random.normal(ks[1], (h, h), jnp.float32)
        wv = 0.02 * jax.random.normal(ks[2], (h, h), jnp.float32)
        wqkv.append(jnp.concatenate([wq, wk, wv], axis=1))          # (h, 3h)
        bqkv.append(jnp.zeros((1, 3 * h), jnp.float32))
        w1.append(0.02 * jax.random.normal(ks[3], (h, 4 * h), jnp.float32))
        b1.append(jnp.zeros((1, 4 * h), jnp.float32))
        w2.append(0.02 * jax.random.normal(ks[4], (4 * h, h), jnp.float32))
        # packed small vectors: rows = [b2, gamma1, beta1, gamma2, beta2]
        vecs.append(jnp.stack([jnp.zeros((h,), jnp.float32),
                               jnp.ones((h,), jnp.float32),
                               jnp.zeros((h,), jnp.float32),
                               jnp.ones((h,), jnp.float32),
                               jnp.zeros((h,), jnp.float32)], axis=0))
    return {
        "wqkv": jnp.stack(wqkv), "bqkv": jnp.stack(bqkv),
        "w1": jnp.stack(w1), "b1": jnp.stack(b1),
        "w2": jnp.stack(w2), "vecs": jnp.stack(vecs),
    }


if __name__ == "__main__":
    hidden_size, num_blocks, num_heads, dropout_rate = 32, 2, 4, 0.1
    B, T_vis, T_syb = 2, 6, 10

    key = jax.random.PRNGKey(0)
    k1, k2, kp = jax.random.split(key, 3)
    vis_fea = jax.random.normal(k1, (B, T_vis, hidden_size), jnp.float32)
    syb_fea = jax.random.normal(k2, (B, T_syb, hidden_size), jnp.float32)
    # binary masks with some padding at the tail
    vis_mask = jnp.concatenate(
        [jnp.ones((B, T_vis - 2), jnp.float32), jnp.zeros((B, 2), jnp.float32)], axis=1)
    syb_mask = jnp.concatenate(
        [jnp.ones((B, T_syb - 3), jnp.float32), jnp.zeros((B, 3), jnp.float32)], axis=1)

    params = init_params(hidden_size, num_blocks, kp)

    fea_out, att_ws = att_model_mil_align(
        vis_fea, vis_mask, syb_fea, syb_mask, params, num_heads)
    fea_out = jax.block_until_ready(fea_out)
    att_ws = [jax.block_until_ready(a) for a in att_ws]

    T = T_vis + T_syb
    assert fea_out.shape == (B, T, hidden_size)
    assert all(a.shape == (num_heads * B, T, T) for a in att_ws)
    assert bool(jnp.all(jnp.isfinite(fea_out)))
    assert all(bool(jnp.all(jnp.isfinite(a))) for a in att_ws)
    print("KERNEL_OK")
</pallas_src>

<mosaic_0001>
module attributes {stable_mosaic.version = 11 : i64} {
  func.func @_att_mil_kernel(%arg0: i32, %arg1: memref<1x16x32xf32, #tpu.memory_space<vmem>>, %arg2: memref<1x1x16xf32, #tpu.memory_space<vmem>>, %arg3: memref<2x32x96xf32, #tpu.memory_space<vmem>>, %arg4: memref<2x1x96xf32, #tpu.memory_space<vmem>>, %arg5: memref<2x32x128xf32, #tpu.memory_space<vmem>>, %arg6: memref<2x1x128xf32, #tpu.memory_space<vmem>>, %arg7: memref<2x128x32xf32, #tpu.memory_space<vmem>>, %arg8: memref<2x5x32xf32, #tpu.memory_space<vmem>>, %arg9: memref<1x16x32xf32, #tpu.memory_space<vmem>>, %arg10: memref<1x16x128xf32, #tpu.memory_space<vmem>>) attributes {dimension_semantics = [#tpu.dimension_semantics<parallel>], iteration_bounds = array<i64: 2>, scalar_prefetch = 0 : i64, scratch_operands = 0 : i64, tpu.core_type = #tpu.core_type<tc>, window_params = [{transform_indices = @transform_0, window_bounds = array<i64: 1, 16, 32>}, {transform_indices = @transform_1, window_bounds = array<i64: 1, 1, 16>}, {pipeline_mode = #tpu.pipeline_mode<synchronous>, transform_indices = @transform_2, window_bounds = array<i64: 2, 32, 96>}, {pipeline_mode = #tpu.pipeline_mode<synchronous>, transform_indices = @transform_3, window_bounds = array<i64: 2, 1, 96>}, {pipeline_mode = #tpu.pipeline_mode<synchronous>, transform_indices = @transform_4, window_bounds = array<i64: 2, 32, 128>}, {pipeline_mode = #tpu.pipeline_mode<synchronous>, transform_indices = @transform_5, window_bounds = array<i64: 2, 1, 128>}, {pipeline_mode = #tpu.pipeline_mode<synchronous>, transform_indices = @transform_6, window_bounds = array<i64: 2, 128, 32>}, {pipeline_mode = #tpu.pipeline_mode<synchronous>, transform_indices = @transform_7, window_bounds = array<i64: 2, 5, 32>}, {transform_indices = @transform_8, window_bounds = array<i64: 1, 16, 32>}, {transform_indices = @transform_9, window_bounds = array<i64: 1, 16, 128>}]} {
    %c0 = arith.constant 0 : index
    %c0_0 = arith.constant 0 : index
    %c0_1 = arith.constant 0 : index
    %0 = vector.load %arg1[%c0, %c0_0, %c0_1] : memref<1x16x32xf32, #tpu.memory_space<vmem>>, vector<1x16x32xf32>
    %1 = vector.shape_cast %0 : vector<1x16x32xf32> to vector<16x32xf32>
    %c0_2 = arith.constant 0 : index
    %c0_3 = arith.constant 0 : index
    %c0_4 = arith.constant 0 : index
    %2 = vector.load %arg2[%c0_2, %c0_3, %c0_4] : memref<1x1x16xf32, #tpu.memory_space<vmem>>, vector<1x1x16xf32>
    %3 = vector.shape_cast %2 : vector<1x1x16xf32> to vector<16xf32>
    %cst = arith.constant 0.000000e+00 : f32
    %4 = vector.broadcast %cst : f32 to vector<16xf32>
    %5 = arith.cmpf oeq, %3, %4 : vector<16xf32>
    %6 = vector.shape_cast %5 : vector<16xi1> to vector<1x1x16xi1>
    %c0_5 = arith.constant 0 : index
    %c0_6 = arith.constant 0 : index
    %c0_7 = arith.constant 0 : index
    %7 = vector.load %arg8[%c0_5, %c0_6, %c0_7] : memref<2x5x32xf32, #tpu.memory_space<vmem>>, vector<1x5x32xf32>
    %8 = vector.shape_cast %7 : vector<1x5x32xf32> to vector<5x32xf32>
    %9 = vector.extract_strided_slice %8 {offsets = [0, 0], sizes = [1, 32], strides = [1, 1]} : vector<5x32xf32> to vector<1x32xf32>
    %10 = vector.extract_strided_slice %8 {offsets = [1, 0], sizes = [1, 32], strides = [1, 1]} : vector<5x32xf32> to vector<1x32xf32>
    %11 = vector.extract_strided_slice %8 {offsets = [2, 0], sizes = [1, 32], strides = [1, 1]} : vector<5x32xf32> to vector<1x32xf32>
    %12 = vector.extract_strided_slice %8 {offsets = [3, 0], sizes = [1, 32], strides = [1, 1]} : vector<5x32xf32> to vector<1x32xf32>
    %13 = vector.extract_strided_slice %8 {offsets = [4, 0], sizes = [1, 32], strides = [1, 1]} : vector<5x32xf32> to vector<1x32xf32>
    %c0_8 = arith.constant 0 : index
    %c0_9 = arith.constant 0 : index
    %c0_10 = arith.constant 0 : index
    %14 = vector.load %arg3[%c0_8, %c0_9, %c0_10] : memref<2x32x96xf32, #tpu.memory_space<vmem>>, vector<1x32x96xf32>
    %15 = vector.shape_cast %14 : vector<1x32x96xf32> to vector<32x96xf32>
    %cst_11 = arith.constant dense<0.000000e+00> : vector<16x96xf32>
    %16 = tpu.matmul %1, %15, %cst_11 {dimension_numbers = #tpu.dot_dimension_numbers<[1], [0], [0], [1], [0, 0, 1, 1], [], []>} : vector<16x32xf32>, vector<32x96xf32>, vector<16x96xf32> -> vector<16x96xf32>
    %c0_12 = arith.constant 0 : index
    %c0_13 = arith.constant 0 : index
    %c0_14 = arith.constant 0 : index
    %17 = vector.load %arg4[%c0_12, %c0_13, %c0_14] : memref<2x1x96xf32, #tpu.memory_space<vmem>>, vector<1x1x96xf32>
    %18 = vector.shape_cast %17 : vector<1x1x96xf32> to vector<1x96xf32>
    %19 = vector.broadcast %18 : vector<1x96xf32> to vector<16x96xf32>
    %20 = arith.addf %16, %19 : vector<16x96xf32>
    %cst_15 = arith.constant 0.000000e+00 : f32
    %21 = vector.broadcast %cst_15 : f32 to vector<16x96xf32>
    %22 = arith.maximumf %20, %21 : vector<16x96xf32>
    %23 = vector.extract_strided_slice %22 {offsets = [0, 0], sizes = [16, 32], strides = [1, 1]} : vector<16x96xf32> to vector<16x32xf32>
    %24 = vector.extract_strided_slice %22 {offsets = [0, 32], sizes = [16, 32], strides = [1, 1]} : vector<16x96xf32> to vector<16x32xf32>
    %25 = vector.extract_strided_slice %22 {offsets = [0, 64], sizes = [16, 32], strides = [1, 1]} : vector<16x96xf32> to vector<16x32xf32>
    %26 = vector.extract_strided_slice %23 {offsets = [0, 0], sizes = [16, 8], strides = [1, 1]} : vector<16x32xf32> to vector<16x8xf32>
    %27 = vector.extract_strided_slice %23 {offsets = [0, 8], sizes = [16, 8], strides = [1, 1]} : vector<16x32xf32> to vector<16x8xf32>
    %28 = vector.extract_strided_slice %23 {offsets = [0, 16], sizes = [16, 8], strides = [1, 1]} : vector<16x32xf32> to vector<16x8xf32>
    %29 = vector.extract_strided_slice %23 {offsets = [0, 24], sizes = [16, 8], strides = [1, 1]} : vector<16x32xf32> to vector<16x8xf32>
    %30 = vector.shape_cast %26 : vector<16x8xf32> to vector<1x16x8xf32>
    %31 = vector.shape_cast %27 : vector<16x8xf32> to vector<1x16x8xf32>
    %32 = vector.shape_cast %28 : vector<16x8xf32> to vector<1x16x8xf32>
    %33 = vector.shape_cast %29 : vector<16x8xf32> to vector<1x16x8xf32>
    %34 = tpu.concatenate %30, %31, %32, %33 in 0 : vector<1x16x8xf32>, vector<1x16x8xf32>, vector<1x16x8xf32>, vector<1x16x8xf32> -> vector<4x16x8xf32>
    %35 = vector.extract_strided_slice %24 {offsets = [0, 0], sizes = [16, 8], strides = [1, 1]} : vector<16x32xf32> to vector<16x8xf32>
    %36 = vector.extract_strided_slice %24 {offsets = [0, 8], sizes = [16, 8], strides = [1, 1]} : vector<16x32xf32> to vector<16x8xf32>
    %37 = vector.extract_strided_slice %24 {offsets = [0, 16], sizes = [16, 8], strides = [1, 1]} : vector<16x32xf32> to vector<16x8xf32>
    %38 = vector.extract_strided_slice %24 {offsets = [0, 24], sizes = [16, 8], strides = [1, 1]} : vector<16x32xf32> to vector<16x8xf32>
    %39 = vector.shape_cast %35 : vector<16x8xf32> to vector<1x16x8xf32>
    %40 = vector.shape_cast %36 : vector<16x8xf32> to vector<1x16x8xf32>
    %41 = vector.shape_cast %37 : vector<16x8xf32> to vector<1x16x8xf32>
    %42 = vector.shape_cast %38 : vector<16x8xf32> to vector<1x16x8xf32>
    %43 = tpu.concatenate %39, %40, %41, %42 in 0 : vector<1x16x8xf32>, vector<1x16x8xf32>, vector<1x16x8xf32>, vector<1x16x8xf32> -> vector<4x16x8xf32>
    %44 = vector.extract_strided_slice %25 {offsets = [0, 0], sizes = [16, 8], strides = [1, 1]} : vector<16x32xf32> to vector<16x8xf32>
    %45 = vector.extract_strided_slice %25 {offsets = [0, 8], sizes = [16, 8], strides = [1, 1]} : vector<16x32xf32> to vector<16x8xf32>
    %46 = vector.extract_strided_slice %25 {offsets = [0, 16], sizes = [16, 8], strides = [1, 1]} : vector<16x32xf32> to vector<16x8xf32>
    %47 = vector.extract_strided_slice %25 {offsets = [0, 24], sizes = [16, 8], strides = [1, 1]} : vector<16x32xf32> to vector<16x8xf32>
    %48 = vector.shape_cast %44 : vector<16x8xf32> to vector<1x16x8xf32>
    %49 = vector.shape_cast %45 : vector<16x8xf32> to vector<1x16x8xf32>
    %50 = vector.shape_cast %46 : vector<16x8xf32> to vector<1x16x8xf32>
    %51 = vector.shape_cast %47 : vector<16x8xf32> to vector<1x16x8xf32>
    %52 = tpu.concatenate %48, %49, %50, %51 in 0 : vector<1x16x8xf32>, vector<1x16x8xf32>, vector<1x16x8xf32>, vector<1x16x8xf32> -> vector<4x16x8xf32>
    "tpu.trace_start"() <{level = 10 : i32, message = "hqd,hkd->hqk"}> : () -> ()
    %cst_16 = arith.constant dense<0.000000e+00> : vector<4x16x16xf32>
    %53 = tpu.matmul %34, %43, %cst_16 {dimension_numbers = #tpu.dot_dimension_numbers<[2], [2], [1], [1], [0, 0, 0, 1, 1, 1], [0], [0]>} : vector<4x16x8xf32>, vector<4x16x8xf32>, vector<4x16x16xf32> -> vector<4x16x16xf32>
    "tpu.trace_stop"() : () -> ()
    %cst_17 = arith.constant 0.353553385 : f32
    %54 = vector.broadcast %cst_17 : f32 to vector<4x16x16xf32>
    %55 = arith.mulf %53, %54 : vector<4x16x16xf32>
    %cst_18 = arith.constant -4.2949673E+9 : f32
    %56 = vector.shape_cast %6 : vector<1x1x16xi1> to vector<1x1x16xi1>
    %57 = vector.broadcast %56 : vector<1x1x16xi1> to vector<4x16x16xi1>
    %58 = vector.broadcast %cst_18 : f32 to vector<4x16x16xf32>
    %59 = arith.select %57, %58, %55 : vector<4x16x16xi1>, vector<4x16x16xf32>
    %cst_19 = arith.constant dense<0xFF800000> : vector<4x16xf32>
    %60 = vector.multi_reduction <maximumf>, %59, %cst_19 [2] : vector<4x16x16xf32> to vector<4x16xf32>
    %61 = vector.shape_cast %60 : vector<4x16xf32> to vector<4x16x1xf32>
    %62 = vector.broadcast %61 : vector<4x16x1xf32> to vector<4x16x16xf32>
    %63 = arith.subf %59, %62 : vector<4x16x16xf32>
    %64 = math.exp %63 : vector<4x16x16xf32>
    %cst_20 = arith.constant dense<0.000000e+00> : vector<4x16xf32>
    %65 = vector.multi_reduction <add>, %64, %cst_20 [2] : vector<4x16x16xf32> to vector<4x16xf32>
    %66 = vector.shape_cast %65 : vector<4x16xf32> to vector<4x16x1xf32>
    %67 = tpu.reciprocal %66 {approx = true} : vector<4x16x1xf32> -> vector<4x16x1xf32>
    %68 = vector.broadcast %67 : vector<4x16x1xf32> to vector<4x16x16xf32>
    %69 = arith.mulf %64, %68 : vector<4x16x16xf32>
    "tpu.trace_start"() <{level = 10 : i32, message = "hqk,hkd->hqd"}> : () -> ()
    %cst_21 = arith.constant dense<0.000000e+00> : vector<4x16x8xf32>
    %70 = tpu.matmul %69, %52, %cst_21 {dimension_numbers = #tpu.dot_dimension_numbers<[2], [1], [1], [2], [0, 0, 0, 1, 1, 2], [0], [0]>} : vector<4x16x16xf32>, vector<4x16x8xf32>, vector<4x16x8xf32> -> vector<4x16x8xf32>
    "tpu.trace_stop"() : () -> ()
    %71 = vector.extract_strided_slice %70 {offsets = [0, 0, 0], sizes = [1, 16, 8], strides = [1, 1, 1]} : vector<4x16x8xf32> to vector<1x16x8xf32>
    %72 = vector.shape_cast %71 : vector<1x16x8xf32> to vector<16x8xf32>
    %73 = vector.extract_strided_slice %70 {offsets = [1, 0, 0], sizes = [1, 16, 8], strides = [1, 1, 1]} : vector<4x16x8xf32> to vector<1x16x8xf32>
    %74 = vector.shape_cast %73 : vector<1x16x8xf32> to vector<16x8xf32>
    %75 = vector.extract_strided_slice %70 {offsets = [2, 0, 0], sizes = [1, 16, 8], strides = [1, 1, 1]} : vector<4x16x8xf32> to vector<1x16x8xf32>
    %76 = vector.shape_cast %75 : vector<1x16x8xf32> to vector<16x8xf32>
    %77 = vector.extract_strided_slice %70 {offsets = [3, 0, 0], sizes = [1, 16, 8], strides = [1, 1, 1]} : vector<4x16x8xf32> to vector<1x16x8xf32>
    %78 = vector.shape_cast %77 : vector<1x16x8xf32> to vector<16x8xf32>
    %79 = tpu.concatenate %72, %74, %76, %78 in 1 : vector<16x8xf32>, vector<16x8xf32>, vector<16x8xf32>, vector<16x8xf32> -> vector<16x32xf32>
    %80 = arith.addf %79, %1 : vector<16x32xf32>
    %cst_22 = arith.constant dense<0.000000e+00> : vector<16xf32>
    %81 = vector.multi_reduction <add>, %80, %cst_22 [1] : vector<16x32xf32> to vector<16xf32>
    %82 = vector.shape_cast %81 : vector<16xf32> to vector<16x1xf32>
    %cst_23 = arith.constant 3.200000e+01 : f32
    %83 = vector.broadcast %cst_23 : f32 to vector<16x1xf32>
    %84 = arith.divf %82, %83 : vector<16x1xf32>
    %85 = vector.broadcast %84 : vector<16x1xf32> to vector<16x32xf32>
    %86 = arith.subf %80, %85 : vector<16x32xf32>
    %87 = arith.mulf %86, %86 : vector<16x32xf32>
    %cst_24 = arith.constant dense<0.000000e+00> : vector<16xf32>
    %88 = vector.multi_reduction <add>, %87, %cst_24 [1] : vector<16x32xf32> to vector<16xf32>
    %89 = vector.shape_cast %88 : vector<16xf32> to vector<16x1xf32>
    %cst_25 = arith.constant 3.100000e+01 : f32
    %90 = vector.broadcast %cst_25 : f32 to vector<16x1xf32>
    %91 = arith.divf %89, %90 : vector<16x1xf32>
    %92 = math.sqrt %91 : vector<16x1xf32>
    %93 = vector.broadcast %84 : vector<16x1xf32> to vector<16x32xf32>
    %94 = arith.subf %80, %93 : vector<16x32xf32>
    %95 = vector.broadcast %10 : vector<1x32xf32> to vector<16x32xf32>
    %96 = arith.mulf %95, %94 : vector<16x32xf32>
    %cst_26 = arith.constant 9.99999993E-9 : f32
    %97 = vector.broadcast %cst_26 : f32 to vector<16x1xf32>
    %98 = arith.addf %92, %97 : vector<16x1xf32>
    %99 = tpu.reciprocal %98 {approx = true} : vector<16x1xf32> -> vector<16x1xf32>
    %100 = vector.broadcast %99 : vector<16x1xf32> to vector<16x32xf32>
    %101 = arith.mulf %96, %100 : vector<16x32xf32>
    %102 = vector.broadcast %11 : vector<1x32xf32> to vector<16x32xf32>
    %103 = arith.addf %101, %102 : vector<16x32xf32>
    %c0_27 = arith.constant 0 : index
    %c0_28 = arith.constant 0 : index
    %c0_29 = arith.constant 0 : index
    %104 = vector.load %arg5[%c0_27, %c0_28, %c0_29] : memref<2x32x128xf32, #tpu.memory_space<vmem>>, vector<1x32x128xf32>
    %105 = vector.shape_cast %104 : vector<1x32x128xf32> to vector<32x128xf32>
    %cst_30 = arith.constant dense<0.000000e+00> : vector<16x128xf32>
    %106 = tpu.matmul %103, %105, %cst_30 {dimension_numbers = #tpu.dot_dimension_numbers<[1], [0], [0], [1], [0, 0, 1, 1], [], []>} : vector<16x32xf32>, vector<32x128xf32>, vector<16x128xf32> -> vector<16x128xf32>
    %c0_31 = arith.constant 0 : index
    %c0_32 = arith.constant 0 : index
    %c0_33 = arith.constant 0 : index
    %107 = vector.load %arg6[%c0_31, %c0_32, %c0_33] : memref<2x1x128xf32, #tpu.memory_space<vmem>>, vector<1x1x128xf32>
    %108 = vector.shape_cast %107 : vector<1x1x128xf32> to vector<1x128xf32>
    %109 = vector.broadcast %108 : vector<1x128xf32> to vector<16x128xf32>
    %110 = arith.addf %106, %109 : vector<16x128xf32>
    %cst_34 = arith.constant 0.000000e+00 : f32
    %111 = vector.broadcast %cst_34 : f32 to vector<16x128xf32>
    %112 = arith.maximumf %110, %111 : vector<16x128xf32>
    %c0_35 = arith.constant 0 : index
    %c0_36 = arith.constant 0 : index
    %c0_37 = arith.constant 0 : index
    %113 = vector.load %arg7[%c0_35, %c0_36, %c0_37] : memref<2x128x32xf32, #tpu.memory_space<vmem>>, vector<1x128x32xf32>
    %114 = vector.shape_cast %113 : vector<1x128x32xf32> to vector<128x32xf32>
    %cst_38 = arith.constant dense<0.000000e+00> : vector<16x32xf32>
    %115 = tpu.matmul %112, %114, %cst_38 {dimension_numbers = #tpu.dot_dimension_numbers<[1], [0], [0], [1], [0, 0, 1, 1], [], []>} : vector<16x128xf32>, vector<128x32xf32>, vector<16x32xf32> -> vector<16x32xf32>
    %116 = vector.broadcast %9 : vector<1x32xf32> to vector<16x32xf32>
    %117 = arith.addf %115, %116 : vector<16x32xf32>
    %118 = arith.addf %117, %103 : vector<16x32xf32>
    %cst_39 = arith.constant dense<0.000000e+00> : vector<16xf32>
    %119 = vector.multi_reduction <add>, %118, %cst_39 [1] : vector<16x32xf32> to vector<16xf32>
    %120 = vector.shape_cast %119 : vector<16xf32> to vector<16x1xf32>
    %cst_40 = arith.constant 3.200000e+01 : f32
    %121 = vector.broadcast %cst_40 : f32 to vector<16x1xf32>
    %122 = arith.divf %120, %121 : vector<16x1xf32>
    %123 = vector.broadcast %122 : vector<16x1xf32> to vector<16x32xf32>
    %124 = arith.subf %118, %123 : vector<16x32xf32>
    %125 = arith.mulf %124, %124 : vector<16x32xf32>
    %cst_41 = arith.constant dense<0.000000e+00> : vector<16xf32>
    %126 = vector.multi_reduction <add>, %125, %cst_41 [1] : vector<16x32xf32> to vector<16xf32>
    %127 = vector.shape_cast %126 : vector<16xf32> to vector<16x1xf32>
    %cst_42 = arith.constant 3.100000e+01 : f32
    %128 = vector.broadcast %cst_42 : f32 to vector<16x1xf32>
    %129 = arith.divf %127, %128 : vector<16x1xf32>
    %130 = math.sqrt %129 : vector<16x1xf32>
    %131 = vector.broadcast %122 : vector<16x1xf32> to vector<16x32xf32>
    %132 = arith.subf %118, %131 : vector<16x32xf32>
    %133 = vector.broadcast %12 : vector<1x32xf32> to vector<16x32xf32>
    %134 = arith.mulf %133, %132 : vector<16x32xf32>
    %cst_43 = arith.constant 9.99999993E-9 : f32
    %135 = vector.broadcast %cst_43 : f32 to vector<16x1xf32>
    %136 = arith.addf %130, %135 : vector<16x1xf32>
    %137 = tpu.reciprocal %136 {approx = true} : vector<16x1xf32> -> vector<16x1xf32>
    %138 = vector.broadcast %137 : vector<16x1xf32> to vector<16x32xf32>
    %139 = arith.mulf %134, %138 : vector<16x32xf32>
    %140 = vector.broadcast %13 : vector<1x32xf32> to vector<16x32xf32>
    %141 = arith.addf %139, %140 : vector<16x32xf32>
    %142 = vector.extract_strided_slice %69 {offsets = [0, 0, 0], sizes = [1, 16, 16], strides = [1, 1, 1]} : vector<4x16x16xf32> to vector<1x16x16xf32>
    %143 = vector.shape_cast %142 : vector<1x16x16xf32> to vector<16x16xf32>
    %144 = vector.extract_strided_slice %69 {offsets = [1, 0, 0], sizes = [1, 16, 16], strides = [1, 1, 1]} : vector<4x16x16xf32> to vector<1x16x16xf32>
    %145 = vector.shape_cast %144 : vector<1x16x16xf32> to vector<16x16xf32>
    %146 = vector.extract_strided_slice %69 {offsets = [2, 0, 0], sizes = [1, 16, 16], strides = [1, 1, 1]} : vector<4x16x16xf32> to vector<1x16x16xf32>
    %147 = vector.shape_cast %146 : vector<1x16x16xf32> to vector<16x16xf32>
    %148 = vector.extract_strided_slice %69 {offsets = [3, 0, 0], sizes = [1, 16, 16], strides = [1, 1, 1]} : vector<4x16x16xf32> to vector<1x16x16xf32>
    %149 = vector.shape_cast %148 : vector<1x16x16xf32> to vector<16x16xf32>
    %c1 = arith.constant 1 : index
    %c0_44 = arith.constant 0 : index
    %c0_45 = arith.constant 0 : index
    %150 = vector.load %arg8[%c1, %c0_44, %c0_45] : memref<2x5x32xf32, #tpu.memory_space<vmem>>, vector<1x5x32xf32>
    %151 = vector.shape_cast %150 : vector<1x5x32xf32> to vector<5x32xf32>
    %152 = vector.extract_strided_slice %151 {offsets = [0, 0], sizes = [1, 32], strides = [1, 1]} : vector<5x32xf32> to vector<1x32xf32>
    %153 = vector.extract_strided_slice %151 {offsets = [1, 0], sizes = [1, 32], strides = [1, 1]} : vector<5x32xf32> to vector<1x32xf32>
    %154 = vector.extract_strided_slice %151 {offsets = [2, 0], sizes = [1, 32], strides = [1, 1]} : vector<5x32xf32> to vector<1x32xf32>
    %155 = vector.extract_strided_slice %151 {offsets = [3, 0], sizes = [1, 32], strides = [1, 1]} : vector<5x32xf32> to vector<1x32xf32>
    %156 = vector.extract_strided_slice %151 {offsets = [4, 0], sizes = [1, 32], strides = [1, 1]} : vector<5x32xf32> to vector<1x32xf32>
    %c1_46 = arith.constant 1 : index
    %c0_47 = arith.constant 0 : index
    %c0_48 = arith.constant 0 : index
    %157 = vector.load %arg3[%c1_46, %c0_47, %c0_48] : memref<2x32x96xf32, #tpu.memory_space<vmem>>, vector<1x32x96xf32>
    %158 = vector.shape_cast %157 : vector<1x32x96xf32> to vector<32x96xf32>
    %cst_49 = arith.constant dense<0.000000e+00> : vector<16x96xf32>
    %159 = tpu.matmul %141, %158, %cst_49 {dimension_numbers = #tpu.dot_dimension_numbers<[1], [0], [0], [1], [0, 0, 1, 1], [], []>} : vector<16x32xf32>, vector<32x96xf32>, vector<16x96xf32> -> vector<16x96xf32>
    %c1_50 = arith.constant 1 : index
    %c0_51 = arith.constant 0 : index
    %c0_52 = arith.constant 0 : index
    %160 = vector.load %arg4[%c1_50, %c0_51, %c0_52] : memref<2x1x96xf32, #tpu.memory_space<vmem>>, vector<1x1x96xf32>
    %161 = vector.shape_cast %160 : vector<1x1x96xf32> to vector<1x96xf32>
    %162 = vector.broadcast %161 : vector<1x96xf32> to vector<16x96xf32>
    %163 = arith.addf %159, %162 : vector<16x96xf32>
    %cst_53 = arith.constant 0.000000e+00 : f32
    %164 = vector.broadcast %cst_53 : f32 to vector<16x96xf32>
    %165 = arith.maximumf %163, %164 : vector<16x96xf32>
    %166 = vector.extract_strided_slice %165 {offsets = [0, 0], sizes = [16, 32], strides = [1, 1]} : vector<16x96xf32> to vector<16x32xf32>
    %167 = vector.extract_strided_slice %165 {offsets = [0, 32], sizes = [16, 32], strides = [1, 1]} : vector<16x96xf32> to vector<16x32xf32>
    %168 = vector.extract_strided_slice %165 {offsets = [0, 64], sizes = [16, 32], strides = [1, 1]} : vector<16x96xf32> to vector<16x32xf32>
    %169 = vector.extract_strided_slice %166 {offsets = [0, 0], sizes = [16, 8], strides = [1, 1]} : vector<16x32xf32> to vector<16x8xf32>
    %170 = vector.extract_strided_slice %166 {offsets = [0, 8], sizes = [16, 8], strides = [1, 1]} : vector<16x32xf32> to vector<16x8xf32>
    %171 = vector.extract_strided_slice %166 {offsets = [0, 16], sizes = [16, 8], strides = [1, 1]} : vector<16x32xf32> to vector<16x8xf32>
    %172 = vector.extract_strided_slice %166 {offsets = [0, 24], sizes = [16, 8], strides = [1, 1]} : vector<16x32xf32> to vector<16x8xf32>
    %173 = vector.shape_cast %169 : vector<16x8xf32> to vector<1x16x8xf32>
    %174 = vector.shape_cast %170 : vector<16x8xf32> to vector<1x16x8xf32>
    %175 = vector.shape_cast %171 : vector<16x8xf32> to vector<1x16x8xf32>
    %176 = vector.shape_cast %172 : vector<16x8xf32> to vector<1x16x8xf32>
    %177 = tpu.concatenate %173, %174, %175, %176 in 0 : vector<1x16x8xf32>, vector<1x16x8xf32>, vector<1x16x8xf32>, vector<1x16x8xf32> -> vector<4x16x8xf32>
    %178 = vector.extract_strided_slice %167 {offsets = [0, 0], sizes = [16, 8], strides = [1, 1]} : vector<16x32xf32> to vector<16x8xf32>
    %179 = vector.extract_strided_slice %167 {offsets = [0, 8], sizes = [16, 8], strides = [1, 1]} : vector<16x32xf32> to vector<16x8xf32>
    %180 = vector.extract_strided_slice %167 {offsets = [0, 16], sizes = [16, 8], strides = [1, 1]} : vector<16x32xf32> to vector<16x8xf32>
    %181 = vector.extract_strided_slice %167 {offsets = [0, 24], sizes = [16, 8], strides = [1, 1]} : vector<16x32xf32> to vector<16x8xf32>
    %182 = vector.shape_cast %178 : vector<16x8xf32> to vector<1x16x8xf32>
    %183 = vector.shape_cast %179 : vector<16x8xf32> to vector<1x16x8xf32>
    %184 = vector.shape_cast %180 : vector<16x8xf32> to vector<1x16x8xf32>
    %185 = vector.shape_cast %181 : vector<16x8xf32> to vector<1x16x8xf32>
    %186 = tpu.concatenate %182, %183, %184, %185 in 0 : vector<1x16x8xf32>, vector<1x16x8xf32>, vector<1x16x8xf32>, vector<1x16x8xf32> -> vector<4x16x8xf32>
    %187 = vector.extract_strided_slice %168 {offsets = [0, 0], sizes = [16, 8], strides = [1, 1]} : vector<16x32xf32> to vector<16x8xf32>
    %188 = vector.extract_strided_slice %168 {offsets = [0, 8], sizes = [16, 8], strides = [1, 1]} : vector<16x32xf32> to vector<16x8xf32>
    %189 = vector.extract_strided_slice %168 {offsets = [0, 16], sizes = [16, 8], strides = [1, 1]} : vector<16x32xf32> to vector<16x8xf32>
    %190 = vector.extract_strided_slice %168 {offsets = [0, 24], sizes = [16, 8], strides = [1, 1]} : vector<16x32xf32> to vector<16x8xf32>
    %191 = vector.shape_cast %187 : vector<16x8xf32> to vector<1x16x8xf32>
    %192 = vector.shape_cast %188 : vector<16x8xf32> to vector<1x16x8xf32>
    %193 = vector.shape_cast %189 : vector<16x8xf32> to vector<1x16x8xf32>
    %194 = vector.shape_cast %190 : vector<16x8xf32> to vector<1x16x8xf32>
    %195 = tpu.concatenate %191, %192, %193, %194 in 0 : vector<1x16x8xf32>, vector<1x16x8xf32>, vector<1x16x8xf32>, vector<1x16x8xf32> -> vector<4x16x8xf32>
    "tpu.trace_start"() <{level = 10 : i32, message = "hqd,hkd->hqk"}> : () -> ()
    %cst_54 = arith.constant dense<0.000000e+00> : vector<4x16x16xf32>
    %196 = tpu.matmul %177, %186, %cst_54 {dimension_numbers = #tpu.dot_dimension_numbers<[2], [2], [1], [1], [0, 0, 0, 1, 1, 1], [0], [0]>} : vector<4x16x8xf32>, vector<4x16x8xf32>, vector<4x16x16xf32> -> vector<4x16x16xf32>
    "tpu.trace_stop"() : () -> ()
    %cst_55 = arith.constant 0.353553385 : f32
    %197 = vector.broadcast %cst_55 : f32 to vector<4x16x16xf32>
    %198 = arith.mulf %196, %197 : vector<4x16x16xf32>
    %cst_56 = arith.constant -4.2949673E+9 : f32
    %199 = vector.shape_cast %6 : vector<1x1x16xi1> to vector<1x1x16xi1>
    %200 = vector.broadcast %199 : vector<1x1x16xi1> to vector<4x16x16xi1>
    %201 = vector.broadcast %cst_56 : f32 to vector<4x16x16xf32>
    %202 = arith.select %200, %201, %198 : vector<4x16x16xi1>, vector<4x16x16xf32>
    %cst_57 = arith.constant dense<0xFF800000> : vector<4x16xf32>
    %203 = vector.multi_reduction <maximumf>, %202, %cst_57 [2] : vector<4x16x16xf32> to vector<4x16xf32>
    %204 = vector.shape_cast %203 : vector<4x16xf32> to vector<4x16x1xf32>
    %205 = vector.broadcast %204 : vector<4x16x1xf32> to vector<4x16x16xf32>
    %206 = arith.subf %202, %205 : vector<4x16x16xf32>
    %207 = math.exp %206 : vector<4x16x16xf32>
    %cst_58 = arith.constant dense<0.000000e+00> : vector<4x16xf32>
    %208 = vector.multi_reduction <add>, %207, %cst_58 [2] : vector<4x16x16xf32> to vector<4x16xf32>
    %209 = vector.shape_cast %208 : vector<4x16xf32> to vector<4x16x1xf32>
    %210 = tpu.reciprocal %209 {approx = true} : vector<4x16x1xf32> -> vector<4x16x1xf32>
    %211 = vector.broadcast %210 : vector<4x16x1xf32> to vector<4x16x16xf32>
    %212 = arith.mulf %207, %211 : vector<4x16x16xf32>
    "tpu.trace_start"() <{level = 10 : i32, message = "hqk,hkd->hqd"}> : () -> ()
    %cst_59 = arith.constant dense<0.000000e+00> : vector<4x16x8xf32>
    %213 = tpu.matmul %212, %195, %cst_59 {dimension_numbers = #tpu.dot_dimension_numbers<[2], [1], [1], [2], [0, 0, 0, 1, 1, 2], [0], [0]>} : vector<4x16x16xf32>, vector<4x16x8xf32>, vector<4x16x8xf32> -> vector<4x16x8xf32>
    "tpu.trace_stop"() : () -> ()
    %214 = vector.extract_strided_slice %213 {offsets = [0, 0, 0], sizes = [1, 16, 8], strides = [1, 1, 1]} : vector<4x16x8xf32> to vector<1x16x8xf32>
    %215 = vector.shape_cast %214 : vector<1x16x8xf32> to vector<16x8xf32>
    %216 = vector.extract_strided_slice %213 {offsets = [1, 0, 0], sizes = [1, 16, 8], strides = [1, 1, 1]} : vector<4x16x8xf32> to vector<1x16x8xf32>
    %217 = vector.shape_cast %216 : vector<1x16x8xf32> to vector<16x8xf32>
    %218 = vector.extract_strided_slice %213 {offsets = [2, 0, 0], sizes = [1, 16, 8], strides = [1, 1, 1]} : vector<4x16x8xf32> to vector<1x16x8xf32>
    %219 = vector.shape_cast %218 : vector<1x16x8xf32> to vector<16x8xf32>
    %220 = vector.extract_strided_slice %213 {offsets = [3, 0, 0], sizes = [1, 16, 8], strides = [1, 1, 1]} : vector<4x16x8xf32> to vector<1x16x8xf32>
    %221 = vector.shape_cast %220 : vector<1x16x8xf32> to vector<16x8xf32>
    %222 = tpu.concatenate %215, %217, %219, %221 in 1 : vector<16x8xf32>, vector<16x8xf32>, vector<16x8xf32>, vector<16x8xf32> -> vector<16x32xf32>
    %223 = arith.addf %222, %141 : vector<16x32xf32>
    %cst_60 = arith.constant dense<0.000000e+00> : vector<16xf32>
    %224 = vector.multi_reduction <add>, %223, %cst_60 [1] : vector<16x32xf32> to vector<16xf32>
    %225 = vector.shape_cast %224 : vector<16xf32> to vector<16x1xf32>
    %cst_61 = arith.constant 3.200000e+01 : f32
    %226 = vector.broadcast %cst_61 : f32 to vector<16x1xf32>
    %227 = arith.divf %225, %226 : vector<16x1xf32>
    %228 = vector.broadcast %227 : vector<16x1xf32> to vector<16x32xf32>
    %229 = arith.subf %223, %228 : vector<16x32xf32>
    %230 = arith.mulf %229, %229 : vector<16x32xf32>
    %cst_62 = arith.constant dense<0.000000e+00> : vector<16xf32>
    %231 = vector.multi_reduction <add>, %230, %cst_62 [1] : vector<16x32xf32> to vector<16xf32>
    %232 = vector.shape_cast %231 : vector<16xf32> to vector<16x1xf32>
    %cst_63 = arith.constant 3.100000e+01 : f32
    %233 = vector.broadcast %cst_63 : f32 to vector<16x1xf32>
    %234 = arith.divf %232, %233 : vector<16x1xf32>
    %235 = math.sqrt %234 : vector<16x1xf32>
    %236 = vector.broadcast %227 : vector<16x1xf32> to vector<16x32xf32>
    %237 = arith.subf %223, %236 : vector<16x32xf32>
    %238 = vector.broadcast %153 : vector<1x32xf32> to vector<16x32xf32>
    %239 = arith.mulf %238, %237 : vector<16x32xf32>
    %cst_64 = arith.constant 9.99999993E-9 : f32
    %240 = vector.broadcast %cst_64 : f32 to vector<16x1xf32>
    %241 = arith.addf %235, %240 : vector<16x1xf32>
    %242 = tpu.reciprocal %241 {approx = true} : vector<16x1xf32> -> vector<16x1xf32>
    %243 = vector.broadcast %242 : vector<16x1xf32> to vector<16x32xf32>
    %244 = arith.mulf %239, %243 : vector<16x32xf32>
    %245 = vector.broadcast %154 : vector<1x32xf32> to vector<16x32xf32>
    %246 = arith.addf %244, %245 : vector<16x32xf32>
    %c1_65 = arith.constant 1 : index
    %c0_66 = arith.constant 0 : index
    %c0_67 = arith.constant 0 : index
    %247 = vector.load %arg5[%c1_65, %c0_66, %c0_67] : memref<2x32x128xf32, #tpu.memory_space<vmem>>, vector<1x32x128xf32>
    %248 = vector.shape_cast %247 : vector<1x32x128xf32> to vector<32x128xf32>
    %cst_68 = arith.constant dense<0.000000e+00> : vector<16x128xf32>
    %249 = tpu.matmul %246, %248, %cst_68 {dimension_numbers = #tpu.dot_dimension_numbers<[1], [0], [0], [1], [0, 0, 1, 1], [], []>} : vector<16x32xf32>, vector<32x128xf32>, vector<16x128xf32> -> vector<16x128xf32>
    %c1_69 = arith.constant 1 : index
    %c0_70 = arith.constant 0 : index
    %c0_71 = arith.constant 0 : index
    %250 = vector.load %arg6[%c1_69, %c0_70, %c0_71] : memref<2x1x128xf32, #tpu.memory_space<vmem>>, vector<1x1x128xf32>
    %251 = vector.shape_cast %250 : vector<1x1x128xf32> to vector<1x128xf32>
    %252 = vector.broadcast %251 : vector<1x128xf32> to vector<16x128xf32>
    %253 = arith.addf %249, %252 : vector<16x128xf32>
    %cst_72 = arith.constant 0.000000e+00 : f32
    %254 = vector.broadcast %cst_72 : f32 to vector<16x128xf32>
    %255 = arith.maximumf %253, %254 : vector<16x128xf32>
    %c1_73 = arith.constant 1 : index
    %c0_74 = arith.constant 0 : index
    %c0_75 = arith.constant 0 : index
    %256 = vector.load %arg7[%c1_73, %c0_74, %c0_75] : memref<2x128x32xf32, #tpu.memory_space<vmem>>, vector<1x128x32xf32>
    %257 = vector.shape_cast %256 : vector<1x128x32xf32> to vector<128x32xf32>
    %cst_76 = arith.constant dense<0.000000e+00> : vector<16x32xf32>
    %258 = tpu.matmul %255, %257, %cst_76 {dimension_numbers = #tpu.dot_dimension_numbers<[1], [0], [0], [1], [0, 0, 1, 1], [], []>} : vector<16x128xf32>, vector<128x32xf32>, vector<16x32xf32> -> vector<16x32xf32>
    %259 = vector.broadcast %152 : vector<1x32xf32> to vector<16x32xf32>
    %260 = arith.addf %258, %259 : vector<16x32xf32>
    %261 = arith.addf %260, %246 : vector<16x32xf32>
    %cst_77 = arith.constant dense<0.000000e+00> : vector<16xf32>
    %262 = vector.multi_reduction <add>, %261, %cst_77 [1] : vector<16x32xf32> to vector<16xf32>
    %263 = vector.shape_cast %262 : vector<16xf32> to vector<16x1xf32>
    %cst_78 = arith.constant 3.200000e+01 : f32
    %264 = vector.broadcast %cst_78 : f32 to vector<16x1xf32>
    %265 = arith.divf %263, %264 : vector<16x1xf32>
    %266 = vector.broadcast %265 : vector<16x1xf32> to vector<16x32xf32>
    %267 = arith.subf %261, %266 : vector<16x32xf32>
    %268 = arith.mulf %267, %267 : vector<16x32xf32>
    %cst_79 = arith.constant dense<0.000000e+00> : vector<16xf32>
    %269 = vector.multi_reduction <add>, %268, %cst_79 [1] : vector<16x32xf32> to vector<16xf32>
    %270 = vector.shape_cast %269 : vector<16xf32> to vector<16x1xf32>
    %cst_80 = arith.constant 3.100000e+01 : f32
    %271 = vector.broadcast %cst_80 : f32 to vector<16x1xf32>
    %272 = arith.divf %270, %271 : vector<16x1xf32>
    %273 = math.sqrt %272 : vector<16x1xf32>
    %274 = vector.broadcast %265 : vector<16x1xf32> to vector<16x32xf32>
    %275 = arith.subf %261, %274 : vector<16x32xf32>
    %276 = vector.broadcast %155 : vector<1x32xf32> to vector<16x32xf32>
    %277 = arith.mulf %276, %275 : vector<16x32xf32>
    %cst_81 = arith.constant 9.99999993E-9 : f32
    %278 = vector.broadcast %cst_81 : f32 to vector<16x1xf32>
    %279 = arith.addf %273, %278 : vector<16x1xf32>
    %280 = tpu.reciprocal %279 {approx = true} : vector<16x1xf32> -> vector<16x1xf32>
    %281 = vector.broadcast %280 : vector<16x1xf32> to vector<16x32xf32>
    %282 = arith.mulf %277, %281 : vector<16x32xf32>
    %283 = vector.broadcast %156 : vector<1x32xf32> to vector<16x32xf32>
    %284 = arith.addf %282, %283 : vector<16x32xf32>
    %285 = vector.extract_strided_slice %212 {offsets = [0, 0, 0], sizes = [1, 16, 16], strides = [1, 1, 1]} : vector<4x16x16xf32> to vector<1x16x16xf32>
    %286 = vector.shape_cast %285 : vector<1x16x16xf32> to vector<16x16xf32>
    %287 = vector.extract_strided_slice %212 {offsets = [1, 0, 0], sizes = [1, 16, 16], strides = [1, 1, 1]} : vector<4x16x16xf32> to vector<1x16x16xf32>
    %288 = vector.shape_cast %287 : vector<1x16x16xf32> to vector<16x16xf32>
    %289 = vector.extract_strided_slice %212 {offsets = [2, 0, 0], sizes = [1, 16, 16], strides = [1, 1, 1]} : vector<4x16x16xf32> to vector<1x16x16xf32>
    %290 = vector.shape_cast %289 : vector<1x16x16xf32> to vector<16x16xf32>
    %291 = vector.extract_strided_slice %212 {offsets = [3, 0, 0], sizes = [1, 16, 16], strides = [1, 1, 1]} : vector<4x16x16xf32> to vector<1x16x16xf32>
    %292 = vector.shape_cast %291 : vector<1x16x16xf32> to vector<16x16xf32>
    %c0_82 = arith.constant 0 : index
    %c0_83 = arith.constant 0 : index
    %c0_84 = arith.constant 0 : index
    %293 = vector.load %arg9[%c0_82, %c0_83, %c0_84] : memref<1x16x32xf32, #tpu.memory_space<vmem>>, vector<1x16x32xf32>
    %294 = vector.shape_cast %293 : vector<1x16x32xf32> to vector<16x32xf32>
    %295 = vector.shape_cast %284 : vector<16x32xf32> to vector<1x16x32xf32>
    tpu.vector_store %arg9[%c0_82, %c0_83, %c0_84], %295 {strides = array<i32>} : memref<1x16x32xf32, #tpu.memory_space<vmem>>, vector<1x16x32xf32>,
    %296 = tpu.concatenate %143, %145, %147, %149, %286, %288, %290, %292 in 1 : vector<16x16xf32>, vector<16x16xf32>, vector<16x16xf32>, vector<16x16xf32>, vector<16x16xf32>, vector<16x16xf32>, vector<16x16xf32>, vector<16x16xf32> -> vector<16x128xf32>
    %c0_85 = arith.constant 0 : index
    %c0_86 = arith.constant 0 : index
    %c0_87 = arith.constant 0 : index
    %297 = vector.load %arg10[%c0_85, %c0_86, %c0_87] : memref<1x16x128xf32, #tpu.memory_space<vmem>>, vector<1x16x128xf32>
    %298 = vector.shape_cast %297 : vector<1x16x128xf32> to vector<16x128xf32>
    %299 = vector.shape_cast %296 : vector<16x128xf32> to vector<1x16x128xf32>
    tpu.vector_store %arg10[%c0_85, %c0_86, %c0_87], %299 {strides = array<i32>} : memref<1x16x128xf32, #tpu.memory_space<vmem>>, vector<1x16x128xf32>,
    return
  }
  func.func @transform_0(%arg0: i32) -> (i32, i32, i32) {
    %c0_i32 = arith.constant 0 : i32
    %c0_i32_0 = arith.constant 0 : i32
    %c0_i32_1 = arith.constant 0 : i32
    return %arg0, %c0_i32, %c0_i32_0 : i32, i32, i32
  }
  func.func @transform_1(%arg0: i32) -> (i32, i32, i32) {
    %c0_i32 = arith.constant 0 : i32
    %c0_i32_0 = arith.constant 0 : i32
    %c0_i32_1 = arith.constant 0 : i32
    return %arg0, %c0_i32, %c0_i32_0 : i32, i32, i32
  }
  func.func @transform_2(%arg0: i32) -> (i32, i32, i32) {
    %c0_i32 = arith.constant 0 : i32
    %c0_i32_0 = arith.constant 0 : i32
    %c0_i32_1 = arith.constant 0 : i32
    %c0_i32_2 = arith.constant 0 : i32
    return %c0_i32, %c0_i32_0, %c0_i32_1 : i32, i32, i32
  }
  func.func @transform_3(%arg0: i32) -> (i32, i32, i32) {
    %c0_i32 = arith.constant 0 : i32
    %c0_i32_0 = arith.constant 0 : i32
    %c0_i32_1 = arith.constant 0 : i32
    %c0_i32_2 = arith.constant 0 : i32
    return %c0_i32, %c0_i32_0, %c0_i32_1 : i32, i32, i32
  }
  func.func @transform_4(%arg0: i32) -> (i32, i32, i32) {
    %c0_i32 = arith.constant 0 : i32
    %c0_i32_0 = arith.constant 0 : i32
    %c0_i32_1 = arith.constant 0 : i32
    %c0_i32_2 = arith.constant 0 : i32
    return %c0_i32, %c0_i32_0, %c0_i32_1 : i32, i32, i32
  }
  func.func @transform_5(%arg0: i32) -> (i32, i32, i32) {
    %c0_i32 = arith.constant 0 : i32
    %c0_i32_0 = arith.constant 0 : i32
    %c0_i32_1 = arith.constant 0 : i32
    %c0_i32_2 = arith.constant 0 : i32
    return %c0_i32, %c0_i32_0, %c0_i32_1 : i32, i32, i32
  }
  func.func @transform_6(%arg0: i32) -> (i32, i32, i32) {
    %c0_i32 = arith.constant 0 : i32
    %c0_i32_0 = arith.constant 0 : i32
    %c0_i32_1 = arith.constant 0 : i32
    %c0_i32_2 = arith.constant 0 : i32
    return %c0_i32, %c0_i32_0, %c0_i32_1 : i32, i32, i32
  }
  func.func @transform_7(%arg0: i32) -> (i32, i32, i32) {
    %c0_i32 = arith.constant 0 : i32
    %c0_i32_0 = arith.constant 0 : i32
    %c0_i32_1 = arith.constant 0 : i32
    %c0_i32_2 = arith.constant 0 : i32
    return %c0_i32, %c0_i32_0, %c0_i32_1 : i32, i32, i32
  }
  func.func @transform_8(%arg0: i32) -> (i32, i32, i32) {
    %c0_i32 = arith.constant 0 : i32
    %c0_i32_0 = arith.constant 0 : i32
    %c0_i32_1 = arith.constant 0 : i32
    return %arg0, %c0_i32, %c0_i32_0 : i32, i32, i32
  }
  func.func @transform_9(%arg0: i32) -> (i32, i32, i32) {
    %c0_i32 = arith.constant 0 : i32
    %c0_i32_0 = arith.constant 0 : i32
    %c0_i32_1 = arith.constant 0 : i32
    return %arg0, %c0_i32, %c0_i32_0 : i32, i32, i32
  }
}

</mosaic_0001>

<bundles_post_ra>
// kernel: tpu_custom_call.1
= control target key start
LH: loop header
LB: loop body
LE: loop exit
PB: predicated region body
PF: predicated region fallthrough
CT: control target
= control target key end

     0   :  { %s7604_s0 = inlined_call_operand.vmem [shape: f32[2,16,32], index: 0, kind: input, shape index: {}]   ;;  %s7605_s1 = inlined_call_operand.vmem [shape: f32[2,1,16], index: 1, kind: input, shape index: {}]   ;;  %s7606_s2 = inlined_call_operand.vmem [shape: f32[2,32,96], index: 2, kind: input, shape index: {}]   ;;  %s7607_s3 = inlined_call_operand.vmem [shape: f32[2,1,96], index: 3, kind: input, shape index: {}]   ;;  %s7608_s4 = inlined_call_operand.vmem [shape: f32[2,32,128], index: 4, kind: input, shape index: {}]   ;;  %s7609_s5 = inlined_call_operand.vmem [shape: f32[2,1,128], index: 5, kind: input, shape index: {}]   ;;  %s7610_s6 = inlined_call_operand.vmem [shape: f32[2,128,32], index: 6, kind: input, shape index: {}]   ;;  %s7611_s7 = inlined_call_operand.vmem [shape: f32[2,5,32], index: 7, kind: input, shape index: {}]   ;;  %s7612_s8 = inlined_call_operand.hbm [shape: f32[2,16,32], index: 8, kind: output, shape index: {0}]   ;;  %s7613_s9 = inlined_call_operand.hbm [shape: f32[2,16,128], index: 9, kind: output, shape index: {1}]  }
   0x1   :  { %7802 = sst [smem:[#allocation106_spill]] %s7604_s0 }
   0x2   :  { %15 = vsyncpa [#allocation3], 0 }
   0x3   :  { %17 = vsyncpa [#allocation3 + $0x1], 0 }
   0x4   :  { %18 = vsyncpa [#allocation5], 0 }
   0x5   :  { %20 = vsyncpa [#allocation5 + $0x1], 0  ;;  %s5071_s30 = smov 0   ;;  %s5073_s10 = smov 0  }
   0x6   :  { %s5075_s11 = smov 0   ;;  %s5077_s12 = smov 0  }
   0x7 LB: > { %s5092_s13 = sadd.s32 4294967295, %s5005_s12   ;;  %s4381_s14 = sadd.s32 4294967294, %s5005_s12   ;;  %s5005_s12 = sphi %s5077_s12, %s8158_s12   ;;  %s5001_s11 = sphi %s5075_s11, %s8157_s11   ;;  %s4997_s10 = sphi %s5073_s10, %s8156_s10   ;;  %s4993_s30 = sphi %s5071_s30, %s8155_s30  }
   0x8   : > { %s5096_s15 = sadd.s32 1, %s5005_s12   ;;  %s211_s16 = sadd.s32 1, %s5001_s11 }
   0x9   : > { %s208_s17 = ssub.s32 %s5005_s12, %s5096_s15  ;;  %p221_p0 = scmp.ne.s32.totalorder %s5001_s11, %s4997_s10 }
   0xa   : > { %p209_p1 = scmp.eq.s32.totalorder %s208_s17, 0  ;;  %p222_p2 = scmp.eq.s32.totalorder %s5092_s13, 1 }
   0xb   : > { %p227_p3 = scmp.ne.s32.totalorder %s4997_s10, %s4993_s30  ;;  %p228_p4 = scmp.eq.s32.totalorder %s4381_s14, 1 }
   0xc   : > { %s5107_s18 = scalar_select %p209_p1, %s5001_s11, %s211_s16  }
   0xd   : > { %p5109_p5 = por %p222_p2, %p221_p0  ;;  %p5113_p6 = por %p228_p4, %p227_p3 }
   0xe   : > { %p4384_p7 = scmp.ge.s32.totalorder %s5005_s12, 1  ;;  %p304_p8 = scmp.lt.s32.totalorder %s5005_s12, 3 }
  0x10   : > { %p305_p9 = pnand %p4384_p7, %p304_p8 }
  0x12   : > { %308 = sbr.rel (%p305_p9) target bundleno = 3969 (0xf81), region = 52 }
  0x17   : > { %v364_v0 = vld [vmem:[%s7606_s2 + $0x18] sm:$0xff]  ;;  %v363_v1 = vld [vmem:[%s7606_s2 + $0x10] sm:$0xff]  ;;  %p348_p10 = scmp.lt.s32.totalorder %s5092_s13, 1  ;;  %v362_v2 = vld [vmem:[%s7606_s2 + $0x8] sm:$0xff]  ;;  %s7805_s0 = sld [smem:[#allocation106_spill]]  ;;  %vm369_vm0 = vcmask 261120  }
  0x18   : > { %388 = vmatpush.msra.mxu0 %v364_v0  ;;  %v361_v3 = vld [vmem:[%s7606_s2] sm:$0xff]  ;;  %s7797_s24 = smov 96   ;;  %s7795_s25 = smov 112   ;;  %vm419_vm1 = vcmask 64512   ;;  %vm901_vm3 = vcmask 130048   ;;  %vm1961_vm4 = vcmask 195584  }
  0x19   : > { %s5130_s27 = scalar_select %p348_p10, %s5092_s13, 1  ;;  %v4581_v7 = vld [vmem:[%s7607_s3] ss:$0 sm:$0xff] }
  0x1a   : > { %389 = vmatpush.msra.mxu0 %v363_v1  ;;  %s5009_s26 = smov 120   ;;  %s5010_s28 = smov 104  }
  0x1b   : > { %s4480_s14 = sshll.u32 %s5130_s27, 4  ;;  %s355_s16 = scalar_lea.vmem %s7605_s1, %s5130_s27 }
  0x1c   : > { %390 = vmatpush.msra.mxu0 %v362_v2  ;;  %v5202_v21 = vld [vmem:[%s355_s16] sm:$0x1]  ;;  %s7681_s27 = smov 64   ;;  %s7679_s17 = smov 16  }
  0x1d   : > { %s5139_s21 = scalar_lea.vmem %s7805_s0, %s4480_s14  ;;  %7814 = vst [vmem:[#allocation16_spill] sm:$0xff] %v5202_v21  ;;  %vm359_vm2 = vcmp.eq.f32.partialorder %v5202_v21, 0.0  ;;  %s7677_s22 = smov 8  }
  0x1e   : > { %v356_v4 = vld [vmem:[%s5139_s21] sm:$0xff]  ;;  %391 = vmatpush.msra.mxu0 %v361_v3  ;;  %v357_v5 = vld [vmem:[%s5139_s21 + $0x8] sm:$0xff]  ;;  %s7675_s23 = smov 24   ;;  %s8123_s14 = smov 8  }
  0x1f   : > { %4389 = vmatmul.msk.f32.vlgmr.msra.gmra.mxu0 %vm369_vm0, %v356_v4  ;;  %s8124_s16 = smov 24   ;;  %s8151_s29 = smov 96  }
  0x27   : > { %4390 = vmatmul.msk.f32.gmra.mxu0 %vm369_vm0, %v357_v5 }
  0x9c   : > { %v393_v6 = vpop.f32.mrf.mxu0 }
  0x9d   : > { %v394_v11 = vadd.f32 %v4581_v7, %v393_v6 }
  0x9f   : > { %v5156_v12 = vmax.f32 %v394_v11, 0.0 }
  0xa1   : > { %7807 = vst [vmem:[#allocation9_spill] sm:$0xff] %v5156_v12 }
  0xa4   : > { %v396_v8 = vpop.f32.mrf.mxu0 }
  0xa5   : > { %v397_v9 = vadd.f32 %v4581_v7, %v396_v8 }
  0xa7   : > { %v5148_v10 = vmax.f32 %v397_v9, 0.0 }
  0xa9   : > { %7806 = vst [vmem:[#allocation8_spill] sm:$0xff] %v5148_v10  ;;  %417 = vrot.lane.b32.xlu2 %v5148_v10, %s7797_s24  ;;  %409 = vrot.lane.b32.xlu1 %v5148_v10, %s7795_s25 }
  0xaa   : > { %405 = vrot.lane.b32.xlu0 %v5148_v10, %s5009_s26 }
  0xb1   : > { %415 = vrot.lane.b32.xlu2 %v5156_v12, %s7797_s24  ;;  %407 = vrot.lane.b32.xlu1 %v5156_v12, %s7795_s25 }
  0xb2   : > { %403 = vrot.lane.b32.xlu0 %v5156_v12, %s5009_s26 }
  0xb9   : > { %411 = vrot.lane.b32.xlu2 %v5156_v12, %s5010_s28 }
  0xba   : > { %413 = vrot.lane.b32.xlu0 %v5148_v10, %s5010_s28 }
 0x103   : > { %v418_v13 = vpop.permute.xlu2 %417 }
 0x104   : > { %4391 = vmatpush.xpose.msk.msra.mxu1 %vm419_vm1, %v418_v13 }
 0x10b   : > { %v416_v14 = vpop.permute.xlu2 %415 }
 0x10c   : > { %4392 = vmatpush.xpose.msk.msra.mxu1 %vm419_vm1, %v416_v14 }
 0x10f   : > { %4393 = vmatmul.msk.f32.vlgmr.msra.gmra.mxu1 %vm419_vm1, %v5156_v12 }
 0x113   : > { %v5190_v19 = vpop.permute.xlu2 %411 }
 0x114   : > { %7812 = vst [vmem:[#allocation14_spill] sm:$0xff] %v5190_v19 }
 0x117   : > { %4394 = vmatmul.msk.f32.gmra.mxu1 %vm419_vm1, %v5148_v10 }
 0x11b   : > { %v5174_v15 = vpop.permute.xlu1 %409 }
 0x11c   : > { %7808 = vst [vmem:[#allocation10_spill] sm:$0xff] %v5174_v15  ;;  %v5176_v16 = vpop.permute.xlu0 %405 }
 0x11d   : > { %7809 = vst [vmem:[#allocation11_spill] sm:$0xff] %v5176_v16  ;;  %453 = vrot.lane.b32.xlu1 %v5176_v16, %s7797_s24 }
 0x123   : > { %v5180_v17 = vpop.permute.xlu1 %407 }
 0x124   : > { %7810 = vst [vmem:[#allocation12_spill] sm:$0xff] %v5180_v17  ;;  %v5182_v18 = vpop.permute.xlu0 %403  ;;  %486 = vrot.lane.b32.xlu2 %v5180_v17, %s7797_s24 }
 0x125   : > { %7811 = vst [vmem:[#allocation13_spill] sm:$0xff] %v5182_v18  ;;  %488 = vrot.lane.b32.xlu1 %v5174_v15, %s7797_s24  ;;  %451 = vrot.lane.b32.xlu0 %v5182_v18, %s7797_s24 }
 0x12c   : > { %v5192_v20 = vpop.permute.xlu0 %413 }
 0x12d   : > { %7813 = vst [vmem:[#allocation15_spill] sm:$0xff] %v5192_v20  ;;  %521 = vrot.lane.b32.xlu1 %v5190_v19, %s7797_s24  ;;  %523 = vrot.lane.b32.xlu0 %v5192_v20, %s7797_s24 }
 0x17e   : > { %v487_v46 = vpop.permute.xlu2 %486 }
 0x18c   : > { %v445_v22 = vpop.f32.mrf.mxu1 }
 0x18d   : > { %v556_v23 = vmul.f32 0.35355338, %v445_v22 }
 0x18f   : > { %v574_v24 = vrot.slane %v556_v23, 1  ;;  %v575_v25 = vrot.slane %v556_v23, 2  ;;  %v576_v26 = vrot.slane %v556_v23, 3  ;;  %v577_v27 = vrot.slane %v556_v23, 4  ;;  %v454_v28 = vpop.permute.xlu1 %453 }
 0x190   : > { %v578_v29 = vrot.slane %v556_v23, 5  ;;  %v579_v30 = vrot.slane %v556_v23, 6  ;;  %v5207_v31 = vsel %vm359_vm2, -4.2949673e+09, %v556_v23  ;;  %4395 = vmatpush.xpose.msk.msra.mxu3 %vm419_vm1, %v454_v28  ;;  %v580_v32 = vrot.slane %v556_v23, 7 }
 0x191   : > { %v5212_v33 = vsel %vm359_vm2, -4.2949673e+09, %v574_v24  ;;  %v5216_v34 = vsel %vm359_vm2, -4.2949673e+09, %v575_v25  ;;  %v5220_v35 = vsel %vm359_vm2, -4.2949673e+09, %v576_v26  ;;  %814 = vst [vmem:[#allocation1] ss:$9 sm:$0xff] %v5207_v31  ;;  %v5225_v36 = vsel %vm359_vm2, -4.2949673e+09, %v577_v27 }
 0x192   : > { %816 = vst [vmem:[#allocation1 + $0x1] ss:$9 sm:$0xff] %v5212_v33  ;;  %v5230_v37 = vsel %vm359_vm2, -4.2949673e+09, %v578_v29  ;;  %v5235_v38 = vsel %vm359_vm2, -4.2949673e+09, %v579_v30  ;;  %v5240_v40 = vsel %vm359_vm2, -4.2949673e+09, %v580_v32 }
 0x193   : > { %818 = vst [vmem:[#allocation1 + $0x2] ss:$9 sm:$0xff] %v5216_v34 }
 0x194   : > { %820 = vst [vmem:[#allocation1 + $0x3] ss:$9 sm:$0xff] %v5220_v35  ;;  %v448_v39 = vpop.f32.mrf.mxu1 }
 0x195   : > { %822 = vst [vmem:[#allocation1 + $0x4] ss:$9 sm:$0xff] %v5225_v36  ;;  %v557_v41 = vmul.f32 0.35355338, %v448_v39 }
 0x196   : > { %824 = vst [vmem:[#allocation1 + $0x5] ss:$9 sm:$0xff] %v5230_v37 }
 0x197   : > { %826 = vst [vmem:[#allocation1 + $0x6] ss:$9 sm:$0xff] %v5235_v38  ;;  %v489_v42 = vpop.permute.xlu1 %488  ;;  %v452_v43 = vpop.permute.xlu0 %451  ;;  %v581_v44 = vrot.slane %v557_v41, 1  ;;  %v582_v45 = vrot.slane %v557_v41, 2  ;;  %v583_v47 = vrot.slane %v557_v41, 3  ;;  %v584_v48 = vrot.slane %v557_v41, 4 }
 0x198   : > { %828 = vst [vmem:[#allocation1 + $0x7] ss:$9 sm:$0xff] %v5240_v40  ;;  %4396 = vmatpush.xpose.msk.msra.mxu3 %vm419_vm1, %v452_v43  ;;  %v585_v49 = vrot.slane %v557_v41, 5  ;;  %v586_v52 = vrot.slane %v557_v41, 6  ;;  %v5257_v53 = vsel %vm359_vm2, -4.2949673e+09, %v557_v41  ;;  %v587_v56 = vrot.slane %v557_v41, 7 }
 0x199   : > { %v5253_v50 = vsel %vm359_vm2, -4.2949673e+09, %v581_v44  ;;  %v5261_v54 = vsel %vm359_vm2, -4.2949673e+09, %v582_v45  ;;  %v5265_v57 = vsel %vm359_vm2, -4.2949673e+09, %v583_v47  ;;  %v5272_v59 = vsel %vm359_vm2, -4.2949673e+09, %v584_v48 }
 0x19a   : > { %v5277_v60 = vsel %vm359_vm2, -4.2949673e+09, %v585_v49  ;;  %v5282_v61 = vsel %vm359_vm2, -4.2949673e+09, %v586_v52  ;;  %v5289_v63 = vsel %vm359_vm2, -4.2949673e+09, %v587_v56 }
 0x19b   : > { %4397 = vmatmul.msk.f32.vlgmr.msra.gmra.mxu3 %vm419_vm1, %v5182_v18 }
 0x19c   : > { %4399 = vmatpush.xpose.msk.msrb.mxu3 %vm419_vm1, %v489_v42 }
 0x19f   : > { %v829_v51 = vld [vmem:[#allocation1] sm:$0xff]  ;;  %v524_v55 = vpop.permute.xlu0 %523  ;;  %v522_v62 = vpop.permute.xlu1 %521 }
 0x1a0   : > { %4400 = vmatpush.xpose.msk.msrb.mxu3 %vm419_vm1, %v487_v46  ;;  %830 = vst [vmem:[#allocation1] ss:$9 sm:$0xff] %v5257_v53  ;;  %v902_v58 = vsel %vm901_vm3, %v829_v51, -inf  ;;  %4403 = vmatpush.xpose.msk.msrb.mxu0 %vm419_vm1, %v524_v55 }
 0x1a1   : > { %831 = vst [vmem:[#allocation1 + $0x1] ss:$9 sm:$0xff] %v5253_v50  ;;  %903 = vmax.xlane.f32.xlu2 %v902_v58 }
 0x1a2   : > { %832 = vst [vmem:[#allocation1 + $0x2] ss:$9 sm:$0xff] %v5261_v54 }
 0x1a3   : > { %833 = vst [vmem:[#allocation1 + $0x3] ss:$9 sm:$0xff] %v5265_v57  ;;  %4398 = vmatmul.msk.f32.gmra.mxu3 %vm419_vm1, %v5176_v16 }
 0x1a4   : > { %834 = vst [vmem:[#allocation1 + $0x4] ss:$9 sm:$0xff] %v5272_v59  ;;  %4404 = vmatpush.xpose.msk.msrb.mxu0 %vm419_vm1, %v522_v62 }
 0x1a5   : > { %835 = vst [vmem:[#allocation1 + $0x5] ss:$9 sm:$0xff] %v5277_v60 }
 0x1a6   : > { %836 = vst [vmem:[#allocation1 + $0x6] ss:$9 sm:$0xff] %v5282_v61 }
 0x1a7   : > { %837 = vst [vmem:[#allocation1 + $0x7] ss:$9 sm:$0xff] %v5289_v63  ;;  %4405 = vmatmul.msk.f32.vlgmr.msrb.gmra.mxu0 %vm419_vm1, %v5190_v19 }
 0x1ab   : > { %4401 = vmatmul.msk.f32.vlgmr.msrb.gmra.mxu3 %vm419_vm1, %v5180_v17 }
 0x1ae   : > { %v838_v0 = vld [vmem:[#allocation1] sm:$0xff] }
 0x1af   : > { %v905_v1 = vsel %vm901_vm3, %v838_v0, -inf  ;;  %4406 = vmatmul.msk.f32.gmra.mxu0 %vm419_vm1, %v5192_v20 }
 0x1b0   : > { %906 = vmax.xlane.f32.xlu0 %v905_v1 }
 0x1b3   : > { %4402 = vmatmul.msk.f32.gmra.mxu3 %vm419_vm1, %v5174_v15 }
 0x21e   : > { %v480_v2 = vpop.f32.mrf.mxu3 }
 0x21f   : > { %v558_v3 = vmul.f32 0.35355338, %v480_v2 }
 0x221   : > { %v588_v4 = vrot.slane %v558_v3, 1  ;;  %v589_v5 = vrot.slane %v558_v3, 2  ;;  %v5307_v6 = vsel %vm359_vm2, -4.2949673e+09, %v558_v3  ;;  %v590_v9 = vrot.slane %v558_v3, 3 }
 0x222   : > { %839 = vst [vmem:[#allocation1] ss:$9 sm:$0xff] %v5307_v6  ;;  %v591_v11 = vrot.slane %v558_v3, 4  ;;  %v592_v13 = vrot.slane %v558_v3, 5  ;;  %v593_v14 = vrot.slane %v558_v3, 6  ;;  %v594_v22 = vrot.slane %v558_v3, 7 }
 0x223   : > { %v5311_v7 = vsel %vm359_vm2, -4.2949673e+09, %v588_v4  ;;  %v5315_v8 = vsel %vm359_vm2, -4.2949673e+09, %v589_v5  ;;  %v5322_v23 = vsel %vm359_vm2, -4.2949673e+09, %v590_v9 }
 0x224   : > { %840 = vst [vmem:[#allocation1 + $0x1] ss:$9 sm:$0xff] %v5311_v7  ;;  %v5326_v24 = vsel %vm359_vm2, -4.2949673e+09, %v591_v11  ;;  %v5330_v25 = vsel %vm359_vm2, -4.2949673e+09, %v592_v13  ;;  %v5334_v26 = vsel %vm359_vm2, -4.2949673e+09, %v593_v14  ;;  %v5339_v28 = vsel %vm359_vm2, -4.2949673e+09, %v594_v22 }
 0x225   : > { %841 = vst [vmem:[#allocation1 + $0x2] ss:$9 sm:$0xff] %v5315_v8 }
 0x226   : > { %842 = vst [vmem:[#allocation1 + $0x3] ss:$9 sm:$0xff] %v5322_v23  ;;  %v483_v27 = vpop.f32.mrf.mxu3 }
 0x227   : > { %843 = vst [vmem:[#allocation1 + $0x4] ss:$9 sm:$0xff] %v5326_v24  ;;  %v559_v29 = vmul.f32 0.35355338, %v483_v27 }
 0x228   : > { %844 = vst [vmem:[#allocation1 + $0x5] ss:$9 sm:$0xff] %v5330_v25 }
 0x229   : > { %845 = vst [vmem:[#allocation1 + $0x6] ss:$9 sm:$0xff] %v5334_v26  ;;  %v595_v30 = vrot.slane %v559_v29, 1  ;;  %v596_v32 = vrot.slane %v559_v29, 2  ;;  %v597_v39 = vrot.slane %v559_v29, 3  ;;  %v598_v41 = vrot.slane %v559_v29, 4 }
 0x22a   : > { %846 = vst [vmem:[#allocation1 + $0x7] ss:$9 sm:$0xff] %v5339_v28  ;;  %v599_v42 = vrot.slane %v559_v29, 5  ;;  %v600_v45 = vrot.slane %v559_v29, 6  ;;  %v5351_v46 = vsel %vm359_vm2, -4.2949673e+09, %v559_v29  ;;  %v601_v48 = vrot.slane %v559_v29, 7 }
 0x22b   : > { %v5347_v43 = vsel %vm359_vm2, -4.2949673e+09, %v595_v30  ;;  %v5355_v47 = vsel %vm359_vm2, -4.2949673e+09, %v596_v32  ;;  %v5359_v49 = vsel %vm359_vm2, -4.2949673e+09, %v597_v39  ;;  %v5364_v51 = vsel %vm359_vm2, -4.2949673e+09, %v598_v41 }
 0x22c   : > { %v5369_v52 = vsel %vm359_vm2, -4.2949673e+09, %v599_v42  ;;  %v5374_v56 = vsel %vm359_vm2, -4.2949673e+09, %v600_v45  ;;  %v5380_v62 = vsel %vm359_vm2, -4.2949673e+09, %v601_v48 }
 0x22e   : > { %v515_v55 = vpop.f32.mrf.mxu3 }
 0x22f   : > { %v560_v0 = vmul.f32 0.35355338, %v515_v55 }
 0x231   : > { %v847_v44 = vld [vmem:[#allocation1] sm:$0xff]  ;;  %v602_v1 = vrot.slane %v560_v0, 1  ;;  %v603_v2 = vrot.slane %v560_v0, 2  ;;  %v604_v3 = vrot.slane %v560_v0, 3  ;;  %v605_v4 = vrot.slane %v560_v0, 4 }
 0x232   : > { %848 = vst [vmem:[#allocation1] ss:$9 sm:$0xff] %v5351_v46  ;;  %v908_v58 = vsel %vm901_vm3, %v847_v44, -inf  ;;  %v606_v5 = vrot.slane %v560_v0, 5  ;;  %v607_v13 = vrot.slane %v560_v0, 6  ;;  %v5392_v14 = vsel %vm359_vm2, -4.2949673e+09, %v560_v0 }
 0x233   : > { %849 = vst [vmem:[#allocation1 + $0x1] ss:$9 sm:$0xff] %v5347_v43  ;;  %909 = vmax.xlane.f32.xlu1 %v908_v58  ;;  %v5388_v9 = vsel %vm359_vm2, -4.2949673e+09, %v602_v1  ;;  %v5396_v22 = vsel %vm359_vm2, -4.2949673e+09, %v603_v2  ;;  %v608_v27 = vrot.slane %v560_v0, 7  ;;  %v5400_v29 = vsel %vm359_vm2, -4.2949673e+09, %v604_v3 }
 0x234   : > { %850 = vst [vmem:[#allocation1 + $0x2] ss:$9 sm:$0xff] %v5355_v47  ;;  %v5406_v32 = vsel %vm359_vm2, -4.2949673e+09, %v605_v4  ;;  %v5411_v39 = vsel %vm359_vm2, -4.2949673e+09, %v606_v5  ;;  %v5416_v42 = vsel %vm359_vm2, -4.2949673e+09, %v607_v13 }
 0x235   : > { %851 = vst [vmem:[#allocation1 + $0x3] ss:$9 sm:$0xff] %v5359_v49  ;;  %v5421_v44 = vsel %vm359_vm2, -4.2949673e+09, %v608_v27 }
 0x236   : > { %852 = vst [vmem:[#allocation1 + $0x4] ss:$9 sm:$0xff] %v5364_v51  ;;  %v518_v41 = vpop.f32.mrf.mxu3 }
 0x237   : > { %853 = vst [vmem:[#allocation1 + $0x5] ss:$9 sm:$0xff] %v5369_v52  ;;  %v561_v45 = vmul.f32 0.35355338, %v518_v41 }
 0x238   : > { %854 = vst [vmem:[#allocation1 + $0x6] ss:$9 sm:$0xff] %v5374_v56 }
 0x239   : > { %855 = vst [vmem:[#allocation1 + $0x7] ss:$9 sm:$0xff] %v5380_v62  ;;  %v609_v48 = vrot.slane %v561_v45, 1  ;;  %v610_v55 = vrot.slane %v561_v45, 2  ;;  %v611_v58 = vrot.slane %v561_v45, 3  ;;  %v612_v0 = vrot.slane %v561_v45, 4 }
 0x23a   : > { %v613_v1 = vrot.slane %v561_v45, 5  ;;  %v614_v4 = vrot.slane %v561_v45, 6  ;;  %v5433_v5 = vsel %vm359_vm2, -4.2949673e+09, %v561_v45  ;;  %v615_v13 = vrot.slane %v561_v45, 7 }
 0x23b   : > { %v5429_v2 = vsel %vm359_vm2, -4.2949673e+09, %v609_v48  ;;  %v5441_v27 = vsel %vm359_vm2, -4.2949673e+09, %v611_v58 }
 0x23c   : > { %7816 = vst [vmem:[#allocation18_spill] sm:$0xff] %v5441_v27  ;;  %v5451_v41 = vsel %vm359_vm2, -4.2949673e+09, %v613_v1  ;;  %v5456_v45 = vsel %vm359_vm2, -4.2949673e+09, %v614_v4  ;;  %v5462_v58 = vsel %vm359_vm2, -4.2949673e+09, %v615_v13 }
 0x23d   : > { %7818 = vst [vmem:[#allocation20_spill] sm:$0xff] %v5451_v41 }
 0x23e   : > { %7819 = vst [vmem:[#allocation21_spill] sm:$0xff] %v5456_v45 }
 0x23f   : > { %7820 = vst [vmem:[#allocation22_spill] sm:$0xff] %v5462_v58 }
 0x240   : > { %v856_v11 = vld [vmem:[#allocation1] sm:$0xff] }
 0x241   : > { %857 = vst [vmem:[#allocation1] ss:$9 sm:$0xff] %v5392_v14  ;;  %v911_v30 = vsel %vm901_vm3, %v856_v11, -inf  ;;  %v5437_v11 = vsel %vm359_vm2, -4.2949673e+09, %v610_v55  ;;  %v550_v55 = vpop.f32.mrf.mxu0 }
 0x242   : > { %858 = vst [vmem:[#allocation1 + $0x1] ss:$9 sm:$0xff] %v5388_v9  ;;  %912 = vmax.xlane.f32.xlu2 %v911_v30  ;;  %v5446_v30 = vsel %vm359_vm2, -4.2949673e+09, %v612_v0  ;;  %v562_v0 = vmul.f32 0.35355338, %v550_v55 }
 0x243   : > { %859 = vst [vmem:[#allocation1 + $0x2] ss:$9 sm:$0xff] %v5396_v22 }
 0x244   : > { %860 = vst [vmem:[#allocation1 + $0x3] ss:$9 sm:$0xff] %v5400_v29  ;;  %v616_v1 = vrot.slane %v562_v0, 1  ;;  %v617_v4 = vrot.slane %v562_v0, 2  ;;  %v618_v19 = vrot.slane %v562_v0, 3  ;;  %v619_v20 = vrot.slane %v562_v0, 4 }
 0x245   : > { %861 = vst [vmem:[#allocation1 + $0x4] ss:$9 sm:$0xff] %v5406_v32  ;;  %v620_v12 = vrot.slane %v562_v0, 5  ;;  %v621_v10 = vrot.slane %v562_v0, 6  ;;  %v622_v18 = vrot.slane %v562_v0, 7 }
 0x246   : > { %862 = vst [vmem:[#allocation1 + $0x5] ss:$9 sm:$0xff] %v5411_v39  ;;  %v5480_v17 = vsel %vm359_vm2, -4.2949673e+09, %v617_v4  ;;  %v5485_v15 = vsel %vm359_vm2, -4.2949673e+09, %v618_v19 }
 0x247   : > { %863 = vst [vmem:[#allocation1 + $0x6] ss:$9 sm:$0xff] %v5416_v42  ;;  %v5495_v4 = vsel %vm359_vm2, -4.2949673e+09, %v620_v12  ;;  %v5505_v19 = vsel %vm359_vm2, -4.2949673e+09, %v622_v18  ;;  %v904_v12 = vpop.xlane.xlu2 %903 }
 0x248   : > { %864 = vst [vmem:[#allocation1 + $0x7] ss:$9 sm:$0xff] %v5421_v44 }
 0x249   : > { %7815 = vst [vmem:[#allocation17_spill] sm:$0xff] %v5437_v11 }
 0x24a   : > { %7817 = vst [vmem:[#allocation19_spill] sm:$0xff] %v5446_v30 }
 0x24b   : > { %7823 = vst [vmem:[#allocation25_spill] sm:$0xff] %v5480_v17 }
 0x24c   : > { %7824 = vst [vmem:[#allocation26_spill] sm:$0xff] %v5485_v15 }
 0x24d   : > { %7826 = vst [vmem:[#allocation28_spill] sm:$0xff] %v5495_v4 }
 0x24e   : > { %7828 = vst [vmem:[#allocation30_spill] sm:$0xff] %v5505_v19 }
 0x24f   : > { %v865_v3 = vld [vmem:[#allocation1] sm:$0xff] }
 0x250   : > { %866 = vst [vmem:[#allocation1] ss:$9 sm:$0xff] %v5433_v5  ;;  %v914_v48 = vsel %vm901_vm3, %v865_v3, -inf  ;;  %v5470_v3 = vsel %vm359_vm2, -4.2949673e+09, %v562_v0  ;;  %v5500_v0 = vsel %vm359_vm2, -4.2949673e+09, %v621_v10  ;;  %v937_v10 = vperm.slane %v904_v12, 3 }
 0x251   : > { %867 = vst [vmem:[#allocation1 + $0x1] ss:$9 sm:$0xff] %v5429_v2  ;;  %915 = vmax.xlane.f32.xlu2 %v914_v48  ;;  %v5474_v48 = vsel %vm359_vm2, -4.2949673e+09, %v616_v1  ;;  %v5490_v1 = vsel %vm359_vm2, -4.2949673e+09, %v619_v20 }
 0x252   : > { %868 = vst [vmem:[#allocation1 + $0x2] ss:$9 sm:$0xff] %v5437_v11 }
 0x253   : > { %869 = vst [vmem:[#allocation1 + $0x3] ss:$9 sm:$0xff] %v5441_v27 }
 0x254   : > { %870 = vst [vmem:[#allocation1 + $0x4] ss:$9 sm:$0xff] %v5446_v30 }
 0x255   : > { %871 = vst [vmem:[#allocation1 + $0x5] ss:$9 sm:$0xff] %v5451_v41  ;;  %v939_v41 = vperm.slane %v904_v12, 5 }
 0x256   : > { %872 = vst [vmem:[#allocation1 + $0x6] ss:$9 sm:$0xff] %v5456_v45 }
 0x257   : > { %873 = vst [vmem:[#allocation1 + $0x7] ss:$9 sm:$0xff] %v5462_v58 }
 0x258   : > { %7821 = vst [vmem:[#allocation23_spill] sm:$0xff] %v5470_v3 }
 0x259   : > { %7822 = vst [vmem:[#allocation24_spill] sm:$0xff] %v5474_v48 }
 0x25a   : > { %7825 = vst [vmem:[#allocation27_spill] sm:$0xff] %v5490_v1 }
 0x25b   : > { %7827 = vst [vmem:[#allocation29_spill] sm:$0xff] %v5500_v0 }
 0x25e   : > { %v874_v13 = vld [vmem:[#allocation1] sm:$0xff] }
 0x25f   : > { %875 = vst [vmem:[#allocation1] ss:$9 sm:$0xff] %v5470_v3  ;;  %v917_v55 = vsel %vm901_vm3, %v874_v13, -inf  ;;  %v553_v13 = vpop.f32.mrf.mxu0  ;;  %v938_v3 = vperm.slane %v904_v12, 4 }
 0x260   : > { %876 = vst [vmem:[#allocation1 + $0x1] ss:$9 sm:$0xff] %v5474_v48  ;;  %918 = vmax.xlane.f32.xlu0 %v917_v55  ;;  %v563_v20 = vmul.f32 0.35355338, %v553_v13  ;;  %v934_v55 = vperm.slane %v904_v12, 0 }
 0x261   : > { %877 = vst [vmem:[#allocation1 + $0x2] ss:$9 sm:$0xff] %v5480_v17  ;;  %v936_v17 = vperm.slane %v904_v12, 2 }
 0x262   : > { %878 = vst [vmem:[#allocation1 + $0x3] ss:$9 sm:$0xff] %v5485_v15  ;;  %v623_v16 = vrot.slane %v563_v20, 1  ;;  %v935_v15 = vperm.slane %v904_v12, 1  ;;  %v625_v48 = vrot.slane %v563_v20, 3  ;;  %v626_v58 = vrot.slane %v563_v20, 4 }
 0x263   : > { %879 = vst [vmem:[#allocation1 + $0x4] ss:$9 sm:$0xff] %v5490_v1  ;;  %v624_v1 = vrot.slane %v563_v20, 2  ;;  %v627_v13 = vrot.slane %v563_v20, 5  ;;  %v628_v27 = vrot.slane %v563_v20, 6 }
 0x264   : > { %880 = vst [vmem:[#allocation1 + $0x5] ss:$9 sm:$0xff] %v5495_v4  ;;  %v5511_v4 = vsel %vm359_vm2, -4.2949673e+09, %v563_v20  ;;  %v1063_v30 = vsub.f32 %v5212_v33, %v935_v15  ;;  %v1065_v15 = vsub.f32 %v5220_v35, %v937_v10  ;;  %v5535_v33 = vsel %vm359_vm2, -4.2949673e+09, %v626_v58 }
 0x265   : > { %881 = vst [vmem:[#allocation1 + $0x6] ss:$9 sm:$0xff] %v5500_v0  ;;  %v1062_v0 = vsub.f32 %v5207_v31, %v934_v55  ;;  %v5523_v11 = vsel %vm359_vm2, -4.2949673e+09, %v624_v1  ;;  %v940_v31 = vperm.slane %v904_v12, 6  ;;  %v1064_v55 = vsub.f32 %v5216_v34, %v936_v17 }
 0x266   : > { %882 = vst [vmem:[#allocation1 + $0x7] ss:$9 sm:$0xff] %v5505_v19  ;;  %v5516_v19 = vsel %vm359_vm2, -4.2949673e+09, %v623_v16  ;;  %v629_v16 = vrot.slane %v563_v20, 7  ;;  %v5541_v17 = vsel %vm359_vm2, -4.2949673e+09, %v627_v13  ;;  %v1067_v34 = vsub.f32 %v5230_v37, %v939_v41 }
 0x267   : > { %7829 = vst [vmem:[#allocation31_spill] sm:$0xff] %v5511_v4  ;;  %v1126_v1 = vmul.f32 1.442695, %v1062_v0  ;;  %v5547_v35 = vsel %vm359_vm2, -4.2949673e+09, %v628_v27  ;;  %v1068_v58 = vsub.f32 %v5235_v38, %v940_v31  ;;  %v1130_v20 = vmul.f32 1.442695, %v1064_v55  ;;  %v907_v27 = vpop.xlane.xlu0 %906 }
 0x268   : > { %v1132_v0 = vmul.f32 1.442695, %v1065_v15  ;;  %v943_v10 = vperm.slane %v907_v27, 1  ;;  %v944_v13 = vperm.slane %v907_v27, 2 }
 0x269   : > { %4585 = vpow2.f32 %v1126_v1  ;;  %v1138_v41 = vmul.f32 1.442695, %v1068_v58 }
 0x26d   : > { %v883_v18 = vld [vmem:[#allocation1] sm:$0xff] }
 0x26e   : > { %884 = vst [vmem:[#allocation1] ss:$9 sm:$0xff] %v5511_v4  ;;  %v920_v45 = vsel %vm901_vm3, %v883_v18, -inf  ;;  %v5529_v4 = vsel %vm359_vm2, -4.2949673e+09, %v625_v48  ;;  %v941_v18 = vperm.slane %v904_v12, 7  ;;  %v942_v12 = vperm.slane %v907_v27, 0 }
 0x26f   : > { %885 = vst [vmem:[#allocation1 + $0x1] ss:$9 sm:$0xff] %v5516_v19  ;;  %921 = vmax.xlane.f32.xlu1 %v920_v45  ;;  %v1066_v45 = vsub.f32 %v5225_v36, %v938_v3  ;;  %v1128_v48 = vmul.f32 1.442695, %v1063_v30  ;;  %v5553_v36 = vsel %vm359_vm2, -4.2949673e+09, %v629_v16  ;;  %v5558_v31 = vpop.eup %4585 }
 0x270   : > { %886 = vst [vmem:[#allocation1 + $0x2] ss:$9 sm:$0xff] %v5523_v11  ;;  %v1069_v3 = vsub.f32 %v5240_v40, %v941_v18  ;;  %v1136_v30 = vmul.f32 1.442695, %v1067_v34  ;;  %v945_v40 = vperm.slane %v907_v27, 3  ;;  %v946_v18 = vperm.slane %v907_v27, 4 }
 0x271   : > { %887 = vst [vmem:[#allocation1 + $0x3] ss:$9 sm:$0xff] %v5529_v4  ;;  %v1134_v37 = vmul.f32 1.442695, %v1066_v45  ;;  %4587 = vpow2.f32 %v1128_v48  ;;  %v1070_v15 = vsub.f32 %v5257_v53, %v942_v12  ;;  %v947_v34 = vperm.slane %v907_v27, 5 }
 0x272   : > { %888 = vst [vmem:[#allocation1 + $0x4] ss:$9 sm:$0xff] %v5535_v33  ;;  %4589 = vpow2.f32 %v1130_v20  ;;  %v1140_v38 = vmul.f32 1.442695, %v1069_v3  ;;  %v1071_v48 = vsub.f32 %v5253_v50, %v943_v10  ;;  %v948_v20 = vperm.slane %v907_v27, 6 }
 0x273   : > { %889 = vst [vmem:[#allocation1 + $0x5] ss:$9 sm:$0xff] %v5541_v17  ;;  %4591 = vpow2.f32 %v1132_v0  ;;  %v1072_v3 = vsub.f32 %v5261_v54, %v944_v13  ;;  %v949_v0 = vperm.slane %v907_v27, 7  ;;  %v1074_v50 = vsub.f32 %v5272_v59, %v946_v18 }
 0x274   : > { %890 = vst [vmem:[#allocation1 + $0x6] ss:$9 sm:$0xff] %v5547_v35  ;;  %4593 = vpow2.f32 %v1134_v37  ;;  %v1073_v37 = vsub.f32 %v5265_v57, %v945_v40  ;;  %v1075_v54 = vsub.f32 %v5277_v60, %v947_v34  ;;  %v1144_v12 = vmul.f32 1.442695, %v1071_v48 }
 0x275   : > { %891 = vst [vmem:[#allocation1 + $0x7] ss:$9 sm:$0xff] %v5553_v36  ;;  %4595 = vpow2.f32 %v1136_v30  ;;  %v1076_v57 = vsub.f32 %v5282_v61, %v948_v20  ;;  %v1146_v27 = vmul.f32 1.442695, %v1072_v3  ;;  %v1077_v13 = vsub.f32 %v5289_v63, %v949_v0 }
 0x276   : > { %4597 = vpow2.f32 %v1138_v41  ;;  %v1142_v41 = vmul.f32 1.442695, %v1070_v15  ;;  %v1148_v59 = vmul.f32 1.442695, %v1073_v37  ;;  %v1150_v40 = vmul.f32 1.442695, %v1074_v50 }
 0x277   : > { %v5560_v16 = vpop.eup %4587  ;;  %4599 = vpow2.f32 %v1140_v38  ;;  %v1154_v60 = vmul.f32 1.442695, %v1076_v57  ;;  %v1156_v18 = vmul.f32 1.442695, %v1077_v13 }
 0x278   : > { %v5565_v1 = vpop.eup %4589  ;;  %4601 = vpow2.f32 %v1142_v41 }
 0x279   : > { %v5569_v58 = vpop.eup %4591  ;;  %4603 = vpow2.f32 %v1144_v12 }
 0x27a   : > { %v5573_v53 = vpop.eup %4593  ;;  %4605 = vpow2.f32 %v1146_v27 }
 0x27b   : > { %v5577_v30 = vpop.eup %4595  ;;  %4607 = vpow2.f32 %v1148_v59 }
 0x27c   : > { %v892_v55 = vld [vmem:[#allocation1] sm:$0xff]  ;;  %v5581_v38 = vpop.eup %4597  ;;  %4609 = vpow2.f32 %v1150_v40 }
 0x27d   : > { %1318 = vst [vmem:[#allocation1] ss:$9 sm:$0xff] %v5558_v31  ;;  %v923_v45 = vsel %vm901_vm3, %v892_v55, -inf  ;;  %v5585_v10 = vpop.eup %4599  ;;  %v1152_v55 = vmul.f32 1.442695, %v1075_v54 }
 0x27e   : > { %1320 = vst [vmem:[#allocation1 + $0x1] ss:$9 sm:$0xff] %v5560_v16  ;;  %924 = vmax.xlane.f32.xlu2 %v923_v45  ;;  %v5591_v15 = vpop.eup %4601 }
 0x27f   : > { %1322 = vst [vmem:[#allocation1 + $0x2] ss:$9 sm:$0xff] %v5565_v1  ;;  %4611 = vpow2.f32 %v1152_v55  ;;  %v5593_v45 = vpop.eup %4603 }
 0x280   : > { %1324 = vst [vmem:[#allocation1 + $0x3] ss:$9 sm:$0xff] %v5569_v58  ;;  %4613 = vpow2.f32 %v1154_v60  ;;  %v5597_v34 = vpop.eup %4605 }
 0x281   : > { %1326 = vst [vmem:[#allocation1 + $0x4] ss:$9 sm:$0xff] %v5573_v53  ;;  %4615 = vpow2.f32 %v1156_v18  ;;  %v5600_v48 = vpop.eup %4607 }
 0x282   : > { %1328 = vst [vmem:[#allocation1 + $0x5] ss:$9 sm:$0xff] %v5577_v30  ;;  %v5603_v20 = vpop.eup %4609 }
 0x283   : > { %1330 = vst [vmem:[#allocation1 + $0x6] ss:$9 sm:$0xff] %v5581_v38 }
 0x284   : > { %1332 = vst [vmem:[#allocation1 + $0x7] ss:$9 sm:$0xff] %v5585_v10 }
 0x285   : > { %7830 = vst [vmem:[#allocation32_spill] sm:$0xff] %v5600_v48  ;;  %v5606_v3 = vpop.eup %4611 }
 0x286   : > { %7831 = vst [vmem:[#allocation33_spill] sm:$0xff] %v5603_v20  ;;  %v5609_v0 = vpop.eup %4613 }
 0x287   : > { %7832 = vst [vmem:[#allocation34_spill] sm:$0xff] %v5606_v3  ;;  %v5612_v37 = vpop.eup %4615 }
 0x288   : > { %7833 = vst [vmem:[#allocation35_spill] sm:$0xff] %v5609_v0 }
 0x289   : > { %7834 = vst [vmem:[#allocation36_spill] sm:$0xff] %v5612_v37 }
 0x28b   : > { %v1333_v61 = vld [vmem:[#allocation1] sm:$0xff] }
 0x28c   : > { %1334 = vst [vmem:[#allocation1] ss:$9 sm:$0xff] %v5591_v15  ;;  %v1405_v63 = vsel %vm901_vm3, %v1333_v61, 0.0 }
 0x28d   : > { %1335 = vst [vmem:[#allocation1 + $0x1] ss:$9 sm:$0xff] %v5593_v45  ;;  %1406 = vadd.xlane.f32.xlu0 %v1405_v63 }
 0x28e   : > { %1336 = vst [vmem:[#allocation1 + $0x2] ss:$9 sm:$0xff] %v5597_v34 }
 0x28f   : > { %1337 = vst [vmem:[#allocation1 + $0x3] ss:$9 sm:$0xff] %v5600_v48 }
 0x290   : > { %1338 = vst [vmem:[#allocation1 + $0x4] ss:$9 sm:$0xff] %v5603_v20 }
 0x291   : > { %1339 = vst [vmem:[#allocation1 + $0x5] ss:$9 sm:$0xff] %v5606_v3 }
 0x292   : > { %1340 = vst [vmem:[#allocation1 + $0x6] ss:$9 sm:$0xff] %v5609_v0 }
 0x293   : > { %1341 = vst [vmem:[#allocation1 + $0x7] ss:$9 sm:$0xff] %v5612_v37 }
 0x29a   : > { %v1342_v50 = vld [vmem:[#allocation1] sm:$0xff] }
 0x29b   : > { %v1408_v41 = vsel %vm901_vm3, %v1342_v50, 0.0 }
 0x29c   : > { %1409 = vadd.xlane.f32.xlu1 %v1408_v41 }
 0x2a6   : > { %v910_v54 = vpop.xlane.xlu1 %909 }
 0x2a7   : > { %v950_v12 = vperm.slane %v910_v54, 0  ;;  %v951_v57 = vperm.slane %v910_v54, 1  ;;  %v952_v27 = vperm.slane %v910_v54, 2  ;;  %v953_v13 = vperm.slane %v910_v54, 3 }
 0x2a8   : > { %v954_v59 = vperm.slane %v910_v54, 4  ;;  %v955_v40 = vperm.slane %v910_v54, 5  ;;  %v956_v55 = vperm.slane %v910_v54, 6  ;;  %v957_v60 = vperm.slane %v910_v54, 7 }
 0x2a9   : > { %v1078_v18 = vsub.f32 %v5307_v6, %v950_v12  ;;  %v1079_v61 = vsub.f32 %v5311_v7, %v951_v57  ;;  %v1080_v63 = vsub.f32 %v5315_v8, %v952_v27  ;;  %v1081_v21 = vsub.f32 %v5322_v23, %v953_v13 }
 0x2aa   : > { %v1082_v50 = vsub.f32 %v5326_v24, %v954_v59  ;;  %v1083_v41 = vsub.f32 %v5330_v25, %v955_v40  ;;  %v1084_v37 = vsub.f32 %v5334_v26, %v956_v55  ;;  %v1085_v48 = vsub.f32 %v5339_v28, %v957_v60 }
 0x2ab   : > { %v1158_v0 = vmul.f32 1.442695, %v1078_v18  ;;  %v1160_v3 = vmul.f32 1.442695, %v1079_v61  ;;  %v1162_v20 = vmul.f32 1.442695, %v1080_v63 }
 0x2ac   : > { %v1164_v54 = vmul.f32 1.442695, %v1081_v21  ;;  %v1166_v6 = vmul.f32 1.442695, %v1082_v50  ;;  %v1168_v7 = vmul.f32 1.442695, %v1083_v41 }
 0x2ad   : > { %4617 = vpow2.f32 %v1158_v0  ;;  %v1170_v8 = vmul.f32 1.442695, %v1084_v37  ;;  %v1172_v23 = vmul.f32 1.442695, %v1085_v48 }
 0x2ae   : > { %4619 = vpow2.f32 %v1160_v3 }
 0x2af   : > { %4621 = vpow2.f32 %v1162_v20 }
 0x2b0   : > { %4623 = vpow2.f32 %v1164_v54 }
 0x2b1   : > { %4625 = vpow2.f32 %v1166_v6 }
 0x2b2   : > { %4627 = vpow2.f32 %v1168_v7 }
 0x2b3   : > { %v5625_v25 = vpop.eup %4617  ;;  %4629 = vpow2.f32 %v1170_v8 }
 0x2b4   : > { %v5627_v27 = vpop.eup %4619  ;;  %4631 = vpow2.f32 %v1172_v23  ;;  %1343 = vst [vmem:[#allocation1] ss:$9 sm:$0xff] %v5625_v25 }
 0x2b5   : > { %v913_v24 = vpop.xlane.xlu2 %912  ;;  %v5630_v3 = vpop.eup %4621  ;;  %1344 = vst [vmem:[#allocation1 + $0x1] ss:$9 sm:$0xff] %v5627_v27 }
 0x2b6   : > { %v958_v26 = vperm.slane %v913_v24, 0  ;;  %v959_v12 = vperm.slane %v913_v24, 1  ;;  %v960_v57 = vperm.slane %v913_v24, 2  ;;  %v961_v21 = vperm.slane %v913_v24, 3  ;;  %v5635_v59 = vpop.eup %4623  ;;  %1345 = vst [vmem:[#allocation1 + $0x2] ss:$9 sm:$0xff] %v5630_v3 }
 0x2b7   : > { %v962_v28 = vperm.slane %v913_v24, 4  ;;  %v963_v20 = vperm.slane %v913_v24, 5  ;;  %v964_v48 = vperm.slane %v913_v24, 6  ;;  %v965_v0 = vperm.slane %v913_v24, 7  ;;  %v5641_v18 = vpop.eup %4625  ;;  %1346 = vst [vmem:[#allocation1 + $0x3] ss:$9 sm:$0xff] %v5635_v59 }
 0x2b8   : > { %v1086_v37 = vsub.f32 %v5351_v46, %v958_v26  ;;  %v1087_v13 = vsub.f32 %v5347_v43, %v959_v12  ;;  %v1088_v40 = vsub.f32 %v5355_v47, %v960_v57  ;;  %v1089_v55 = vsub.f32 %v5359_v49, %v961_v21  ;;  %v5645_v50 = vpop.eup %4627  ;;  %1347 = vst [vmem:[#allocation1 + $0x4] ss:$9 sm:$0xff] %v5641_v18 }
 0x2b9   : > { %v1090_v60 = vsub.f32 %v5364_v51, %v962_v28  ;;  %v1091_v61 = vsub.f32 %v5369_v52, %v963_v20  ;;  %v1092_v43 = vsub.f32 %v5374_v56, %v964_v48  ;;  %v5649_v47 = vpop.eup %4629  ;;  %1348 = vst [vmem:[#allocation1 + $0x5] ss:$9 sm:$0xff] %v5645_v50  ;;  %v1093_v49 = vsub.f32 %v5380_v62, %v965_v0 }
 0x2ba   : > { %v1174_v63 = vmul.f32 1.442695, %v1086_v37  ;;  %v1176_v46 = vmul.f32 1.442695, %v1087_v13  ;;  %v1178_v41 = vmul.f32 1.442695, %v1088_v40  ;;  %v5653_v54 = vpop.eup %4631 }
 0x2bb   : > { %v1180_v51 = vmul.f32 1.442695, %v1089_v55  ;;  %1349 = vst [vmem:[#allocation1 + $0x6] ss:$9 sm:$0xff] %v5649_v47  ;;  %v1182_v52 = vmul.f32 1.442695, %v1090_v60 }
 0x2bc   : > { %4633 = vpow2.f32 %v1174_v63  ;;  %1350 = vst [vmem:[#allocation1 + $0x7] ss:$9 sm:$0xff] %v5653_v54  ;;  %v1184_v6 = vmul.f32 1.442695, %v1091_v61  ;;  %v1186_v56 = vmul.f32 1.442695, %v1092_v43 }
 0x2bd   : > { %4635 = vpow2.f32 %v1176_v46  ;;  %v1188_v7 = vmul.f32 1.442695, %v1093_v49 }
 0x2be   : > { %4637 = vpow2.f32 %v1178_v41 }
 0x2bf   : > { %4639 = vpow2.f32 %v1180_v51 }
 0x2c0   : > { %4641 = vpow2.f32 %v1182_v52 }
 0x2c1   : > { %4643 = vpow2.f32 %v1184_v6 }
 0x2c2   : > { %v5657_v8 = vpop.eup %4633  ;;  %4645 = vpow2.f32 %v1186_v56 }
 0x2c3   : > { %v5659_v62 = vpop.eup %4635  ;;  %4647 = vpow2.f32 %v1188_v7  ;;  %v1351_v24 = vld [vmem:[#allocation1] sm:$0xff] }
 0x2c4   : > { %v5661_v23 = vpop.eup %4637  ;;  %1352 = vst [vmem:[#allocation1] ss:$9 sm:$0xff] %v5657_v8  ;;  %v1411_v12 = vsel %vm901_vm3, %v1351_v24, 0.0  ;;  %v916_v21 = vpop.xlane.xlu2 %915 }
 0x2c5   : > { %v5663_v26 = vpop.eup %4639  ;;  %1353 = vst [vmem:[#allocation1 + $0x1] ss:$9 sm:$0xff] %v5659_v62  ;;  %1412 = vadd.xlane.f32.xlu2 %v1411_v12  ;;  %v966_v20 = vperm.slane %v916_v21, 0  ;;  %v967_v48 = vperm.slane %v916_v21, 1  ;;  %v968_v0 = vperm.slane %v916_v21, 2  ;;  %v969_v37 = vperm.slane %v916_v21, 3 }
 0x2c6   : > { %v5667_v57 = vpop.eup %4641  ;;  %1354 = vst [vmem:[#allocation1 + $0x2] ss:$9 sm:$0xff] %v5661_v23  ;;  %v970_v40 = vperm.slane %v916_v21, 4  ;;  %v971_v55 = vperm.slane %v916_v21, 5  ;;  %v972_v60 = vperm.slane %v916_v21, 6  ;;  %v973_v61 = vperm.slane %v916_v21, 7 }
 0x2c7   : > { %v5670_v28 = vpop.eup %4643  ;;  %1355 = vst [vmem:[#allocation1 + $0x3] ss:$9 sm:$0xff] %v5663_v26  ;;  %v1094_v46 = vsub.f32 %v5392_v14, %v966_v20  ;;  %v1095_v43 = vsub.f32 %v5388_v9, %v967_v48  ;;  %v1096_v41 = vsub.f32 %v5396_v22, %v968_v0  ;;  %v1097_v49 = vsub.f32 %v5400_v29, %v969_v37 }
 0x2c8   : > { %v5673_v13 = vpop.eup %4645  ;;  %1356 = vst [vmem:[#allocation1 + $0x4] ss:$9 sm:$0xff] %v5667_v57  ;;  %v1098_v51 = vsub.f32 %v5406_v32, %v970_v40  ;;  %v1099_v52 = vsub.f32 %v5411_v39, %v971_v55  ;;  %v1100_v6 = vsub.f32 %v5416_v42, %v972_v60  ;;  %v1101_v9 = vsub.f32 %v5421_v44, %v973_v61 }
 0x2c9   : > { %v5676_v63 = vpop.eup %4647  ;;  %1357 = vst [vmem:[#allocation1 + $0x5] ss:$9 sm:$0xff] %v5670_v28  ;;  %v1190_v56 = vmul.f32 1.442695, %v1094_v46  ;;  %v1192_v7 = vmul.f32 1.442695, %v1095_v43 }
 0x2ca   : > { %1358 = vst [vmem:[#allocation1 + $0x6] ss:$9 sm:$0xff] %v5673_v13  ;;  %v1194_v14 = vmul.f32 1.442695, %v1096_v41  ;;  %v1196_v22 = vmul.f32 1.442695, %v1097_v49 }
 0x2cb   : > { %1359 = vst [vmem:[#allocation1 + $0x7] ss:$9 sm:$0xff] %v5676_v63  ;;  %4649 = vpow2.f32 %v1190_v56  ;;  %v1198_v29 = vmul.f32 1.442695, %v1098_v51  ;;  %v1200_v24 = vmul.f32 1.442695, %v1099_v52 }
 0x2cc   : > { %4651 = vpow2.f32 %v1192_v7  ;;  %v1202_v32 = vmul.f32 1.442695, %v1100_v6  ;;  %v1204_v39 = vmul.f32 1.442695, %v1101_v9  ;;  %v7836_v51 = vld [vmem:[#allocation17_spill] sm:$0xff]  ;;  %v7837_v6 = vld [vmem:[#allocation18_spill] sm:$0xff] }
 0x2cd   : > { %4653 = vpow2.f32 %v1194_v14  ;;  %v7838_v7 = vld [vmem:[#allocation19_spill] sm:$0xff] }
 0x2ce   : > { %4655 = vpow2.f32 %v1196_v22  ;;  %v7840_v22 = vld [vmem:[#allocation20_spill] sm:$0xff] }
 0x2cf   : > { %4657 = vpow2.f32 %v1198_v29 }
 0x2d0   : > { %4659 = vpow2.f32 %v1200_v24 }
 0x2d1   : > { %v5690_v42 = vpop.eup %4649  ;;  %4661 = vpow2.f32 %v1202_v32 }
 0x2d2   : > { %v1360_v21 = vld [vmem:[#allocation1] sm:$0xff]  ;;  %v5692_v0 = vpop.eup %4651  ;;  %4663 = vpow2.f32 %v1204_v39 }
 0x2d3   : > { %v919_v12 = vpop.xlane.xlu0 %918  ;;  %1361 = vst [vmem:[#allocation1] ss:$9 sm:$0xff] %v5690_v42  ;;  %v5695_v60 = vpop.eup %4653 }
 0x2d4   : > { %v974_v20 = vperm.slane %v919_v12, 0  ;;  %v975_v48 = vperm.slane %v919_v12, 1  ;;  %v976_v44 = vperm.slane %v919_v12, 2  ;;  %v977_v37 = vperm.slane %v919_v12, 3  ;;  %1362 = vst [vmem:[#allocation1 + $0x1] ss:$9 sm:$0xff] %v5692_v0  ;;  %v5700_v49 = vpop.eup %4655 }
 0x2d5   : > { %v978_v40 = vperm.slane %v919_v12, 4  ;;  %v979_v55 = vperm.slane %v919_v12, 5  ;;  %v980_v61 = vperm.slane %v919_v12, 6  ;;  %v981_v46 = vperm.slane %v919_v12, 7  ;;  %7835 = vst [vmem:[#allocation37_spill] sm:$0xff] %v5700_v49  ;;  %v5706_v14 = vpop.eup %4657 }
 0x2d6   : > { %v1102_v43 = vsub.f32 %v5433_v5, %v974_v20  ;;  %v1103_v41 = vsub.f32 %v5429_v2, %v975_v48  ;;  %1363 = vst [vmem:[#allocation1 + $0x2] ss:$9 sm:$0xff] %v5695_v60  ;;  %v1104_v52 = vsub.f32 %v7836_v51, %v976_v44  ;;  %v1105_v56 = vsub.f32 %v7837_v6, %v977_v37  ;;  %v5710_v32 = vpop.eup %4659  ;;  %v7842_v2 = vld [vmem:[#allocation21_spill] sm:$0xff]  ;;  %v7844_v48 = vld [vmem:[#allocation22_spill] sm:$0xff] }
 0x2d7   : > { %v1106_v9 = vsub.f32 %v7838_v7, %v978_v40  ;;  %7839 = vst [vmem:[#allocation17_spill] sm:$0xff] %v5706_v14  ;;  %v1107_v29 = vsub.f32 %v7840_v22, %v979_v55  ;;  %v1108_v39 = vsub.f32 %v7842_v2, %v980_v61  ;;  %v5714_v20 = vpop.eup %4661  ;;  %v1109_v44 = vsub.f32 %v7844_v48, %v981_v46 }
 0x2d8   : > { %1364 = vst [vmem:[#allocation1 + $0x3] ss:$9 sm:$0xff] %v5700_v49  ;;  %v1206_v24 = vmul.f32 1.442695, %v1102_v43  ;;  %v1208_v5 = vmul.f32 1.442695, %v1103_v41  ;;  %v5718_v40 = vpop.eup %4663 }
 0x2d9   : > { %7841 = vst [vmem:[#allocation18_spill] sm:$0xff] %v5710_v32  ;;  %v1210_v12 = vmul.f32 1.442695, %v1104_v52  ;;  %v1212_v37 = vmul.f32 1.442695, %v1105_v56  ;;  %v1414_v61 = vsel %vm901_vm3, %v1360_v21, 0.0 }
 0x2da   : > { %1365 = vst [vmem:[#allocation1 + $0x4] ss:$9 sm:$0xff] %v5706_v14  ;;  %4665 = vpow2.f32 %v1206_v24  ;;  %v1214_v55 = vmul.f32 1.442695, %v1106_v9  ;;  %v1216_v43 = vmul.f32 1.442695, %v1107_v29  ;;  %1415 = vadd.xlane.f32.xlu0 %v1414_v61 }
 0x2db   : > { %7843 = vst [vmem:[#allocation19_spill] sm:$0xff] %v5714_v20  ;;  %4667 = vpow2.f32 %v1208_v5  ;;  %v1218_v41 = vmul.f32 1.442695, %v1108_v39  ;;  %v1220_v51 = vmul.f32 1.442695, %v1109_v44  ;;  %v7848_v44 = vld [vmem:[#allocation23_spill] sm:$0xff] }
 0x2dc   : > { %1366 = vst [vmem:[#allocation1 + $0x5] ss:$9 sm:$0xff] %v5710_v32  ;;  %4669 = vpow2.f32 %v1210_v12  ;;  %v7850_v61 = vld [vmem:[#allocation25_spill] sm:$0xff] }
 0x2dd   : > { %7845 = vst [vmem:[#allocation20_spill] sm:$0xff] %v5718_v40  ;;  %4671 = vpow2.f32 %v1212_v37 }
 0x2de   : > { %1367 = vst [vmem:[#allocation1 + $0x6] ss:$9 sm:$0xff] %v5714_v20  ;;  %4673 = vpow2.f32 %v1214_v55  ;;  %v7849_v55 = vld [vmem:[#allocation24_spill] sm:$0xff] }
 0x2df   : > { %1368 = vst [vmem:[#allocation1 + $0x7] ss:$9 sm:$0xff] %v5718_v40  ;;  %4675 = vpow2.f32 %v1216_v43 }
 0x2e0   : > { %v5723_v46 = vpop.eup %4665  ;;  %4677 = vpow2.f32 %v1218_v41 }
 0x2e1   : > { %7846 = vst [vmem:[#allocation21_spill] sm:$0xff] %v5723_v46  ;;  %v5725_v52 = vpop.eup %4667  ;;  %4679 = vpow2.f32 %v1220_v51  ;;  %v7851_v51 = vld [vmem:[#allocation26_spill] sm:$0xff] }
 0x2e2   : > { %7847 = vst [vmem:[#allocation22_spill] sm:$0xff] %v5725_v52  ;;  %v922_v6 = vpop.xlane.xlu1 %921  ;;  %v5727_v56 = vpop.eup %4669 }
 0x2e3   : > { %v982_v9 = vperm.slane %v922_v6, 0  ;;  %v983_v22 = vperm.slane %v922_v6, 1  ;;  %v984_v21 = vperm.slane %v922_v6, 2  ;;  %v985_v29 = vperm.slane %v922_v6, 3  ;;  %v5729_v24 = vpop.eup %4671 }
 0x2e4   : > { %v986_v5 = vperm.slane %v922_v6, 4  ;;  %v987_v2 = vperm.slane %v922_v6, 5  ;;  %v988_v39 = vperm.slane %v922_v6, 6  ;;  %v989_v12 = vperm.slane %v922_v6, 7  ;;  %v5732_v48 = vpop.eup %4673  ;;  %v7853_v6 = vld [vmem:[#allocation28_spill] sm:$0xff] }
 0x2e5   : > { %v1110_v37 = vsub.f32 %v7848_v44, %v982_v9  ;;  %v1111_v43 = vsub.f32 %v7849_v55, %v983_v22  ;;  %v1112_v41 = vsub.f32 %v7850_v61, %v984_v21  ;;  %v1113_v40 = vsub.f32 %v7851_v51, %v985_v29  ;;  %v5739_v20 = vpop.eup %4675  ;;  %v7855_v22 = vld [vmem:[#allocation29_spill] sm:$0xff]  ;;  %v7856_v55 = vld [vmem:[#allocation30_spill] sm:$0xff] }
 0x2e6   : > { %v1369_v7 = vld [vmem:[#allocation1] sm:$0xff]  ;;  %v5743_v14 = vpop.eup %4677  ;;  %v1116_v21 = vsub.f32 %v7855_v22, %v988_v39  ;;  %v1117_v61 = vsub.f32 %v7856_v55, %v989_v12 }
 0x2e7   : > { %1370 = vst [vmem:[#allocation1] ss:$9 sm:$0xff] %v5723_v46  ;;  %v7852_v46 = vld [vmem:[#allocation27_spill] sm:$0xff]  ;;  %v1222_v49 = vmul.f32 1.442695, %v1110_v37  ;;  %v5747_v44 = vpop.eup %4679  ;;  %v1417_v37 = vsel %vm901_vm3, %v1369_v7, 0.0 }
 0x2e8   : > { %1371 = vst [vmem:[#allocation1 + $0x1] ss:$9 sm:$0xff] %v5725_v52  ;;  %v1114_v32 = vsub.f32 %v7852_v46, %v986_v5  ;;  %v1115_v52 = vsub.f32 %v7853_v6, %v987_v2  ;;  %v1224_v9 = vmul.f32 1.442695, %v1111_v43  ;;  %v1226_v29 = vmul.f32 1.442695, %v1112_v41  ;;  %1418 = vadd.xlane.f32.xlu1 %v1417_v37 }
 0x2e9   : > { %1372 = vst [vmem:[#allocation1 + $0x2] ss:$9 sm:$0xff] %v5727_v56  ;;  %v1228_v46 = vmul.f32 1.442695, %v1113_v40  ;;  %4681 = vpow2.f32 %v1222_v49  ;;  %v1234_v43 = vmul.f32 1.442695, %v1116_v21 }
 0x2ea   : > { %1373 = vst [vmem:[#allocation1 + $0x3] ss:$9 sm:$0xff] %v5729_v24  ;;  %v1230_v5 = vmul.f32 1.442695, %v1114_v32  ;;  %4683 = vpow2.f32 %v1224_v9  ;;  %v1232_v2 = vmul.f32 1.442695, %v1115_v52 }
 0x2eb   : > { %7854 = vst [vmem:[#allocation23_spill] sm:$0xff] %v5747_v44  ;;  %4685 = vpow2.f32 %v1226_v29  ;;  %v1236_v39 = vmul.f32 1.442695, %v1117_v61 }
 0x2ec   : > { %1374 = vst [vmem:[#allocation1 + $0x4] ss:$9 sm:$0xff] %v5732_v48  ;;  %4687 = vpow2.f32 %v1228_v46  ;;  %v7859_v46 = vld [vmem:[#allocation31_spill] sm:$0xff] }
 0x2ed   : > { %1375 = vst [vmem:[#allocation1 + $0x5] ss:$9 sm:$0xff] %v5739_v20  ;;  %4689 = vpow2.f32 %v1230_v5 }
 0x2ee   : > { %1376 = vst [vmem:[#allocation1 + $0x6] ss:$9 sm:$0xff] %v5743_v14  ;;  %4691 = vpow2.f32 %v1232_v2 }
 0x2ef   : > { %1377 = vst [vmem:[#allocation1 + $0x7] ss:$9 sm:$0xff] %v5747_v44  ;;  %v5756_v41 = vpop.eup %4681  ;;  %4693 = vpow2.f32 %v1234_v43 }
 0x2f0   : > { %7857 = vst [vmem:[#allocation24_spill] sm:$0xff] %v5756_v41  ;;  %v5758_v40 = vpop.eup %4683  ;;  %4695 = vpow2.f32 %v1236_v39 }
 0x2f1   : > { %7858 = vst [vmem:[#allocation25_spill] sm:$0xff] %v5758_v40  ;;  %v925_v49 = vpop.xlane.xlu2 %924  ;;  %v5760_v32 = vpop.eup %4685 }
 0x2f2   : > { %v990_v52 = vperm.slane %v925_v49, 0  ;;  %v991_v51 = vperm.slane %v925_v49, 1  ;;  %v992_v7 = vperm.slane %v925_v49, 2  ;;  %v993_v6 = vperm.slane %v925_v49, 3  ;;  %v5762_v9 = vpop.eup %4687 }
 0x2f3   : > { %v994_v22 = vperm.slane %v925_v49, 4  ;;  %v995_v21 = vperm.slane %v925_v49, 5  ;;  %v996_v29 = vperm.slane %v925_v49, 6  ;;  %v997_v55 = vperm.slane %v925_v49, 7  ;;  %v5765_v61 = vpop.eup %4689 }
 0x2f4   : > { %v1118_v5 = vsub.f32 %v7859_v46, %v990_v52  ;;  %v1119_v2 = vsub.f32 %v5516_v19, %v991_v51  ;;  %v1120_v37 = vsub.f32 %v5523_v11, %v992_v7  ;;  %v1121_v43 = vsub.f32 %v5529_v4, %v993_v6  ;;  %v5772_v39 = vpop.eup %4691 }
 0x2f5   : > { %v5776_v44 = vpop.eup %4693  ;;  %v1123_v49 = vsub.f32 %v5541_v17, %v995_v21  ;;  %v1124_v11 = vsub.f32 %v5547_v35, %v996_v29  ;;  %v1125_v19 = vsub.f32 %v5553_v36, %v997_v55 }
 0x2f6   : > { %v1378_v12 = vld [vmem:[#allocation1] sm:$0xff]  ;;  %v1240_v52 = vmul.f32 1.442695, %v1119_v2  ;;  %v5780_v46 = vpop.eup %4695  ;;  %v1242_v4 = vmul.f32 1.442695, %v1120_v37 }
 0x2f7   : > { %1379 = vst [vmem:[#allocation1] ss:$9 sm:$0xff] %v5756_v41  ;;  %v1122_v41 = vsub.f32 %v5535_v33, %v994_v22  ;;  %v1244_v33 = vmul.f32 1.442695, %v1121_v43  ;;  %v1248_v17 = vmul.f32 1.442695, %v1123_v49 }
 0x2f8   : > { %1380 = vst [vmem:[#allocation1 + $0x1] ss:$9 sm:$0xff] %v5758_v40  ;;  %v1238_v40 = vmul.f32 1.442695, %v1118_v5  ;;  %v1420_v7 = vsel %vm901_vm3, %v1378_v12, 0.0 }
 0x2f9   : > { %1381 = vst [vmem:[#allocation1 + $0x2] ss:$9 sm:$0xff] %v5760_v32  ;;  %v1246_v51 = vmul.f32 1.442695, %v1122_v41  ;;  %v1250_v6 = vmul.f32 1.442695, %v1124_v11  ;;  %1421 = vadd.xlane.f32.xlu2 %v1420_v7 }
 0x2fa   : > { %1382 = vst [vmem:[#allocation1 + $0x3] ss:$9 sm:$0xff] %v5762_v9  ;;  %4697 = vpow2.f32 %v1238_v40  ;;  %v1252_v35 = vmul.f32 1.442695, %v1125_v19  ;;  %v7864_v7 = vld [vmem:[#allocation10_spill] sm:$0xff] }
 0x2fb   : > { %1383 = vst [vmem:[#allocation1 + $0x4] ss:$9 sm:$0xff] %v5765_v61  ;;  %4699 = vpow2.f32 %v1240_v52 }
 0x2fc   : > { %1384 = vst [vmem:[#allocation1 + $0x5] ss:$9 sm:$0xff] %v5772_v39  ;;  %4701 = vpow2.f32 %v1242_v4 }
 0x2fd   : > { %1385 = vst [vmem:[#allocation1 + $0x6] ss:$9 sm:$0xff] %v5776_v44  ;;  %4703 = vpow2.f32 %v1244_v33 }
 0x2fe   : > { %1386 = vst [vmem:[#allocation1 + $0x7] ss:$9 sm:$0xff] %v5780_v46  ;;  %4705 = vpow2.f32 %v1246_v51 }
 0x2ff   : > { %4707 = vpow2.f32 %v1248_v17  ;;  %v7863_v17 = vld [vmem:[#allocation11_spill] sm:$0xff] }
 0x300   : > { %v5789_v22 = vpop.eup %4697  ;;  %4709 = vpow2.f32 %v1250_v6  ;;  %v1407_v41 = vpop.xlane.xlu0 %1406  ;;  %v4541_v6 = vpack.i.bf16 %v7864_v7, %v7863_v17 }
 0x301   : > { %v5791_v36 = vpop.eup %4699  ;;  %4711 = vpow2.f32 %v1252_v35 }
 0x302   : > { %v5793_v40 = vpop.eup %4701  ;;  %4713 = vrcp.f32 %v1407_v41 }
 0x303   : > { %v5795_v29 = vpop.eup %4703 }
 0x304   : > { %v5799_v55 = vpop.eup %4705 }
 0x305   : > { %v1387_v21 = vld [vmem:[#allocation1] sm:$0xff]  ;;  %v5802_v5 = vpop.eup %4707 }
 0x306   : > { %1388 = vst [vmem:[#allocation1] ss:$9 sm:$0xff] %v5789_v22  ;;  %v1423_v12 = vsel %vm901_vm3, %v1387_v21, 0.0  ;;  %v5805_v2 = vpop.eup %4709 }
 0x307   : > { %1389 = vst [vmem:[#allocation1 + $0x1] ss:$9 sm:$0xff] %v5791_v36  ;;  %1424 = vadd.xlane.f32.xlu0 %v1423_v12  ;;  %v5808_v37 = vpop.eup %4711 }
 0x308   : > { %1390 = vst [vmem:[#allocation1 + $0x2] ss:$9 sm:$0xff] %v5793_v40  ;;  %v4714_v43 = vpop.eup %4713 }
 0x309   : > { %7860 = vst [vmem:[#allocation26_spill] sm:$0xff] %v5805_v2  ;;  %v1445_v49 = vperm.slane %v4714_v43, 0  ;;  %v1446_v52 = vperm.slane %v4714_v43, 1  ;;  %v1447_v11 = vperm.slane %v4714_v43, 2  ;;  %v1448_v4 = vperm.slane %v4714_v43, 3 }
 0x30a   : > { %1391 = vst [vmem:[#allocation1 + $0x3] ss:$9 sm:$0xff] %v5795_v29  ;;  %v1449_v19 = vperm.slane %v4714_v43, 4  ;;  %v1450_v41 = vperm.slane %v4714_v43, 5  ;;  %v1451_v12 = vperm.slane %v4714_v43, 6 }
 0x30b   : > { %7861 = vst [vmem:[#allocation27_spill] sm:$0xff] %v5808_v37  ;;  %v5815_v33 = vmul.f32 %v5558_v31, %v1445_v49  ;;  %v5820_v21 = vmul.f32 %v5560_v16, %v1446_v52  ;;  %v1452_v31 = vperm.slane %v4714_v43, 7  ;;  %v5828_v49 = vmul.f32 %v5569_v58, %v1448_v4  ;;  %v7871_v43 = vld [vmem:[#allocation12_spill] sm:$0xff] }
 0x30c   : > { %1392 = vst [vmem:[#allocation1 + $0x4] ss:$9 sm:$0xff] %v5799_v55  ;;  %v5832_v17 = vmul.f32 %v5573_v53, %v1449_v19  ;;  %v5837_v16 = vmul.f32 %v5577_v30, %v1450_v41  ;;  %v5843_v52 = vmul.f32 %v5581_v38, %v1451_v12  ;;  %v7874_v38 = vld [vmem:[#allocation8_spill] sm:$0xff] }
 0x30d   : > { %1393 = vst [vmem:[#allocation1 + $0x5] ss:$9 sm:$0xff] %v5802_v5  ;;  %v5847_v53 = vmul.f32 %v5585_v10, %v1452_v31 }
 0x30e   : > { %1394 = vst [vmem:[#allocation1 + $0x6] ss:$9 sm:$0xff] %v5805_v2 }
 0x30f   : > { %1395 = vst [vmem:[#allocation1 + $0x7] ss:$9 sm:$0xff] %v5808_v37  ;;  %v1410_v51 = vpop.xlane.xlu1 %1409  ;;  %v5823_v37 = vmul.f32 %v5565_v1, %v1447_v11  ;;  %v7870_v1 = vld [vmem:[#allocation13_spill] sm:$0xff] }
 0x310   : > { %7862 = vst [vmem:[#allocation28_spill] sm:$0xff] %v5815_v33  ;;  %4715 = vrcp.f32 %v1410_v51  ;;  %v4546_v58 = vpack.i.bf16 %v7871_v43, %v7870_v1  ;;  %v7875_v51 = vld [vmem:[#allocation9_spill] sm:$0xff] }
 0x311   : > { %7865 = vst [vmem:[#allocation29_spill] sm:$0xff] %v5820_v21  ;;  %4542 = vrot.lane.b32.xlu2 %v4541_v6, %s7681_s27  ;;  %v4556_v7 = vpack.i.bf16 %v7875_v51, %v7874_v38  ;;  %v7889_v51 = vld [vmem:[#allocation15_spill] sm:$0xff] }
 0x312   : > { %7866 = vst [vmem:[#allocation30_spill] sm:$0xff] %v5823_v37 }
 0x313   : > { %7867 = vst [vmem:[#allocation31_spill] sm:$0xff] %v5828_v49 }
 0x314   : > { %7868 = vst [vmem:[#allocation11_spill] sm:$0xff] %v5832_v17 }
 0x315   : > { %7869 = vst [vmem:[#allocation10_spill] sm:$0xff] %v5837_v16 }
 0x316   : > { %v1396_v35 = vld [vmem:[#allocation1] sm:$0xff]  ;;  %7872 = vst [vmem:[#allocation13_spill] sm:$0xff] %v5843_v52 }
 0x317   : > { %1653 = vst [vmem:[#allocation1] ss:$9 sm:$0xff] %v5815_v33  ;;  %v1426_v2 = vsel %vm901_vm3, %v1396_v35, 0.0 }
 0x318   : > { %1655 = vst [vmem:[#allocation1 + $0x1] ss:$9 sm:$0xff] %v5820_v21  ;;  %1427 = vadd.xlane.f32.xlu1 %v1426_v2  ;;  %v4716_v2 = vpop.eup %4715 }
 0x319   : > { %1657 = vst [vmem:[#allocation1 + $0x2] ss:$9 sm:$0xff] %v5823_v37  ;;  %v1453_v30 = vperm.slane %v4716_v2, 0  ;;  %v1454_v11 = vperm.slane %v4716_v2, 1  ;;  %v1455_v4 = vperm.slane %v4716_v2, 2  ;;  %v1456_v19 = vperm.slane %v4716_v2, 3 }
 0x31a   : > { %1659 = vst [vmem:[#allocation1 + $0x3] ss:$9 sm:$0xff] %v5828_v49  ;;  %v1457_v6 = vperm.slane %v4716_v2, 4  ;;  %v1458_v41 = vperm.slane %v4716_v2, 5  ;;  %v1459_v31 = vperm.slane %v4716_v2, 6  ;;  %v1460_v43 = vperm.slane %v4716_v2, 7 }
 0x31b   : > { %1661 = vst [vmem:[#allocation1 + $0x4] ss:$9 sm:$0xff] %v5832_v17  ;;  %4547 = vrot.lane.b32.xlu0 %v4546_v58, %s7681_s27  ;;  %v5856_v10 = vmul.f32 %v5591_v15, %v1453_v30  ;;  %v5861_v12 = vmul.f32 %v5593_v45, %v1454_v11  ;;  %v5865_v1 = vmul.f32 %v5597_v34, %v1455_v4  ;;  %v7879_v58 = vld [vmem:[#allocation32_spill] sm:$0xff]  ;;  %v7881_v15 = vld [vmem:[#allocation33_spill] sm:$0xff]  ;;  %v7883_v45 = vld [vmem:[#allocation34_spill] sm:$0xff] }
 0x31c   : > { %7873 = vst [vmem:[#allocation12_spill] sm:$0xff] %v5847_v53  ;;  %v5869_v38 = vmul.f32 %v7879_v58, %v1456_v19  ;;  %v5873_v30 = vmul.f32 %v7881_v15, %v1457_v6  ;;  %v5877_v11 = vmul.f32 %v7883_v45, %v1458_v41  ;;  %v7885_v34 = vld [vmem:[#allocation35_spill] sm:$0xff]  ;;  %v7887_v2 = vld [vmem:[#allocation36_spill] sm:$0xff] }
 0x31d   : > { %1663 = vst [vmem:[#allocation1 + $0x5] ss:$9 sm:$0xff] %v5837_v16  ;;  %v5881_v4 = vmul.f32 %v7885_v34, %v1459_v31  ;;  %v5885_v19 = vmul.f32 %v7887_v2, %v1460_v43 }
 0x31e   : > { %1665 = vst [vmem:[#allocation1 + $0x6] ss:$9 sm:$0xff] %v5843_v52 }
 0x31f   : > { %1667 = vst [vmem:[#allocation1 + $0x7] ss:$9 sm:$0xff] %v5847_v53 }
 0x320   : > { %7876 = vst [vmem:[#allocation8_spill] sm:$0xff] %v5856_v10 }
 0x321   : > { %7877 = vst [vmem:[#allocation9_spill] sm:$0xff] %v5861_v12 }
 0x322   : > { %7878 = vst [vmem:[#allocation38_spill] sm:$0xff] %v5865_v1 }
 0x323   : > { %4557 = vrot.lane.b32.xlu0 %v4556_v7, %s7681_s27  ;;  %7880 = vst [vmem:[#allocation32_spill] sm:$0xff] %v5869_v38  ;;  %v7890_v7 = vld [vmem:[#allocation14_spill] sm:$0xff] }
 0x324   : > { %7882 = vst [vmem:[#allocation33_spill] sm:$0xff] %v5873_v30  ;;  %v4551_v6 = vpack.i.bf16 %v7890_v7, %v7889_v51 }
 0x325   : > { %7884 = vst [vmem:[#allocation34_spill] sm:$0xff] %v5877_v11 }
 0x326   : > { %v5858_v35 = vld [vmem:[#allocation1] sm:$0xff]  ;;  %7886 = vst [vmem:[#allocation35_spill] sm:$0xff] %v5881_v4 }
 0x327   : > { %1669 = vst [vmem:[#allocation1] ss:$9 sm:$0xff] %v5856_v10 }
 0x328   : > { %1670 = vst [vmem:[#allocation1 + $0x1] ss:$9 sm:$0xff] %v5861_v12 }
 0x329   : > { %1671 = vst [vmem:[#allocation1 + $0x2] ss:$9 sm:$0xff] %v5865_v1 }
 0x32a   : > { %1672 = vst [vmem:[#allocation1 + $0x3] ss:$9 sm:$0xff] %v5869_v38 }
 0x32b   : > { %1673 = vst [vmem:[#allocation1 + $0x4] ss:$9 sm:$0xff] %v5873_v30 }
 0x32c   : > { %7888 = vst [vmem:[#allocation36_spill] sm:$0xff] %v5885_v19 }
 0x32d   : > { %1674 = vst [vmem:[#allocation1 + $0x5] ss:$9 sm:$0xff] %v5877_v11 }
 0x32e   : > { %1675 = vst [vmem:[#allocation1 + $0x6] ss:$9 sm:$0xff] %v5881_v4 }
 0x32f   : > { %1676 = vst [vmem:[#allocation1 + $0x7] ss:$9 sm:$0xff] %v5885_v19 }
 0x331   : > { %4552 = vrot.lane.b32.xlu1 %v4551_v6, %s7681_s27  ;;  %s7799_s27 = smov 80  }
 0x336   : > { %v5902_v7 = vld [vmem:[#allocation1] sm:$0xff] }
 0x338   : > { %v1413_v41 = vpop.xlane.xlu2 %1412 }
 0x339   : > { %4717 = vrcp.f32 %v1413_v41 }
 0x33f   : > { %v4718_v31 = vpop.eup %4717 }
 0x340   : > { %v1461_v58 = vperm.slane %v4718_v31, 0  ;;  %v1462_v15 = vperm.slane %v4718_v31, 1  ;;  %v1463_v45 = vperm.slane %v4718_v31, 2  ;;  %v1464_v34 = vperm.slane %v4718_v31, 3 }
 0x341   : > { %v1465_v43 = vperm.slane %v4718_v31, 4  ;;  %v1466_v2 = vperm.slane %v4718_v31, 5  ;;  %v1467_v30 = vperm.slane %v4718_v31, 6  ;;  %v1468_v6 = vperm.slane %v4718_v31, 7 }
 0x342   : > { %v5894_v11 = vmul.f32 %v5625_v25, %v1461_v58  ;;  %v5897_v19 = vmul.f32 %v5627_v27, %v1462_v15  ;;  %v5900_v51 = vmul.f32 %v5630_v3, %v1463_v45  ;;  %v5905_v41 = vmul.f32 %v5635_v59, %v1464_v34 }
 0x343   : > { %v5908_v4 = vmul.f32 %v5641_v18, %v1465_v43  ;;  %v5912_v25 = vmul.f32 %v5645_v50, %v1466_v2  ;;  %v5916_v27 = vmul.f32 %v5649_v47, %v1467_v30  ;;  %v5920_v3 = vmul.f32 %v5653_v54, %v1468_v6 }
 0x344   : > { %7891 = vst [vmem:[#allocation15_spill] sm:$0xff] %v5894_v11 }
 0x345   : > { %7892 = vst [vmem:[#allocation14_spill] sm:$0xff] %v5897_v19 }
 0x346   : > { %7893 = vst [vmem:[#allocation39_spill] sm:$0xff] %v5900_v51 }
 0x347   : > { %7894 = vst [vmem:[#allocation40_spill] sm:$0xff] %v5905_v41 }
 0x348   : > { %7895 = vst [vmem:[#allocation41_spill] sm:$0xff] %v5908_v4 }
 0x349   : > { %1727 = vst [vmem:[#allocation1] ss:$9 sm:$0xff] %v5894_v11 }
 0x34a   : > { %7896 = vst [vmem:[#allocation42_spill] sm:$0xff] %v5912_v25 }
 0x34b   : > { %1729 = vst [vmem:[#allocation1 + $0x1] ss:$9 sm:$0xff] %v5897_v19 }
 0x34c   : > { %7897 = vst [vmem:[#allocation43_spill] sm:$0xff] %v5916_v27 }
 0x34d   : > { %1731 = vst [vmem:[#allocation1 + $0x2] ss:$9 sm:$0xff] %v5900_v51  ;;  %v1416_v59 = vpop.xlane.xlu0 %1415 }
 0x34e   : > { %7898 = vst [vmem:[#allocation44_spill] sm:$0xff] %v5920_v3  ;;  %4719 = vrcp.f32 %v1416_v59 }
 0x34f   : > { %1733 = vst [vmem:[#allocation1 + $0x3] ss:$9 sm:$0xff] %v5905_v41 }
 0x350   : > { %1735 = vst [vmem:[#allocation1 + $0x4] ss:$9 sm:$0xff] %v5908_v4 }
 0x351   : > { %1737 = vst [vmem:[#allocation1 + $0x5] ss:$9 sm:$0xff] %v5912_v25 }
 0x352   : > { %1739 = vst [vmem:[#allocation1 + $0x6] ss:$9 sm:$0xff] %v5916_v27 }
 0x353   : > { %1741 = vst [vmem:[#allocation1 + $0x7] ss:$9 sm:$0xff] %v5920_v3 }
 0x354   : > { %v4720_v18 = vpop.eup %4719 }
 0x355   : > { %v1469_v50 = vperm.slane %v4720_v18, 0  ;;  %v1470_v47 = vperm.slane %v4720_v18, 1  ;;  %v1471_v30 = vperm.slane %v4720_v18, 2  ;;  %v1472_v31 = vperm.slane %v4720_v18, 3 }
 0x356   : > { %v1473_v54 = vperm.slane %v4720_v18, 4  ;;  %v1474_v15 = vperm.slane %v4720_v18, 5  ;;  %v1475_v45 = vperm.slane %v4720_v18, 6  ;;  %v1476_v6 = vperm.slane %v4720_v18, 7 }
 0x357   : > { %v5930_v34 = vmul.f32 %v5657_v8, %v1469_v50  ;;  %v5933_v43 = vmul.f32 %v5659_v62, %v1470_v47  ;;  %v5936_v2 = vmul.f32 %v5661_v23, %v1471_v30  ;;  %v5939_v59 = vmul.f32 %v5663_v26, %v1472_v31 }
 0x358   : > { %v5942_v3 = vmul.f32 %v5667_v57, %v1473_v54  ;;  %v5946_v27 = vmul.f32 %v5670_v28, %v1474_v15  ;;  %v5950_v8 = vmul.f32 %v5673_v13, %v1475_v45  ;;  %v5954_v62 = vmul.f32 %v5676_v63, %v1476_v6  ;;  %v7910_v6 = vld [vmem:[#allocation37_spill] sm:$0xff] }
 0x359   : > { %7899 = vst [vmem:[#allocation45_spill] sm:$0xff] %v5930_v34 }
 0x35a   : > { %v5927_v58 = vld [vmem:[#allocation1] sm:$0xff]  ;;  %7900 = vst [vmem:[#allocation46_spill] sm:$0xff] %v5933_v43 }
 0x35b   : > { %7901 = vst [vmem:[#allocation47_spill] sm:$0xff] %v5936_v2  ;;  %v1419_v23 = vpop.xlane.xlu1 %1418 }
 0x35c   : > { %7902 = vst [vmem:[#allocation48_spill] sm:$0xff] %v5939_v59  ;;  %4721 = vrcp.f32 %v1419_v23 }
 0x35d   : > { %7903 = vst [vmem:[#allocation49_spill] sm:$0xff] %v5942_v3 }
 0x35e   : > { %1743 = vst [vmem:[#allocation1] ss:$9 sm:$0xff] %v5930_v34 }
 0x35f   : > { %7904 = vst [vmem:[#allocation50_spill] sm:$0xff] %v5946_v27 }
 0x360   : > { %1744 = vst [vmem:[#allocation1 + $0x1] ss:$9 sm:$0xff] %v5933_v43 }
 0x361   : > { %7905 = vst [vmem:[#allocation51_spill] sm:$0xff] %v5950_v8 }
 0x362   : > { %1745 = vst [vmem:[#allocation1 + $0x2] ss:$9 sm:$0xff] %v5936_v2  ;;  %v4722_v26 = vpop.eup %4721 }
 0x363   : > { %7906 = vst [vmem:[#allocation52_spill] sm:$0xff] %v5954_v62  ;;  %v1477_v57 = vperm.slane %v4722_v26, 0  ;;  %v1478_v28 = vperm.slane %v4722_v26, 1  ;;  %v1479_v13 = vperm.slane %v4722_v26, 2  ;;  %v1480_v18 = vperm.slane %v4722_v26, 3 }
 0x364   : > { %1746 = vst [vmem:[#allocation1 + $0x3] ss:$9 sm:$0xff] %v5939_v59  ;;  %v1481_v50 = vperm.slane %v4722_v26, 4  ;;  %v1482_v63 = vperm.slane %v4722_v26, 5  ;;  %v1483_v47 = vperm.slane %v4722_v26, 6  ;;  %v1484_v45 = vperm.slane %v4722_v26, 7 }
 0x365   : > { %1747 = vst [vmem:[#allocation1 + $0x4] ss:$9 sm:$0xff] %v5942_v3  ;;  %v5962_v30 = vmul.f32 %v5690_v42, %v1477_v57  ;;  %v5965_v31 = vmul.f32 %v5692_v0, %v1478_v28  ;;  %v5968_v54 = vmul.f32 %v5695_v60, %v1479_v13  ;;  %v5973_v23 = vmul.f32 %v7910_v6, %v1480_v18  ;;  %v7916_v0 = vld [vmem:[#allocation19_spill] sm:$0xff]  ;;  %v7918_v60 = vld [vmem:[#allocation20_spill] sm:$0xff] }
 0x366   : > { %1748 = vst [vmem:[#allocation1 + $0x5] ss:$9 sm:$0xff] %v5946_v27  ;;  %v7914_v27 = vld [vmem:[#allocation18_spill] sm:$0xff]  ;;  %v5984_v57 = vmul.f32 %v7916_v0, %v1483_v47  ;;  %v5988_v26 = vmul.f32 %v7918_v60, %v1484_v45  ;;  %v7920_v60 = vld [vmem:[#allocation21_spill] sm:$0xff] }
 0x367   : > { %1749 = vst [vmem:[#allocation1 + $0x6] ss:$9 sm:$0xff] %v5950_v8  ;;  %v5980_v42 = vmul.f32 %v7914_v27, %v1482_v63 }
 0x368   : > { %1750 = vst [vmem:[#allocation1 + $0x7] ss:$9 sm:$0xff] %v5954_v62  ;;  %v7912_v62 = vld [vmem:[#allocation17_spill] sm:$0xff] }
 0x369   : > { %7907 = vst [vmem:[#allocation53_spill] sm:$0xff] %v5962_v30  ;;  %v5976_v8 = vmul.f32 %v7912_v62, %v1481_v50 }
 0x36a   : > { %7908 = vst [vmem:[#allocation54_spill] sm:$0xff] %v5965_v31 }
 0x36b   : > { %7909 = vst [vmem:[#allocation55_spill] sm:$0xff] %v5968_v54 }
 0x36c   : > { %7911 = vst [vmem:[#allocation37_spill] sm:$0xff] %v5973_v23  ;;  %v1422_v28 = vpop.xlane.xlu2 %1421 }
 0x36d   : > { %7913 = vst [vmem:[#allocation17_spill] sm:$0xff] %v5976_v8  ;;  %4723 = vrcp.f32 %v1422_v28  ;;  %v7922_v28 = vld [vmem:[#allocation22_spill] sm:$0xff] }
 0x36e   : > { %7915 = vst [vmem:[#allocation18_spill] sm:$0xff] %v5980_v42 }
 0x36f   : > { %v5970_v15 = vld [vmem:[#allocation1] sm:$0xff]  ;;  %7917 = vst [vmem:[#allocation19_spill] sm:$0xff] %v5984_v57 }
 0x370   : > { %1801 = vst [vmem:[#allocation1] ss:$9 sm:$0xff] %v5962_v30 }
 0x371   : > { %1803 = vst [vmem:[#allocation1 + $0x1] ss:$9 sm:$0xff] %v5965_v31 }
 0x372   : > { %1805 = vst [vmem:[#allocation1 + $0x2] ss:$9 sm:$0xff] %v5968_v54 }
 0x373   : > { %7919 = vst [vmem:[#allocation20_spill] sm:$0xff] %v5988_v26  ;;  %v4724_v27 = vpop.eup %4723 }
 0x374   : > { %1807 = vst [vmem:[#allocation1 + $0x3] ss:$9 sm:$0xff] %v5973_v23  ;;  %v1485_v62 = vperm.slane %v4724_v27, 0  ;;  %v1486_v13 = vperm.slane %v4724_v27, 1  ;;  %v1487_v18 = vperm.slane %v4724_v27, 2  ;;  %v1488_v50 = vperm.slane %v4724_v27, 3  ;;  %v4543_v45 = vpop.permute.xlu2 %4542 }
 0x375   : > { %1809 = vst [vmem:[#allocation1 + $0x4] ss:$9 sm:$0xff] %v5976_v8  ;;  %v1489_v63 = vperm.slane %v4724_v27, 4  ;;  %v1490_v47 = vperm.slane %v4724_v27, 5  ;;  %v1491_v0 = vperm.slane %v4724_v27, 6  ;;  %v4545_v30 = vunpack.i.h.bf16 %v4543_v45 }
 0x376   : > { %1811 = vst [vmem:[#allocation1 + $0x5] ss:$9 sm:$0xff] %v5980_v42  ;;  %v5996_v23 = vmul.f32 %v7920_v60, %v1485_v62  ;;  %v5999_v8 = vmul.f32 %v7922_v28, %v1486_v13  ;;  %v1492_v42 = vperm.slane %v4724_v27, 7  ;;  %v6005_v54 = vmul.f32 %v5729_v24, %v1488_v50  ;;  %v7929_v24 = vld [vmem:[#allocation23_spill] sm:$0xff] }
 0x377   : > { %1813 = vst [vmem:[#allocation1 + $0x6] ss:$9 sm:$0xff] %v5984_v57  ;;  %v6002_v57 = vmul.f32 %v5727_v56, %v1487_v18  ;;  %v6008_v31 = vmul.f32 %v5732_v48, %v1489_v63  ;;  %v4544_v62 = vunpack.i.l.bf16 %v4543_v45  ;;  %v6012_v60 = vmul.f32 %v5739_v20, %v1490_v47  ;;  %1850 = vmatpush.msra.mxu3 %v4545_v30  ;;  %v7931_v30 = vld [vmem:[#allocation24_spill] sm:$0xff]  ;;  %v7933_v45 = vld [vmem:[#allocation25_spill] sm:$0xff] }
 0x378   : > { %1815 = vst [vmem:[#allocation1 + $0x7] ss:$9 sm:$0xff] %v5988_v26  ;;  %v6016_v56 = vmul.f32 %v5743_v14, %v1491_v0  ;;  %v6020_v48 = vmul.f32 %v7929_v24, %v1492_v42 }
 0x379   : > { %7921 = vst [vmem:[#allocation21_spill] sm:$0xff] %v5996_v23  ;;  %1776 = vmatpush.msra.mxu2 %v4544_v62 }
 0x37a   : > { %v1425_v6 = vpop.xlane.xlu0 %1424  ;;  %7923 = vst [vmem:[#allocation22_spill] sm:$0xff] %v5999_v8 }
 0x37b   : > { %7924 = vst [vmem:[#allocation56_spill] sm:$0xff] %v6002_v57  ;;  %4725 = vrcp.f32 %v1425_v6 }
 0x37c   : > { %7925 = vst [vmem:[#allocation57_spill] sm:$0xff] %v6005_v54 }
 0x37d   : > { %7926 = vst [vmem:[#allocation58_spill] sm:$0xff] %v6008_v31 }
 0x37e   : > { %7927 = vst [vmem:[#allocation59_spill] sm:$0xff] %v6012_v60 }
 0x37f   : > { %v1816_v26 = vld [vmem:[#allocation1] sm:$0xff]  ;;  %7928 = vst [vmem:[#allocation60_spill] sm:$0xff] %v6016_v56 }
 0x380   : > { %1817 = vst [vmem:[#allocation1] ss:$9 sm:$0xff] %v5996_v23 }
 0x381   : > { %1818 = vst [vmem:[#allocation1 + $0x1] ss:$9 sm:$0xff] %v5999_v8  ;;  %v4726_v20 = vpop.eup %4725 }
 0x382   : > { %1819 = vst [vmem:[#allocation1 + $0x2] ss:$9 sm:$0xff] %v6002_v57  ;;  %v1493_v14 = vperm.slane %v4726_v20, 0  ;;  %v1494_v27 = vperm.slane %v4726_v20, 1  ;;  %v1495_v13 = vperm.slane %v4726_v20, 2  ;;  %v1496_v18 = vperm.slane %v4726_v20, 3 }
 0x383   : > { %7930 = vst [vmem:[#allocation23_spill] sm:$0xff] %v6020_v48  ;;  %v1497_v50 = vperm.slane %v4726_v20, 4  ;;  %v1498_v47 = vperm.slane %v4726_v20, 5  ;;  %v1499_v0 = vperm.slane %v4726_v20, 6  ;;  %v1500_v24 = vperm.slane %v4726_v20, 7 }
 0x384   : > { %1820 = vst [vmem:[#allocation1 + $0x3] ss:$9 sm:$0xff] %v6005_v54  ;;  %v6028_v63 = vmul.f32 %v7931_v30, %v1493_v14  ;;  %v6031_v6 = vmul.f32 %v7933_v45, %v1494_v27  ;;  %v6034_v28 = vmul.f32 %v5760_v32, %v1495_v13 }
 0x385   : > { %1821 = vst [vmem:[#allocation1 + $0x4] ss:$9 sm:$0xff] %v6008_v31  ;;  %v6044_v30 = vmul.f32 %v5772_v39, %v1498_v47  ;;  %v6048_v13 = vmul.f32 %v5776_v44, %v1499_v0 }
 0x386   : > { %1822 = vst [vmem:[#allocation1 + $0x5] ss:$9 sm:$0xff] %v6012_v60 }
 0x387   : > { %1823 = vst [vmem:[#allocation1 + $0x6] ss:$9 sm:$0xff] %v6016_v56  ;;  %v6040_v56 = vmul.f32 %v5765_v61, %v1497_v50 }
 0x388   : > { %1824 = vst [vmem:[#allocation1 + $0x7] ss:$9 sm:$0xff] %v6020_v48  ;;  %v6037_v48 = vmul.f32 %v5762_v9, %v1496_v18  ;;  %v6052_v9 = vmul.f32 %v5780_v46, %v1500_v24 }
 0x389   : > { %7932 = vst [vmem:[#allocation24_spill] sm:$0xff] %v6028_v63 }
 0x38a   : > { %7934 = vst [vmem:[#allocation25_spill] sm:$0xff] %v6031_v6 }
 0x38b   : > { %v1428_v42 = vpop.xlane.xlu1 %1427  ;;  %7935 = vst [vmem:[#allocation61_spill] sm:$0xff] %v6034_v28 }
 0x38c   : > { %4727 = vrcp.f32 %v1428_v42  ;;  %7936 = vst [vmem:[#allocation62_spill] sm:$0xff] %v6037_v48 }
 0x38d   : > { %7937 = vst [vmem:[#allocation63_spill] sm:$0xff] %v6040_v56  ;;  %v4548_v14 = vpop.permute.xlu0 %4547 }
 0x38e   : > { %7938 = vst [vmem:[#allocation64_spill] sm:$0xff] %v6044_v30  ;;  %v4550_v27 = vunpack.i.h.bf16 %v4548_v14  ;;  %v4549_v32 = vunpack.i.l.bf16 %v4548_v14 }
 0x38f   : > { %v1825_v62 = vld [vmem:[#allocation1] sm:$0xff]  ;;  %7939 = vst [vmem:[#allocation65_spill] sm:$0xff] %v6048_v13 }
 0x390   : > { %1875 = vst [vmem:[#allocation1] ss:$9 sm:$0xff] %v6028_v63  ;;  %1777 = vmatpush.msra.mxu2 %v4549_v32  ;;  %1851 = vmatpush.msra.mxu3 %v4550_v27 }
 0x391   : > { %1877 = vst [vmem:[#allocation1 + $0x1] ss:$9 sm:$0xff] %v6031_v6  ;;  %4409 = vmatmul.msk.f32.vlgmr.msra.gmra.mxu2 %vm901_vm3, %v5927_v58  ;;  %4411 = vmatmul.msk.f32.vlgmr.msra.gmra.mxu3 %vm901_vm3, %v1816_v26 }
 0x392   : > { %1879 = vst [vmem:[#allocation1 + $0x2] ss:$9 sm:$0xff] %v6034_v28  ;;  %v4728_v61 = vpop.eup %4727 }
 0x393   : > { %7940 = vst [vmem:[#allocation66_spill] sm:$0xff] %v6052_v9  ;;  %v1501_v44 = vperm.slane %v4728_v61, 0  ;;  %v1502_v39 = vperm.slane %v4728_v61, 1  ;;  %v1503_v20 = vperm.slane %v4728_v61, 2  ;;  %v1504_v50 = vperm.slane %v4728_v61, 3 }
 0x394   : > { %1881 = vst [vmem:[#allocation1 + $0x3] ss:$9 sm:$0xff] %v6037_v48  ;;  %v1505_v42 = vperm.slane %v4728_v61, 4  ;;  %v1506_v45 = vperm.slane %v4728_v61, 5  ;;  %v1507_v0 = vperm.slane %v4728_v61, 6  ;;  %v1508_v27 = vperm.slane %v4728_v61, 7 }
 0x395   : > { %1883 = vst [vmem:[#allocation1 + $0x4] ss:$9 sm:$0xff] %v6040_v56  ;;  %v4558_v46 = vpop.permute.xlu0 %4557  ;;  %v6063_v47 = vmul.f32 %v5789_v22, %v1501_v44  ;;  %v6066_v26 = vmul.f32 %v5791_v36, %v1502_v39  ;;  %v6072_v24 = vmul.f32 %v5793_v40, %v1503_v20  ;;  %v6075_v22 = vmul.f32 %v5795_v29, %v1504_v50  ;;  %v7947_v40 = vld [vmem:[#allocation26_spill] sm:$0xff]  ;;  %v7949_v29 = vld [vmem:[#allocation27_spill] sm:$0xff] }
 0x396   : > { %1885 = vst [vmem:[#allocation1 + $0x5] ss:$9 sm:$0xff] %v6044_v30  ;;  %v4559_v18 = vunpack.i.l.bf16 %v4558_v46  ;;  %v4560_v58 = vunpack.i.h.bf16 %v4558_v46  ;;  %v6080_v36 = vmul.f32 %v5799_v55, %v1505_v42  ;;  %v6092_v32 = vmul.f32 %v7949_v29, %v1508_v27 }
 0x397   : > { %1887 = vst [vmem:[#allocation1 + $0x6] ss:$9 sm:$0xff] %v6048_v13 }
 0x398   : > { %1889 = vst [vmem:[#allocation1 + $0x7] ss:$9 sm:$0xff] %v6052_v9  ;;  %1702 = vmatpush.msrb.mxu1 %v4559_v18 }
 0x399   : > { %7941 = vst [vmem:[#allocation67_spill] sm:$0xff] %v6063_v47  ;;  %4410 = vmatmul.msk.f32.gmra.mxu2 %vm901_vm3, %v5970_v15  ;;  %4412 = vmatmul.msk.f32.gmra.mxu3 %vm901_vm3, %v1825_v62  ;;  %v6084_v15 = vmul.f32 %v5802_v5, %v1506_v45  ;;  %v6088_v62 = vmul.f32 %v7947_v40, %v1507_v0  ;;  %v4909_v40 = vld [vmem:[%s5139_s21] sm:$0xff] }
 0x39a   : > { %7942 = vst [vmem:[#allocation68_spill] sm:$0xff] %v6066_v26  ;;  %1703 = vmatpush.msrb.mxu1 %v4560_v58 }
 0x39b   : > { %7943 = vst [vmem:[#allocation69_spill] sm:$0xff] %v6072_v24  ;;  %4407 = vmatmul.msk.f32.vlgmr.msrb.gmra.mxu1 %vm901_vm3, %v5858_v35 }
 0x39c   : > { %7944 = vst [vmem:[#allocation70_spill] sm:$0xff] %v6075_v22 }
 0x39d   : > { %7945 = vst [vmem:[#allocation71_spill] sm:$0xff] %v6080_v36 }
 0x39e   : > { %7946 = vst [vmem:[#allocation72_spill] sm:$0xff] %v6084_v15 }
 0x39f   : > { %v1890_v14 = vld [vmem:[#allocation1] sm:$0xff]  ;;  %7948 = vst [vmem:[#allocation26_spill] sm:$0xff] %v6088_v62 }
 0x3a0   : > { %1891 = vst [vmem:[#allocation1] ss:$9 sm:$0xff] %v6063_v47 }
 0x3a1   : > { %1892 = vst [vmem:[#allocation1 + $0x1] ss:$9 sm:$0xff] %v6066_v26 }
 0x3a2   : > { %1893 = vst [vmem:[#allocation1 + $0x2] ss:$9 sm:$0xff] %v6072_v24 }
 0x3a3   : > { %7950 = vst [vmem:[#allocation27_spill] sm:$0xff] %v6092_v32  ;;  %v4553_v55 = vpop.permute.xlu1 %4552  ;;  %4408 = vmatmul.msk.f32.gmra.mxu1 %vm901_vm3, %v5902_v7 }
 0x3a4   : > { %1894 = vst [vmem:[#allocation1 + $0x3] ss:$9 sm:$0xff] %v6075_v22  ;;  %v4554_v5 = vunpack.i.l.bf16 %v4553_v55  ;;  %v4555_v35 = vunpack.i.h.bf16 %v4553_v55 }
 0x3a5   : > { %1895 = vst [vmem:[#allocation1 + $0x4] ss:$9 sm:$0xff] %v6080_v36 }
 0x3a6   : > { %1896 = vst [vmem:[#allocation1 + $0x5] ss:$9 sm:$0xff] %v6084_v15  ;;  %1924 = vmatpush.msra.mxu0 %v4554_v5 }
 0x3a7   : > { %1897 = vst [vmem:[#allocation1 + $0x6] ss:$9 sm:$0xff] %v6088_v62 }
 0x3a8   : > { %1898 = vst [vmem:[#allocation1 + $0x7] ss:$9 sm:$0xff] %v6092_v32  ;;  %1925 = vmatpush.msra.mxu0 %v4555_v35 }
 0x3a9   : > { %4413 = vmatmul.msk.f32.vlgmr.msra.gmra.mxu0 %vm901_vm3, %v1890_v14 }
 0x3af   : > { %v1899_v61 = vld [vmem:[#allocation1] sm:$0xff] }
 0x3b1   : > { %4414 = vmatmul.msk.f32.gmra.mxu0 %vm901_vm3, %v1899_v61 }
 0x414   : > { %v1779_v44 = vpop.f32.mrf.mxu2  ;;  %v1853_v39 = vpop.f32.mrf.mxu3 }
 0x415   : > { %1943 = vrot.lane.b32.xlu1 %v1853_v39, %s7679_s17  ;;  %1935 = vrot.lane.b32.xlu2 %v1779_v44, %s7677_s22 }
 0x418   : > { %v1705_v58 = vpop.f32.mrf.mxu1 }
 0x41c   : > { %v1782_v46 = vpop.f32.mrf.mxu2  ;;  %v1856_v20 = vpop.f32.mrf.mxu3 }
 0x41d   : > { %1945 = vrot.lane.b32.xlu1 %v1856_v20, %s7679_s17  ;;  %1937 = vrot.lane.b32.xlu2 %v1782_v46, %s7677_s22  ;;  %s5017_s22 = smov 32  }
 0x420   : > { %v1708_v61 = vpop.f32.mrf.mxu1 }
 0x426   : > { %v1927_v7 = vpop.f32.mrf.mxu0 }
 0x427   : > { %1951 = vrot.lane.b32.xlu0 %v1927_v7, %s7675_s23  ;;  %v4910_v7 = vld [vmem:[%s5139_s21 + $0x8] sm:$0xff]  ;;  %s8150_s21 = smov 80  }
 0x42e   : > { %v1930_v18 = vpop.f32.mrf.mxu0 }
 0x42f   : > { %1953 = vrot.lane.b32.xlu0 %v1930_v18, %s7675_s23 }
 0x46f   : > { %v1936_v50 = vpop.permute.xlu2 %1935 }
 0x470   : > { %v1957_v45 = vsel %vm419_vm1, %v1705_v58, %v1936_v50 }
 0x477   : > { %v1938_v55 = vpop.permute.xlu2 %1937 }
 0x478   : > { %v1958_v44 = vsel %vm419_vm1, %v1708_v61, %v1938_v55 }
 0x487   : > { %v1944_v42 = vpop.permute.xlu1 %1943 }
 0x488   : > { %v1959_v0 = vsel %vm901_vm3, %v1957_v45, %v1944_v42  ;;  %v5015_v42 = vmov 32.0  }
 0x489   : > { %4729 = vrcp.f32 %v5015_v42  ;;  %v5016_v42 = vmov 31.0  }
 0x48a   : > { %4731 = vrcp.f32 %v5016_v42 }
 0x48f   : > { %v1946_v35 = vpop.permute.xlu1 %1945  ;;  %v4730_v58 = vpop.eup %4729 }
 0x490   : > { %v1960_v39 = vsel %vm901_vm3, %v1958_v44, %v1946_v35  ;;  %v1973_v45 = vmul.f32 32.0, %v4730_v58  ;;  %vm1977_vm5 = vweird.f32 %v4730_v58 }
 0x499   : > { %v1952_v14 = vpop.permute.xlu0 %1951 }
 0x49a   : > { %v1962_v27 = vsel %vm1961_vm4, %v1959_v0, %v1952_v14  ;;  %v1974_v0 = vsub.f32 1.0, %v1973_v45 }
 0x49b   : > { %v1964_v29 = vadd.f32 %v4909_v40, %v1962_v27 }
 0x49c   : > { %v1975_v14 = vmul.f32 %v4730_v58, %v1974_v0  ;;  %v2039_v0 = vld [vmem:[%s7608_s4 + $0x18] sm:$0xff] }
 0x49d   : > { %v1966_v5 = vsel %vm369_vm0, %v1964_v29, 0.0  ;;  %2062 = vmatpush.msra.mxu1 %v2039_v0 }
 0x49e   : > { %1967 = vadd.xlane.f32.xlu2 %v1966_v5  ;;  %v1976_v27 = vadd.f32 %v4730_v58, %v1975_v14 }
 0x4a0   : > { %v6119_v40 = vsel %vm1977_vm5, %v4730_v58, %v1976_v27  ;;  %v2037_v27 = vld [vmem:[%s7608_s4 + $0x8] sm:$0xff]  ;;  %vm4222_vm5 = vcmask 392192  }
 0x4a1   : > { %v1954_v46 = vpop.permute.xlu0 %1953  ;;  %7951 = vst [vmem:[#allocation73_spill] sm:$0xff] %v6119_v40 }
 0x4a2   : > { %v1963_v20 = vsel %vm1961_vm4, %v1960_v39, %v1954_v46 }
 0x4a3   : > { %v1965_v18 = vadd.f32 %v4910_v7, %v1963_v20 }
 0x4a5   : > { %v1969_v50 = vsel %vm369_vm0, %v1965_v18, 0.0 }
 0x4a6   : > { %1970 = vadd.xlane.f32.xlu1 %v1969_v50 }
 0x511   : > { %v1968_v55 = vpop.xlane.xlu2 %1967 }
 0x512   : > { %v1979_v5 = vmul.f32 %v6119_v40, %v1968_v55  ;;  %v2036_v55 = vld [vmem:[%s7608_s4] sm:$0xff] }
 0x514   : > { %v6122_v35 = vsub.f32 %v1964_v29, %v1979_v5  ;;  %v4732_v29 = vpop.eup %4731 }
 0x515   : > { %v1992_v58 = vmul.f32 31.0, %v4732_v29  ;;  %vm1996_vm6 = vweird.f32 %v4732_v29 }
 0x516   : > { %v1983_v61 = vmul.f32 %v6122_v35, %v6122_v35 }
 0x517   : > { %v1993_v45 = vsub.f32 1.0, %v1992_v58 }
 0x518   : > { %v1985_v44 = vsel %vm369_vm0, %v1983_v61, 0.0 }
 0x519   : > { %v1971_v39 = vpop.xlane.xlu1 %1970  ;;  %1986 = vadd.xlane.f32.xlu0 %v1985_v44  ;;  %v1994_v14 = vmul.f32 %v4732_v29, %v1993_v45  ;;  %v2090_v45 = vld [vmem:[%s7610_s6 + $0x78] sm:$0xff] }
 0x51a   : > { %v1980_v46 = vmul.f32 %v6119_v40, %v1971_v39  ;;  %2092 = vmatpush.msrb.mxu2 %v2090_v45 }
 0x51b   : > { %v1995_v5 = vadd.f32 %v4732_v29, %v1994_v14 }
 0x51c   : > { %v6128_v20 = vsub.f32 %v1965_v18, %v1980_v46  ;;  %v2038_v18 = vld [vmem:[%s7608_s4 + $0x10] sm:$0xff] }
 0x51d   : > { %2063 = vmatpush.msra.mxu1 %v2038_v18  ;;  %v6145_v61 = vsel %vm1996_vm6, %v4732_v29, %v1995_v5  ;;  %v2089_v29 = vld [vmem:[%s7610_s6 + $0x70] sm:$0xff]  ;;  %v2088_v18 = vld [vmem:[%s7610_s6 + $0x68] sm:$0xff]  ;;  %vm4225_vm6 = vcmask 523264  }
 0x51e   : > { %v1984_v7 = vmul.f32 %v6128_v20, %v6128_v20  ;;  %7952 = vst [vmem:[#allocation74_spill] sm:$0xff] %v6145_v61  ;;  %2093 = vmatpush.msrb.mxu2 %v2089_v29  ;;  %v2085_v29 = vld [vmem:[%s7610_s6 + $0x50] sm:$0xff] }
 0x51f   : > { %2064 = vmatpush.msra.mxu1 %v2037_v27 }
 0x520   : > { %v1988_v50 = vsel %vm369_vm0, %v1984_v7, 0.0  ;;  %2094 = vmatpush.msrb.mxu2 %v2088_v18  ;;  %v2084_v18 = vld [vmem:[%s7610_s6 + $0x48] sm:$0xff] }
 0x521   : > { %1989 = vadd.xlane.f32.xlu2 %v1988_v50  ;;  %2065 = vmatpush.msra.mxu1 %v2036_v55  ;;  %v2087_v55 = vld [vmem:[%s7610_s6 + $0x60] sm:$0xff] }
 0x522   : > { %2095 = vmatpush.msrb.mxu2 %v2087_v55 }
 0x58c   : > { %v1987_v44 = vpop.xlane.xlu0 %1986 }
 0x58d   : > { %v1998_v39 = vmul.f32 %v6145_v61, %v1987_v44 }
 0x58f   : > { %4733 = vrsqrt.f32 %v1998_v39  ;;  %vm2007_vm7 = vcmp.eq.f32.partialorder %v1998_v39, inf  ;;  %v2010_v45 = vand.u32 2147483648, %v1998_v39  ;;  %vm2009_vm8 = vcmp.eq.f32.partialorder %v1998_v39, 0.0 }
 0x594   : > { %v1990_v46 = vpop.xlane.xlu2 %1989 }
 0x595   : > { %v4734_v7 = vpop.eup %4733  ;;  %v1999_v50 = vmul.f32 %v6145_v61, %v1990_v46  ;;  %v2086_v46 = vld [vmem:[%s7610_s6 + $0x58] sm:$0xff] }
 0x596   : > { %v2001_v42 = vmul.f32 %v4734_v7, %v1998_v39  ;;  %2096 = vmatpush.msrb.mxu2 %v2086_v46 }
 0x597   : > { %4735 = vrsqrt.f32 %v1999_v50  ;;  %vm2019_vm9 = vcmp.eq.f32.partialorder %v1999_v50, inf  ;;  %vm2021_vm10 = vcmp.eq.f32.partialorder %v1999_v50, 0.0 }
 0x598   : > { %v2002_v58 = vmul.f32 %v4734_v7, %v2001_v42  ;;  %2097 = vmatpush.msrb.mxu2 %v2085_v29 }
 0x59a   : > { %v2003_v0 = vmul.f32 0.5, %v2002_v58  ;;  %2098 = vmatpush.msrb.mxu2 %v2084_v18  ;;  %v2080_v18 = vld [vmem:[%s7610_s6 + $0x28] sm:$0xff] }
 0x59c   : > { %v2004_v14 = vsub.f32 1.5, %v2003_v0 }
 0x59d   : > { %v4736_v27 = vpop.eup %4735 }
 0x59e   : > { %v2005_v5 = vmul.f32 %v4734_v7, %v2004_v14  ;;  %v2013_v44 = vmul.f32 %v4736_v27, %v1999_v50  ;;  %v6173_v14 = vld [vmem:[%s7611_s7] sm:$0x1f] }
 0x59f   : > { %v2024_v46 = vperm.slane %v6173_v14, 1 }
 0x5a0   : > { %v2006_v42 = vmul.f32 %v2005_v5, %v1998_v39  ;;  %v2014_v58 = vmul.f32 %v4736_v27, %v2013_v44  ;;  %v2083_v44 = vld [vmem:[%s7610_s6 + $0x40] sm:$0xff] }
 0x5a1   : > { %2099 = vmatpush.msrb.mxu2 %v2083_v44 }
 0x5a2   : > { %v2008_v0 = vsel %vm2007_vm7, %v1998_v39, %v2006_v42  ;;  %v2015_v32 = vmul.f32 0.5, %v2014_v58  ;;  %v2082_v42 = vld [vmem:[%s7610_s6 + $0x38] sm:$0xff]  ;;  %vm4234_vm7 = vcmask 916480  }
 0x5a3   : > { %v2011_v7 = vsel %vm2009_vm8, %v2010_v45, %v2008_v0  ;;  %v2022_v45 = vand.u32 2147483648, %v1999_v50  ;;  %2100 = vmatpush.msrb.mxu2 %v2082_v42  ;;  %v2033_v0 = vperm.slane %v6173_v14, 2  ;;  %v2026_v42 = vmul.f32 %v2024_v46, %v6128_v20  ;;  %v4582_v20 = vld [vmem:[%s7609_s5] ss:$0 sm:$0xff] }
 0x5a4   : > { %v2027_v55 = vadd.f32 1e-08, %v2011_v7  ;;  %v2016_v5 = vsub.f32 1.5, %v2015_v32  ;;  %v2081_v32 = vld [vmem:[%s7610_s6 + $0x30] sm:$0xff]  ;;  %vm4231_vm8 = vcmask 785408  }
 0x5a5   : > { %2101 = vmatpush.msrb.mxu2 %v2081_v32 }
 0x5a6   : > { %4737 = vrcp.f32 %v2027_v55  ;;  %v2017_v39 = vmul.f32 %v4736_v27, %v2016_v5  ;;  %v2025_v27 = vmul.f32 %v2024_v46, %v6122_v35  ;;  %v2078_v35 = vld [vmem:[%s7610_s6 + $0x18] sm:$0xff] }
 0x5a7   : > { %2102 = vmatpush.msrb.mxu2 %v2080_v18 }
 0x5a8   : > { %v2018_v58 = vmul.f32 %v2017_v39, %v1999_v50  ;;  %v2079_v39 = vld [vmem:[%s7610_s6 + $0x20] sm:$0xff] }
 0x5a9   : > { %2103 = vmatpush.msrb.mxu2 %v2079_v39  ;;  %v2091_v39 = vperm.slane %v6173_v14, 0 }
 0x5aa   : > { %v2020_v29 = vsel %vm2019_vm9, %v1999_v50, %v2018_v58 }
 0x5ab   : > { %v2023_v7 = vsel %vm2021_vm10, %v2022_v45, %v2020_v29  ;;  %2104 = vmatpush.msrb.mxu2 %v2078_v35  ;;  %v2077_v29 = vld [vmem:[%s7610_s6 + $0x10] sm:$0xff] }
 0x5ac   : > { %v4738_v55 = vpop.eup %4737  ;;  %v2028_v5 = vadd.f32 1e-08, %v2023_v7  ;;  %v2075_v7 = vld [vmem:[%s7610_s6] sm:$0xff] }
 0x5ad   : > { %v2031_v44 = vmul.f32 %v4738_v55, %v2025_v27  ;;  %v2076_v27 = vld [vmem:[%s7610_s6 + $0x8] sm:$0xff]  ;;  %2105 = vmatpush.msrb.mxu2 %v2077_v29 }
 0x5ae   : > { %4739 = vrcp.f32 %v2028_v5 }
 0x5af   : > { %v2034_v50 = vadd.f32 %v2033_v0, %v2031_v44  ;;  %2106 = vmatpush.msrb.mxu2 %v2076_v27 }
 0x5b1   : > { %4415 = vmatmul.msk.f32.vlgmr.msra.gmra.mxu1 %vm369_vm0, %v2034_v50  ;;  %2107 = vmatpush.msrb.mxu2 %v2075_v7 }
 0x5b4   : > { %v4740_v58 = vpop.eup %4739 }
 0x5b5   : > { %v2032_v45 = vmul.f32 %v4740_v58, %v2026_v42 }
 0x5b7   : > { %v2035_v32 = vadd.f32 %v2033_v0, %v2032_v45 }
 0x5b9   : > { %4416 = vmatmul.msk.f32.gmra.mxu1 %vm369_vm0, %v2035_v32 }
 0x62e   : > { %v2067_v46 = vpop.f32.mrf.mxu1 }
 0x62f   : > { %v2068_v0 = vadd.f32 %v4582_v20, %v2067_v46 }
 0x631   : > { %v2073_v18 = vmax.f32 %v2068_v0, 0.0 }
 0x633   : > { %2108 = vmatmul.f32.vlgmr.msrb.gmra.mxu2 %v2073_v18 }
 0x636   : > { %v2070_v55 = vpop.f32.mrf.mxu1 }
 0x637   : > { %v2071_v5 = vadd.f32 %v4582_v20, %v2070_v55 }
 0x639   : > { %v2074_v44 = vmax.f32 %v2071_v5, 0.0 }
 0x63b   : > { %2111 = vmatmul.f32.gmra.mxu2 %v2074_v44 }
 0x6b6   : > { %v2109_v35 = vpop.f32.mrf.mxu2 }
 0x6b7   : > { %v2110_v42 = vadd.f32 %v2109_v35, %v2091_v39 }
 0x6b9   : > { %v2115_v58 = vadd.f32 %v2110_v42, %v2034_v50 }
 0x6bb   : > { %v2117_v45 = vsel %vm369_vm0, %v2115_v58, 0.0 }
 0x6bc   : > { %2118 = vadd.xlane.f32.xlu1 %v2117_v45 }
 0x6be   : > { %v2112_v29 = vpop.f32.mrf.mxu2 }
 0x6bf   : > { %v2113_v27 = vadd.f32 %v2112_v29, %v2091_v39  ;;  %v4419_v39 = vld [vmem:[%s7606_s2 + $0x28] sm:$0xff] }
 0x6c1   : > { %v2116_v7 = vadd.f32 %v2113_v27, %v2035_v32  ;;  %v4420_v32 = vld [vmem:[%s7606_s2 + $0x30] sm:$0xff] }
 0x6c3   : > { %v2120_v62 = vsel %vm369_vm0, %v2116_v7, 0.0 }
 0x6c4   : > { %2121 = vadd.xlane.f32.xlu0 %v2120_v62  ;;  %v4421_v62 = vld [vmem:[%s7606_s2 + $0x38] sm:$0xff] }
 0x6c5   : > { %2203 = vmatpush.msrb.mxu3 %v4421_v62 }
 0x6c7   : > { %2204 = vmatpush.msrb.mxu3 %v4420_v32 }
 0x6c9   : > { %2205 = vmatpush.msrb.mxu3 %v4419_v39 }
 0x72f   : > { %v2119_v46 = vpop.xlane.xlu1 %2118 }
 0x730   : > { %v2123_v0 = vmul.f32 %v2119_v46, %v6119_v40 }
 0x732   : > { %v2125_v20 = vsub.f32 %v2115_v58, %v2123_v0  ;;  %v4418_v58 = vld [vmem:[%s7606_s2 + $0x20] sm:$0xff] }
 0x733   : > { %2206 = vmatpush.msrb.mxu3 %v4418_v58 }
 0x734   : > { %v2127_v18 = vmul.f32 %v2125_v20, %v2125_v20 }
 0x736   : > { %v2129_v55 = vsel %vm369_vm0, %v2127_v18, 0.0 }
 0x737   : > { %2130 = vadd.xlane.f32.xlu2 %v2129_v55  ;;  %v2122_v5 = vpop.xlane.xlu0 %2121 }
 0x738   : > { %v2124_v50 = vmul.f32 %v2122_v5, %v6119_v40 }
 0x73a   : > { %v2126_v44 = vsub.f32 %v2116_v7, %v2124_v50 }
 0x73c   : > { %v2128_v35 = vmul.f32 %v2126_v44, %v2126_v44 }
 0x73e   : > { %v2132_v42 = vsel %vm369_vm0, %v2128_v35, 0.0 }
 0x73f   : > { %2133 = vadd.xlane.f32.xlu1 %v2132_v42 }
 0x7aa   : > { %v2131_v45 = vpop.xlane.xlu2 %2130 }
 0x7ab   : > { %v2135_v29 = vmul.f32 %v2131_v45, %v6145_v61 }
 0x7ad   : > { %4741 = vrsqrt.f32 %v2135_v29  ;;  %vm2144_vm11 = vcmp.eq.f32.partialorder %v2135_v29, inf  ;;  %v2147_v39 = vand.u32 2147483648, %v2135_v29  ;;  %vm2146_vm12 = vcmp.eq.f32.partialorder %v2135_v29, 0.0 }
 0x7b2   : > { %v2134_v27 = vpop.xlane.xlu1 %2133 }
 0x7b3   : > { %v4742_v7 = vpop.eup %4741  ;;  %v2136_v46 = vmul.f32 %v2134_v27, %v6145_v61  ;;  %v2161_v61 = vperm.slane %v6173_v14, 3 }
 0x7b4   : > { %v2138_v0 = vmul.f32 %v4742_v7, %v2135_v29 }
 0x7b5   : > { %4743 = vrsqrt.f32 %v2136_v46  ;;  %vm2156_vm13 = vcmp.eq.f32.partialorder %v2136_v46, inf  ;;  %vm2158_vm14 = vcmp.eq.f32.partialorder %v2136_v46, 0.0 }
 0x7b6   : > { %v2139_v18 = vmul.f32 %v4742_v7, %v2138_v0 }
 0x7b8   : > { %v2140_v55 = vmul.f32 0.5, %v2139_v18  ;;  %v2159_v18 = vand.u32 2147483648, %v2136_v46 }
 0x7ba   : > { %v2141_v5 = vsub.f32 1.5, %v2140_v55 }
 0x7bb   : > { %v4744_v50 = vpop.eup %4743 }
 0x7bc   : > { %v2142_v35 = vmul.f32 %v4742_v7, %v2141_v5  ;;  %v2150_v42 = vmul.f32 %v4744_v50, %v2136_v46  ;;  %v2162_v7 = vmul.f32 %v2161_v61, %v2125_v20  ;;  %v2170_v5 = vperm.slane %v6173_v14, 4  ;;  %v4583_v14 = vld [vmem:[%s7607_s3 + $0x1] ss:$0 sm:$0xff] }
 0x7be   : > { %v2143_v62 = vmul.f32 %v2142_v35, %v2135_v29  ;;  %v2151_v32 = vmul.f32 %v4744_v50, %v2150_v42 }
 0x7c0   : > { %v2145_v58 = vsel %vm2144_vm11, %v2135_v29, %v2143_v62  ;;  %v2152_v45 = vmul.f32 0.5, %v2151_v32 }
 0x7c1   : > { %v2148_v40 = vsel %vm2146_vm12, %v2147_v39, %v2145_v58 }
 0x7c2   : > { %v2164_v15 = vadd.f32 1e-08, %v2148_v40  ;;  %v2153_v36 = vsub.f32 1.5, %v2152_v45 }
 0x7c4   : > { %4745 = vrcp.f32 %v2164_v15  ;;  %v2154_v27 = vmul.f32 %v4744_v50, %v2153_v36  ;;  %v2163_v36 = vmul.f32 %v2161_v61, %v2126_v44 }
 0x7c6   : > { %v2155_v0 = vmul.f32 %v2154_v27, %v2136_v46 }
 0x7c8   : > { %v2157_v55 = vsel %vm2156_vm13, %v2136_v46, %v2155_v0 }
 0x7c9   : > { %v2160_v35 = vsel %vm2158_vm14, %v2159_v18, %v2157_v55 }
 0x7ca   : > { %v4746_v42 = vpop.eup %4745  ;;  %v2165_v62 = vadd.f32 1e-08, %v2160_v35 }
 0x7cb   : > { %v2168_v29 = vmul.f32 %v4746_v42, %v2162_v7 }
 0x7cc   : > { %4747 = vrcp.f32 %v2165_v62 }
 0x7cd   : > { %v6234_v32 = vadd.f32 %v2170_v5, %v2168_v29 }
 0x7cf   : > { %7953 = vst [vmem:[#allocation75_spill] sm:$0xff] %v6234_v32  ;;  %4423 = vmatmul.msk.f32.vlgmr.msrb.gmra.mxu3 %vm369_vm0, %v6234_v32 }
 0x7d2   : > { %v4748_v15 = vpop.eup %4747 }
 0x7d3   : > { %v2169_v40 = vmul.f32 %v4748_v15, %v2163_v36 }
 0x7d5   : > { %v6238_v50 = vadd.f32 %v2170_v5, %v2169_v40 }
 0x7d7   : > { %7954 = vst [vmem:[#allocation76_spill] sm:$0xff] %v6238_v50  ;;  %4424 = vmatmul.msk.f32.gmra.mxu3 %vm369_vm0, %v6238_v50 }
 0x852   : > { %v2208_v20 = vpop.f32.mrf.mxu3 }
 0x853   : > { %v2209_v46 = vadd.f32 %v4583_v14, %v2208_v20 }
 0x855   : > { %v6245_v39 = vmax.f32 %v2209_v46, 0.0 }
 0x857   : > { %7955 = vst [vmem:[#allocation77_spill] sm:$0xff] %v6245_v39  ;;  %2218 = vrot.lane.b32.xlu2 %v6245_v39, %s5009_s26 }
 0x85a   : > { %v2211_v58 = vpop.f32.mrf.mxu3 }
 0x85b   : > { %v2212_v61 = vadd.f32 %v4583_v14, %v2211_v58 }
 0x85d   : > { %v6249_v44 = vmax.f32 %v2212_v61, 0.0 }
 0x85f   : > { %7956 = vst [vmem:[#allocation78_spill] sm:$0xff] %v6249_v44  ;;  %2224 = vrot.lane.b32.xlu1 %v6249_v44, %s7795_s25  ;;  %2220 = vrot.lane.b32.xlu0 %v6249_v44, %s5009_s26  ;;  %s8013_s26 = smov 64  }
 0x860   : > { %2232 = vrot.lane.b32.xlu2 %v6249_v44, %s7797_s24 }
 0x867   : > { %2228 = vrot.lane.b32.xlu1 %v6249_v44, %s5010_s28  ;;  %2222 = vrot.lane.b32.xlu0 %v6245_v39, %s7795_s25 }
 0x868   : > { %2226 = vrot.lane.b32.xlu2 %v6245_v39, %s5010_s28  ;;  %s8122_s28 = smov 16  }
 0x86f   : > { %2230 = vrot.lane.b32.xlu0 %v6245_v39, %s7797_s24 }
 0x8b1   : > { %v6265_v45 = vpop.permute.xlu2 %2218 }
 0x8b2   : > { %7957 = vst [vmem:[#allocation79_spill] sm:$0xff] %v6265_v45  ;;  %2265 = vrot.lane.b32.xlu1 %v6265_v45, %s7797_s24 }
 0x8ba   : > { %v2233_v27 = vpop.permute.xlu2 %2232 }
 0x8bb   : > { %4425 = vmatpush.xpose.msk.msrb.mxu0 %vm419_vm1, %v2233_v27 }
 0x8c2   : > { %v6282_v5 = vpop.permute.xlu2 %2226 }
 0x8c3   : > { %7962 = vst [vmem:[#allocation84_spill] sm:$0xff] %v6282_v5 }
 0x8d1   : > { %v6270_v0 = vpop.permute.xlu1 %2224  ;;  %v6272_v18 = vpop.permute.xlu0 %2220 }
 0x8d2   : > { %7958 = vst [vmem:[#allocation80_spill] sm:$0xff] %v6270_v0  ;;  %2267 = vrot.lane.b32.xlu0 %v6272_v18, %s7797_s24  ;;  %2302 = vrot.lane.b32.xlu2 %v6270_v0, %s7797_s24 }
 0x8d3   : > { %7959 = vst [vmem:[#allocation81_spill] sm:$0xff] %v6272_v18 }
 0x8d9   : > { %v6278_v55 = vpop.permute.xlu1 %2228  ;;  %v6280_v7 = vpop.permute.xlu0 %2222 }
 0x8da   : > { %7960 = vst [vmem:[#allocation82_spill] sm:$0xff] %v6278_v55  ;;  %2300 = vrot.lane.b32.xlu0 %v6280_v7, %s7797_s24  ;;  %2337 = vrot.lane.b32.xlu1 %v6278_v55, %s7797_s24 }
 0x8db   : > { %7961 = vst [vmem:[#allocation83_spill] sm:$0xff] %v6280_v7  ;;  %2335 = vrot.lane.b32.xlu2 %v6282_v5, %s7797_s24 }
 0x8e1   : > { %v2231_v35 = vpop.permute.xlu0 %2230 }
 0x8e2   : > { %4426 = vmatpush.xpose.msk.msrb.mxu0 %vm419_vm1, %v2231_v35 }
 0x8e5   : > { %4427 = vmatmul.msk.f32.vlgmr.msrb.gmra.mxu0 %vm419_vm1, %v6245_v39 }
 0x8ed   : > { %4428 = vmatmul.msk.f32.gmra.mxu0 %vm419_vm1, %v6249_v44 }
 0x924   : > { %v2266_v62 = vpop.permute.xlu1 %2265 }
 0x92c   : > { %v2303_v42 = vpop.permute.xlu2 %2302 }
 0x92d   : > { %4433 = vmatpush.xpose.msk.msra.mxu3 %vm419_vm1, %v2303_v42 }
 0x935   : > { %v2336_v40 = vpop.permute.xlu2 %2335 }
 0x944   : > { %v2268_v29 = vpop.permute.xlu0 %2267 }
 0x945   : > { %4429 = vmatpush.xpose.msk.msrb.mxu1 %vm419_vm1, %v2268_v29 }
 0x949   : > { %4430 = vmatpush.xpose.msk.msrb.mxu1 %vm419_vm1, %v2266_v62 }
 0x94c   : > { %v2301_v36 = vpop.permute.xlu0 %2300  ;;  %4431 = vmatmul.msk.f32.vlgmr.msrb.gmra.mxu1 %vm419_vm1, %v6265_v45  ;;  %v2338_v15 = vpop.permute.xlu1 %2337 }
 0x94d   : > { %4434 = vmatpush.xpose.msk.msra.mxu3 %vm419_vm1, %v2301_v36  ;;  %4437 = vmatpush.xpose.msk.msra.mxu0 %vm419_vm1, %v2338_v15 }
 0x950   : > { %4435 = vmatmul.msk.f32.vlgmr.msra.gmra.mxu3 %vm419_vm1, %v6280_v7 }
 0x951   : > { %4438 = vmatpush.xpose.msk.msra.mxu0 %vm419_vm1, %v2336_v40 }
 0x954   : > { %4432 = vmatmul.msk.f32.gmra.mxu1 %vm419_vm1, %v6272_v18  ;;  %4439 = vmatmul.msk.f32.vlgmr.msra.gmra.mxu0 %vm419_vm1, %v6282_v5 }
 0x958   : > { %4436 = vmatmul.msk.f32.gmra.mxu3 %vm419_vm1, %v6270_v0 }
 0x95c   : > { %4440 = vmatmul.msk.f32.gmra.mxu0 %vm419_vm1, %v6278_v55 }
 0x962   : > { %v2259_v14 = vpop.f32.mrf.mxu0 }
 0x963   : > { %v2370_v20 = vmul.f32 0.35355338, %v2259_v14 }
 0x965   : > { %v2386_v46 = vrot.slane %v2370_v20, 1  ;;  %v2387_v58 = vrot.slane %v2370_v20, 2  ;;  %v2388_v61 = vrot.slane %v2370_v20, 3  ;;  %v2389_v27 = vrot.slane %v2370_v20, 4 }
 0x966   : > { %v2390_v35 = vrot.slane %v2370_v20, 5  ;;  %v2391_v42 = vrot.slane %v2370_v20, 6  ;;  %v6315_v29 = vsel %vm359_vm2, -4.2949673e+09, %v2370_v20  ;;  %v2392_v36 = vrot.slane %v2370_v20, 7 }
 0x967   : > { %v6319_v15 = vsel %vm359_vm2, -4.2949673e+09, %v2386_v46  ;;  %v6323_v40 = vsel %vm359_vm2, -4.2949673e+09, %v2387_v58  ;;  %v6327_v14 = vsel %vm359_vm2, -4.2949673e+09, %v2388_v61  ;;  %2626 = vst [vmem:[#allocation1] ss:$9 sm:$0xff] %v6315_v29  ;;  %v6332_v50 = vsel %vm359_vm2, -4.2949673e+09, %v2389_v27 }
 0x968   : > { %2628 = vst [vmem:[#allocation1 + $0x1] ss:$9 sm:$0xff] %v6319_v15  ;;  %v6337_v20 = vsel %vm359_vm2, -4.2949673e+09, %v2390_v35  ;;  %v6342_v46 = vsel %vm359_vm2, -4.2949673e+09, %v2391_v42  ;;  %v6347_v61 = vsel %vm359_vm2, -4.2949673e+09, %v2392_v36 }
 0x969   : > { %2630 = vst [vmem:[#allocation1 + $0x2] ss:$9 sm:$0xff] %v6323_v40 }
 0x96a   : > { %2632 = vst [vmem:[#allocation1 + $0x3] ss:$9 sm:$0xff] %v6327_v14  ;;  %v2262_v58 = vpop.f32.mrf.mxu0 }
 0x96b   : > { %2634 = vst [vmem:[#allocation1 + $0x4] ss:$9 sm:$0xff] %v6332_v50  ;;  %v2371_v27 = vmul.f32 0.35355338, %v2262_v58 }
 0x96c   : > { %2636 = vst [vmem:[#allocation1 + $0x5] ss:$9 sm:$0xff] %v6337_v20 }
 0x96d   : > { %2638 = vst [vmem:[#allocation1 + $0x6] ss:$9 sm:$0xff] %v6342_v46  ;;  %v2393_v35 = vrot.slane %v2371_v27, 1  ;;  %v2394_v32 = vrot.slane %v2371_v27, 2  ;;  %v2395_v42 = vrot.slane %v2371_v27, 3  ;;  %v2396_v22 = vrot.slane %v2371_v27, 4 }
 0x96e   : > { %2640 = vst [vmem:[#allocation1 + $0x7] ss:$9 sm:$0xff] %v6347_v61  ;;  %v2397_v24 = vrot.slane %v2371_v27, 5  ;;  %v2398_v47 = vrot.slane %v2371_v27, 6  ;;  %v6359_v9 = vsel %vm359_vm2, -4.2949673e+09, %v2371_v27  ;;  %v2399_v13 = vrot.slane %v2371_v27, 7 }
 0x96f   : > { %v6355_v26 = vsel %vm359_vm2, -4.2949673e+09, %v2393_v35  ;;  %v6363_v58 = vsel %vm359_vm2, -4.2949673e+09, %v2394_v32  ;;  %v6367_v30 = vsel %vm359_vm2, -4.2949673e+09, %v2395_v42  ;;  %v6373_v56 = vsel %vm359_vm2, -4.2949673e+09, %v2396_v22 }
 0x970   : > { %v6378_v32 = vsel %vm359_vm2, -4.2949673e+09, %v2397_v24  ;;  %v6383_v27 = vsel %vm359_vm2, -4.2949673e+09, %v2398_v47  ;;  %v6388_v42 = vsel %vm359_vm2, -4.2949673e+09, %v2399_v13 }
 0x975   : > { %v2641_v36 = vld [vmem:[#allocation1] sm:$0xff] }
 0x976   : > { %2642 = vst [vmem:[#allocation1] ss:$9 sm:$0xff] %v6359_v9  ;;  %v2713_v35 = vsel %vm901_vm3, %v2641_v36, -inf }
 0x977   : > { %2643 = vst [vmem:[#allocation1 + $0x1] ss:$9 sm:$0xff] %v6355_v26  ;;  %2714 = vmax.xlane.f32.xlu0 %v2713_v35 }
 0x978   : > { %2644 = vst [vmem:[#allocation1 + $0x2] ss:$9 sm:$0xff] %v6363_v58 }
 0x979   : > { %2645 = vst [vmem:[#allocation1 + $0x3] ss:$9 sm:$0xff] %v6367_v30 }
 0x97a   : > { %2646 = vst [vmem:[#allocation1 + $0x4] ss:$9 sm:$0xff] %v6373_v56 }
 0x97b   : > { %2647 = vst [vmem:[#allocation1 + $0x5] ss:$9 sm:$0xff] %v6378_v32 }
 0x97c   : > { %2648 = vst [vmem:[#allocation1 + $0x6] ss:$9 sm:$0xff] %v6383_v27 }
 0x97d   : > { %2649 = vst [vmem:[#allocation1 + $0x7] ss:$9 sm:$0xff] %v6388_v42 }
 0x984   : > { %v2650_v24 = vld [vmem:[#allocation1] sm:$0xff] }
 0x985   : > { %v2716_v22 = vsel %vm901_vm3, %v2650_v24, -inf }
 0x986   : > { %2717 = vmax.xlane.f32.xlu1 %v2716_v22 }
 0x9c9   : > { %v2294_v47 = vpop.f32.mrf.mxu1 }
 0x9ca   : > { %v2372_v36 = vmul.f32 0.35355338, %v2294_v47 }
 0x9cc   : > { %v2400_v35 = vrot.slane %v2372_v36, 1  ;;  %v2401_v48 = vrot.slane %v2372_v36, 2  ;;  %v2402_v28 = vrot.slane %v2372_v36, 3  ;;  %v2403_v6 = vrot.slane %v2372_v36, 4 }
 0x9cd   : > { %v2404_v13 = vrot.slane %v2372_v36, 5  ;;  %v2405_v63 = vrot.slane %v2372_v36, 6  ;;  %v6397_v60 = vsel %vm359_vm2, -4.2949673e+09, %v2372_v36  ;;  %v2406_v31 = vrot.slane %v2372_v36, 7 }
 0x9ce   : > { %v6401_v54 = vsel %vm359_vm2, -4.2949673e+09, %v2400_v35  ;;  %v6405_v24 = vsel %vm359_vm2, -4.2949673e+09, %v2401_v48  ;;  %v6409_v22 = vsel %vm359_vm2, -4.2949673e+09, %v2402_v28  ;;  %2651 = vst [vmem:[#allocation1] ss:$9 sm:$0xff] %v6397_v60  ;;  %v6414_v47 = vsel %vm359_vm2, -4.2949673e+09, %v2403_v6 }
 0x9cf   : > { %2652 = vst [vmem:[#allocation1 + $0x1] ss:$9 sm:$0xff] %v6401_v54  ;;  %v6419_v36 = vsel %vm359_vm2, -4.2949673e+09, %v2404_v13  ;;  %v6424_v48 = vsel %vm359_vm2, -4.2949673e+09, %v2405_v63  ;;  %v6429_v35 = vsel %vm359_vm2, -4.2949673e+09, %v2406_v31 }
 0x9d0   : > { %2653 = vst [vmem:[#allocation1 + $0x2] ss:$9 sm:$0xff] %v6405_v24 }
 0x9d1   : > { %2654 = vst [vmem:[#allocation1 + $0x3] ss:$9 sm:$0xff] %v6409_v22  ;;  %v2297_v28 = vpop.f32.mrf.mxu1 }
 0x9d2   : > { %2655 = vst [vmem:[#allocation1 + $0x4] ss:$9 sm:$0xff] %v6414_v47  ;;  %v2373_v6 = vmul.f32 0.35355338, %v2297_v28 }
 0x9d3   : > { %2656 = vst [vmem:[#allocation1 + $0x5] ss:$9 sm:$0xff] %v6419_v36 }
 0x9d4   : > { %2657 = vst [vmem:[#allocation1 + $0x6] ss:$9 sm:$0xff] %v6424_v48  ;;  %v2407_v13 = vrot.slane %v2373_v6, 1  ;;  %v2408_v57 = vrot.slane %v2373_v6, 2  ;;  %v2409_v63 = vrot.slane %v2373_v6, 3  ;;  %v2410_v8 = vrot.slane %v2373_v6, 4 }
 0x9d5   : > { %2658 = vst [vmem:[#allocation1 + $0x7] ss:$9 sm:$0xff] %v6429_v35  ;;  %v2411_v23 = vrot.slane %v2373_v6, 5  ;;  %v2412_v59 = vrot.slane %v2373_v6, 6  ;;  %v6441_v2 = vsel %vm359_vm2, -4.2949673e+09, %v2373_v6  ;;  %v2413_v43 = vrot.slane %v2373_v6, 7 }
 0x9d6   : > { %v6437_v3 = vsel %vm359_vm2, -4.2949673e+09, %v2407_v13  ;;  %v6445_v28 = vsel %vm359_vm2, -4.2949673e+09, %v2408_v57  ;;  %v6449_v34 = vsel %vm359_vm2, -4.2949673e+09, %v2409_v63  ;;  %v6454_v13 = vsel %vm359_vm2, -4.2949673e+09, %v2410_v8  ;;  %v2329_v63 = vpop.f32.mrf.mxu3 }
 0x9d7   : > { %v6459_v25 = vsel %vm359_vm2, -4.2949673e+09, %v2411_v23  ;;  %v6464_v57 = vsel %vm359_vm2, -4.2949673e+09, %v2412_v59  ;;  %v6470_v8 = vsel %vm359_vm2, -4.2949673e+09, %v2413_v43  ;;  %v2374_v59 = vmul.f32 0.35355338, %v2329_v63 }
 0x9d9   : > { %v2414_v23 = vrot.slane %v2374_v59, 1  ;;  %v2415_v4 = vrot.slane %v2374_v59, 2  ;;  %v2416_v41 = vrot.slane %v2374_v59, 3  ;;  %v6478_v43 = vsel %vm359_vm2, -4.2949673e+09, %v2374_v59 }
 0x9da   : > { %v2418_v19 = vrot.slane %v2374_v59, 5  ;;  %v2419_v38 = vrot.slane %v2374_v59, 6  ;;  %v2420_v1 = vrot.slane %v2374_v59, 7 }
 0x9db   : > { %v6488_v63 = vsel %vm359_vm2, -4.2949673e+09, %v2415_v4  ;;  %v6493_v12 = vsel %vm359_vm2, -4.2949673e+09, %v2416_v41 }
 0x9dc   : > { %v2659_v31 = vld [vmem:[#allocation1] sm:$0xff]  ;;  %v6503_v4 = vsel %vm359_vm2, -4.2949673e+09, %v2418_v19  ;;  %v6513_v41 = vsel %vm359_vm2, -4.2949673e+09, %v2420_v1 }
 0x9dd   : > { %2660 = vst [vmem:[#allocation1] ss:$9 sm:$0xff] %v6441_v2  ;;  %v2719_v6 = vsel %vm901_vm3, %v2659_v31, -inf  ;;  %v2417_v31 = vrot.slane %v2374_v59, 4 }
 0x9de   : > { %2661 = vst [vmem:[#allocation1 + $0x1] ss:$9 sm:$0xff] %v6437_v3  ;;  %2720 = vmax.xlane.f32.xlu2 %v2719_v6  ;;  %v6482_v6 = vsel %vm359_vm2, -4.2949673e+09, %v2414_v23 }
 0x9df   : > { %2662 = vst [vmem:[#allocation1 + $0x2] ss:$9 sm:$0xff] %v6445_v28  ;;  %v6498_v23 = vsel %vm359_vm2, -4.2949673e+09, %v2417_v31 }
 0x9e0   : > { %2663 = vst [vmem:[#allocation1 + $0x3] ss:$9 sm:$0xff] %v6449_v34 }
 0x9e1   : > { %2664 = vst [vmem:[#allocation1 + $0x4] ss:$9 sm:$0xff] %v6454_v13 }
 0x9e2   : > { %2665 = vst [vmem:[#allocation1 + $0x5] ss:$9 sm:$0xff] %v6459_v25 }
 0x9e3   : > { %2666 = vst [vmem:[#allocation1 + $0x6] ss:$9 sm:$0xff] %v6464_v57 }
 0x9e4   : > { %2667 = vst [vmem:[#allocation1 + $0x7] ss:$9 sm:$0xff] %v6470_v8 }
 0x9eb   : > { %v2668_v51 = vld [vmem:[#allocation1] sm:$0xff] }
 0x9ec   : > { %2669 = vst [vmem:[#allocation1] ss:$9 sm:$0xff] %v6478_v43  ;;  %v2722_v11 = vsel %vm901_vm3, %v2668_v51, -inf  ;;  %v6508_v51 = vsel %vm359_vm2, -4.2949673e+09, %v2419_v38 }
 0x9ed   : > { %2670 = vst [vmem:[#allocation1 + $0x1] ss:$9 sm:$0xff] %v6482_v6  ;;  %2723 = vmax.xlane.f32.xlu0 %v2722_v11  ;;  %v2332_v11 = vpop.f32.mrf.mxu3 }
 0x9ee   : > { %2671 = vst [vmem:[#allocation1 + $0x2] ss:$9 sm:$0xff] %v6488_v63  ;;  %v2375_v59 = vmul.f32 0.35355338, %v2332_v11 }
 0x9ef   : > { %2672 = vst [vmem:[#allocation1 + $0x3] ss:$9 sm:$0xff] %v6493_v12 }
 0x9f0   : > { %2673 = vst [vmem:[#allocation1 + $0x4] ss:$9 sm:$0xff] %v6498_v23  ;;  %v2421_v19 = vrot.slane %v2375_v59, 1  ;;  %v2422_v31 = vrot.slane %v2375_v59, 2  ;;  %v2423_v10 = vrot.slane %v2375_v59, 3  ;;  %v2424_v52 = vrot.slane %v2375_v59, 4 }
 0x9f1   : > { %2674 = vst [vmem:[#allocation1 + $0x5] ss:$9 sm:$0xff] %v6503_v4  ;;  %v6519_v38 = vsel %vm359_vm2, -4.2949673e+09, %v2375_v59  ;;  %v2425_v16 = vrot.slane %v2375_v59, 5  ;;  %v2426_v49 = vrot.slane %v2375_v59, 6  ;;  %v2427_v37 = vrot.slane %v2375_v59, 7 }
 0x9f2   : > { %2675 = vst [vmem:[#allocation1 + $0x6] ss:$9 sm:$0xff] %v6508_v51  ;;  %v6523_v17 = vsel %vm359_vm2, -4.2949673e+09, %v2421_v19  ;;  %v6529_v11 = vsel %vm359_vm2, -4.2949673e+09, %v2422_v31  ;;  %v6534_v21 = vsel %vm359_vm2, -4.2949673e+09, %v2423_v10  ;;  %v6539_v19 = vsel %vm359_vm2, -4.2949673e+09, %v2424_v52 }
 0x9f3   : > { %2676 = vst [vmem:[#allocation1 + $0x7] ss:$9 sm:$0xff] %v6513_v41  ;;  %v6544_v31 = vsel %vm359_vm2, -4.2949673e+09, %v2425_v16  ;;  %v6549_v59 = vsel %vm359_vm2, -4.2949673e+09, %v2426_v49  ;;  %v6554_v10 = vsel %vm359_vm2, -4.2949673e+09, %v2427_v37 }
 0x9f4   : > { %7964 = vst [vmem:[#allocation16_spill] sm:$0xff] %v6529_v11 }
 0x9f5   : > { %7965 = vst [vmem:[#allocation85_spill] sm:$0xff] %v6534_v21 }
 0x9f6   : > { %7966 = vst [vmem:[#allocation86_spill] sm:$0xff] %v6539_v19 }
 0x9f7   : > { %7967 = vst [vmem:[#allocation87_spill] sm:$0xff] %v6544_v31 }
 0x9f8   : > { %7968 = vst [vmem:[#allocation88_spill] sm:$0xff] %v6549_v59 }
 0x9f9   : > { %7969 = vst [vmem:[#allocation89_spill] sm:$0xff] %v6554_v10 }
 0x9fa   : > { %v2677_v53 = vld [vmem:[#allocation1] sm:$0xff] }
 0x9fb   : > { %2678 = vst [vmem:[#allocation1] ss:$9 sm:$0xff] %v6519_v38  ;;  %v2725_v1 = vsel %vm901_vm3, %v2677_v53, -inf  ;;  %v2364_v53 = vpop.f32.mrf.mxu0 }
 0x9fc   : > { %2679 = vst [vmem:[#allocation1 + $0x1] ss:$9 sm:$0xff] %v6523_v17  ;;  %2726 = vmax.xlane.f32.xlu1 %v2725_v1  ;;  %v2376_v52 = vmul.f32 0.35355338, %v2364_v53 }
 0x9fd   : > { %2680 = vst [vmem:[#allocation1 + $0x2] ss:$9 sm:$0xff] %v6529_v11 }
 0x9fe   : > { %2681 = vst [vmem:[#allocation1 + $0x3] ss:$9 sm:$0xff] %v6534_v21  ;;  %v2428_v1 = vrot.slane %v2376_v52, 1  ;;  %v2429_v16 = vrot.slane %v2376_v52, 2  ;;  %v2430_v33 = vrot.slane %v2376_v52, 3  ;;  %v2431_v5 = vrot.slane %v2376_v52, 4 }
 0x9ff   : > { %2682 = vst [vmem:[#allocation1 + $0x4] ss:$9 sm:$0xff] %v6539_v19  ;;  %v6560_v55 = vsel %vm359_vm2, -4.2949673e+09, %v2376_v52  ;;  %v2432_v39 = vrot.slane %v2376_v52, 5  ;;  %v2433_v53 = vrot.slane %v2376_v52, 6  ;;  %v2434_v45 = vrot.slane %v2376_v52, 7 }
 0xa00   : > { %2683 = vst [vmem:[#allocation1 + $0x5] ss:$9 sm:$0xff] %v6544_v31  ;;  %v6564_v44 = vsel %vm359_vm2, -4.2949673e+09, %v2428_v1  ;;  %v6570_v7 = vsel %vm359_vm2, -4.2949673e+09, %v2429_v16  ;;  %v6575_v0 = vsel %vm359_vm2, -4.2949673e+09, %v2430_v33  ;;  %v6580_v1 = vsel %vm359_vm2, -4.2949673e+09, %v2431_v5 }
 0xa01   : > { %2684 = vst [vmem:[#allocation1 + $0x6] ss:$9 sm:$0xff] %v6549_v59  ;;  %v6585_v16 = vsel %vm359_vm2, -4.2949673e+09, %v2432_v39  ;;  %v6590_v52 = vsel %vm359_vm2, -4.2949673e+09, %v2433_v53  ;;  %v6595_v33 = vsel %vm359_vm2, -4.2949673e+09, %v2434_v45  ;;  %v2715_v39 = vpop.xlane.xlu0 %2714 }
 0xa02   : > { %2685 = vst [vmem:[#allocation1 + $0x7] ss:$9 sm:$0xff] %v6554_v10  ;;  %v2745_v18 = vperm.slane %v2715_v39, 0  ;;  %v2748_v10 = vperm.slane %v2715_v39, 3  ;;  %v2750_v21 = vperm.slane %v2715_v39, 5 }
 0xa03   : > { %7970 = vst [vmem:[#allocation90_spill] sm:$0xff] %v6560_v55 }
 0xa04   : > { %7971 = vst [vmem:[#allocation91_spill] sm:$0xff] %v6564_v44 }
 0xa05   : > { %7972 = vst [vmem:[#allocation92_spill] sm:$0xff] %v6570_v7 }
 0xa06   : > { %7973 = vst [vmem:[#allocation93_spill] sm:$0xff] %v6575_v0 }
 0xa07   : > { %7974 = vst [vmem:[#allocation94_spill] sm:$0xff] %v6580_v1 }
 0xa08   : > { %7975 = vst [vmem:[#allocation95_spill] sm:$0xff] %v6585_v16 }
 0xa09   : > { %v2686_v49 = vld [vmem:[#allocation1] sm:$0xff]  ;;  %7976 = vst [vmem:[#allocation96_spill] sm:$0xff] %v6590_v52 }
 0xa0a   : > { %2687 = vst [vmem:[#allocation1] ss:$9 sm:$0xff] %v6560_v55  ;;  %v2728_v37 = vsel %vm901_vm3, %v2686_v49, -inf  ;;  %v2367_v49 = vpop.f32.mrf.mxu0 }
 0xa0b   : > { %2688 = vst [vmem:[#allocation1 + $0x1] ss:$9 sm:$0xff] %v6564_v44  ;;  %2729 = vmax.xlane.f32.xlu2 %v2728_v37  ;;  %v2377_v5 = vmul.f32 0.35355338, %v2367_v49  ;;  %v2747_v44 = vperm.slane %v2715_v39, 2 }
 0xa0c   : > { %2689 = vst [vmem:[#allocation1 + $0x2] ss:$9 sm:$0xff] %v6570_v7 }
 0xa0d   : > { %2690 = vst [vmem:[#allocation1 + $0x3] ss:$9 sm:$0xff] %v6575_v0  ;;  %v2435_v37 = vrot.slane %v2377_v5, 1  ;;  %v2436_v0 = vrot.slane %v2377_v5, 2  ;;  %v2437_v7 = vrot.slane %v2377_v5, 3  ;;  %v2438_v53 = vrot.slane %v2377_v5, 4 }
 0xa0e   : > { %2691 = vst [vmem:[#allocation1 + $0x4] ss:$9 sm:$0xff] %v6580_v1  ;;  %v2746_v1 = vperm.slane %v2715_v39, 1  ;;  %v2439_v55 = vrot.slane %v2377_v5, 5  ;;  %v2440_v31 = vrot.slane %v2377_v5, 6 }
 0xa0f   : > { %2692 = vst [vmem:[#allocation1 + $0x5] ss:$9 sm:$0xff] %v6585_v16  ;;  %v6601_v16 = vsel %vm359_vm2, -4.2949673e+09, %v2377_v5  ;;  %v6605_v49 = vsel %vm359_vm2, -4.2949673e+09, %v2435_v37  ;;  %v6612_v19 = vsel %vm359_vm2, -4.2949673e+09, %v2436_v0  ;;  %v2441_v37 = vrot.slane %v2377_v5, 7 }
 0xa10   : > { %7977 = vst [vmem:[#allocation97_spill] sm:$0xff] %v6595_v33  ;;  %v2874_v11 = vsub.f32 %v6319_v15, %v2746_v1  ;;  %v6624_v0 = vsel %vm359_vm2, -4.2949673e+09, %v2438_v53  ;;  %v2876_v15 = vsub.f32 %v6327_v14, %v2748_v10 }
 0xa11   : > { %2693 = vst [vmem:[#allocation1 + $0x6] ss:$9 sm:$0xff] %v6590_v52  ;;  %v2873_v52 = vsub.f32 %v6315_v29, %v2745_v18  ;;  %v2751_v18 = vperm.slane %v2715_v39, 6  ;;  %v2875_v29 = vsub.f32 %v6323_v40, %v2747_v44  ;;  %v6636_v44 = vsel %vm359_vm2, -4.2949673e+09, %v2440_v31 }
 0xa12   : > { %2694 = vst [vmem:[#allocation1 + $0x7] ss:$9 sm:$0xff] %v6595_v33  ;;  %v2749_v33 = vperm.slane %v2715_v39, 4  ;;  %v2878_v40 = vsub.f32 %v6337_v20, %v2750_v21  ;;  %v2939_v5 = vmul.f32 1.442695, %v2874_v11  ;;  %v6642_v14 = vsel %vm359_vm2, -4.2949673e+09, %v2441_v37 }
 0xa13   : > { %7978 = vst [vmem:[#allocation98_spill] sm:$0xff] %v6601_v16  ;;  %v2937_v1 = vmul.f32 1.442695, %v2873_v52  ;;  %v2941_v10 = vmul.f32 1.442695, %v2875_v29 }
 0xa14   : > { %v2943_v31 = vmul.f32 1.442695, %v2876_v15  ;;  %v2947_v21 = vmul.f32 1.442695, %v2878_v40 }
 0xa15   : > { %4749 = vpow2.f32 %v2937_v1 }
 0xa16   : > { %4751 = vpow2.f32 %v2939_v5 }
 0xa17   : > { %4753 = vpow2.f32 %v2941_v10 }
 0xa18   : > { %4755 = vpow2.f32 %v2943_v31 }
 0xa19   : > { %v2695_v45 = vld [vmem:[#allocation1] sm:$0xff] }
 0xa1a   : > { %2696 = vst [vmem:[#allocation1] ss:$9 sm:$0xff] %v6601_v16  ;;  %v2731_v59 = vsel %vm901_vm3, %v2695_v45, -inf  ;;  %v6618_v16 = vsel %vm359_vm2, -4.2949673e+09, %v2437_v7  ;;  %v2752_v45 = vperm.slane %v2715_v39, 7  ;;  %v2877_v7 = vsub.f32 %v6332_v50, %v2749_v33  ;;  %v2718_v33 = vpop.xlane.xlu1 %2717 }
 0xa1b   : > { %2697 = vst [vmem:[#allocation1 + $0x1] ss:$9 sm:$0xff] %v6605_v49  ;;  %2732 = vmax.xlane.f32.xlu0 %v2731_v59  ;;  %v6630_v59 = vsel %vm359_vm2, -4.2949673e+09, %v2439_v55  ;;  %v2879_v55 = vsub.f32 %v6342_v46, %v2751_v18  ;;  %v2753_v11 = vperm.slane %v2718_v33, 0  ;;  %v2754_v39 = vperm.slane %v2718_v33, 1  ;;  %v6648_v53 = vpop.eup %4749 }
 0xa1c   : > { %2698 = vst [vmem:[#allocation1 + $0x2] ss:$9 sm:$0xff] %v6612_v19  ;;  %v2880_v50 = vsub.f32 %v6347_v61, %v2752_v45  ;;  %v2945_v52 = vmul.f32 1.442695, %v2877_v7  ;;  %v2755_v46 = vperm.slane %v2718_v33, 2  ;;  %v2756_v61 = vperm.slane %v2718_v33, 3  ;;  %v6650_v18 = vpop.eup %4751 }
 0xa1d   : > { %2699 = vst [vmem:[#allocation1 + $0x3] ss:$9 sm:$0xff] %v6618_v16  ;;  %v2949_v20 = vmul.f32 1.442695, %v2879_v55  ;;  %v2757_v29 = vperm.slane %v2718_v33, 4  ;;  %v2881_v45 = vsub.f32 %v6359_v9, %v2753_v11  ;;  %v6655_v7 = vpop.eup %4753  ;;  %v2758_v1 = vperm.slane %v2718_v33, 5 }
 0xa1e   : > { %2700 = vst [vmem:[#allocation1 + $0x4] ss:$9 sm:$0xff] %v6624_v0  ;;  %v2951_v62 = vmul.f32 1.442695, %v2880_v50  ;;  %4757 = vpow2.f32 %v2945_v52  ;;  %v2882_v40 = vsub.f32 %v6355_v26, %v2754_v39  ;;  %v6659_v5 = vpop.eup %4755  ;;  %v2759_v55 = vperm.slane %v2718_v33, 6 }
 0xa1f   : > { %2701 = vst [vmem:[#allocation1 + $0x5] ss:$9 sm:$0xff] %v6630_v59  ;;  %4759 = vpow2.f32 %v2947_v21  ;;  %v2883_v10 = vsub.f32 %v6363_v58, %v2755_v46  ;;  %v2760_v9 = vperm.slane %v2718_v33, 7  ;;  %v2884_v31 = vsub.f32 %v6367_v30, %v2756_v61 }
 0xa20   : > { %2702 = vst [vmem:[#allocation1 + $0x6] ss:$9 sm:$0xff] %v6636_v44  ;;  %4761 = vpow2.f32 %v2949_v20  ;;  %v2885_v26 = vsub.f32 %v6373_v56, %v2757_v29  ;;  %v2953_v21 = vmul.f32 1.442695, %v2881_v45  ;;  %v2886_v58 = vsub.f32 %v6378_v32, %v2758_v1 }
 0xa21   : > { %2703 = vst [vmem:[#allocation1 + $0x7] ss:$9 sm:$0xff] %v6642_v14  ;;  %4763 = vpow2.f32 %v2951_v62  ;;  %v2955_v62 = vmul.f32 1.442695, %v2882_v40  ;;  %v2887_v30 = vsub.f32 %v6383_v27, %v2759_v55  ;;  %v2957_v33 = vmul.f32 1.442695, %v2883_v10 }
 0xa22   : > { %v2888_v39 = vsub.f32 %v6388_v42, %v2760_v9  ;;  %v2959_v56 = vmul.f32 1.442695, %v2884_v31  ;;  %4765 = vpow2.f32 %v2953_v21  ;;  %v2961_v46 = vmul.f32 1.442695, %v2885_v26 }
 0xa23   : > { %4767 = vpow2.f32 %v2955_v62  ;;  %v2965_v61 = vmul.f32 1.442695, %v2887_v30 }
 0xa24   : > { %v6663_v50 = vpop.eup %4757  ;;  %4769 = vpow2.f32 %v2957_v33  ;;  %v2967_v32 = vmul.f32 1.442695, %v2888_v39 }
 0xa25   : > { %v6667_v52 = vpop.eup %4759  ;;  %4771 = vpow2.f32 %v2959_v56 }
 0xa26   : > { %v6671_v20 = vpop.eup %4761  ;;  %4773 = vpow2.f32 %v2961_v46 }
 0xa27   : > { %v6675_v11 = vpop.eup %4763 }
 0xa28   : > { %v2704_v37 = vld [vmem:[#allocation1] sm:$0xff]  ;;  %v6681_v29 = vpop.eup %4765 }
 0xa29   : > { %3129 = vst [vmem:[#allocation1] ss:$9 sm:$0xff] %v6648_v53  ;;  %v2734_v15 = vsel %vm901_vm3, %v2704_v37, -inf  ;;  %v2963_v37 = vmul.f32 1.442695, %v2886_v58  ;;  %v6683_v27 = vpop.eup %4767 }
 0xa2a   : > { %3131 = vst [vmem:[#allocation1 + $0x1] ss:$9 sm:$0xff] %v6650_v18  ;;  %2735 = vmax.xlane.f32.xlu1 %v2734_v15  ;;  %v6687_v15 = vpop.eup %4769 }
 0xa2b   : > { %3133 = vst [vmem:[#allocation1 + $0x2] ss:$9 sm:$0xff] %v6655_v7  ;;  %4775 = vpow2.f32 %v2963_v37  ;;  %v6690_v1 = vpop.eup %4771 }
 0xa2c   : > { %3135 = vst [vmem:[#allocation1 + $0x3] ss:$9 sm:$0xff] %v6659_v5  ;;  %4777 = vpow2.f32 %v2965_v61  ;;  %v6693_v40 = vpop.eup %4773 }
 0xa2d   : > { %3137 = vst [vmem:[#allocation1 + $0x4] ss:$9 sm:$0xff] %v6663_v50  ;;  %4779 = vpow2.f32 %v2967_v32 }
 0xa2e   : > { %3139 = vst [vmem:[#allocation1 + $0x5] ss:$9 sm:$0xff] %v6667_v52 }
 0xa2f   : > { %3141 = vst [vmem:[#allocation1 + $0x6] ss:$9 sm:$0xff] %v6671_v20 }
 0xa30   : > { %3143 = vst [vmem:[#allocation1 + $0x7] ss:$9 sm:$0xff] %v6675_v11 }
 0xa31   : > { %7979 = vst [vmem:[#allocation99_spill] sm:$0xff] %v6690_v1  ;;  %v6696_v55 = vpop.eup %4775 }
 0xa32   : > { %7980 = vst [vmem:[#allocation100_spill] sm:$0xff] %v6693_v40  ;;  %v6699_v10 = vpop.eup %4777 }
 0xa33   : > { %7981 = vst [vmem:[#allocation101_spill] sm:$0xff] %v6696_v55  ;;  %v6702_v9 = vpop.eup %4779 }
 0xa34   : > { %7982 = vst [vmem:[#allocation102_spill] sm:$0xff] %v6699_v10 }
 0xa35   : > { %7983 = vst [vmem:[#allocation103_spill] sm:$0xff] %v6702_v9 }
 0xa37   : > { %v3144_v45 = vld [vmem:[#allocation1] sm:$0xff] }
 0xa38   : > { %3145 = vst [vmem:[#allocation1] ss:$9 sm:$0xff] %v6681_v29  ;;  %v3216_v42 = vsel %vm901_vm3, %v3144_v45, 0.0 }
 0xa39   : > { %3146 = vst [vmem:[#allocation1 + $0x1] ss:$9 sm:$0xff] %v6683_v27  ;;  %3217 = vadd.xlane.f32.xlu2 %v3216_v42 }
 0xa3a   : > { %3147 = vst [vmem:[#allocation1 + $0x2] ss:$9 sm:$0xff] %v6687_v15 }
 0xa3b   : > { %3148 = vst [vmem:[#allocation1 + $0x3] ss:$9 sm:$0xff] %v6690_v1 }
 0xa3c   : > { %3149 = vst [vmem:[#allocation1 + $0x4] ss:$9 sm:$0xff] %v6693_v40 }
 0xa3d   : > { %3150 = vst [vmem:[#allocation1 + $0x5] ss:$9 sm:$0xff] %v6696_v55 }
 0xa3e   : > { %3151 = vst [vmem:[#allocation1 + $0x6] ss:$9 sm:$0xff] %v6699_v10 }
 0xa3f   : > { %3152 = vst [vmem:[#allocation1 + $0x7] ss:$9 sm:$0xff] %v6702_v9 }
 0xa46   : > { %v3153_v31 = vld [vmem:[#allocation1] sm:$0xff] }
 0xa47   : > { %v3219_v26 = vsel %vm901_vm3, %v3153_v31, 0.0 }
 0xa48   : > { %3220 = vadd.xlane.f32.xlu0 %v3219_v26 }
 0xa51   : > { %v2721_v21 = vpop.xlane.xlu2 %2720 }
 0xa52   : > { %v2761_v58 = vperm.slane %v2721_v21, 0  ;;  %v2762_v62 = vperm.slane %v2721_v21, 1  ;;  %v2763_v30 = vperm.slane %v2721_v21, 2  ;;  %v2764_v33 = vperm.slane %v2721_v21, 3 }
 0xa53   : > { %v2765_v39 = vperm.slane %v2721_v21, 4  ;;  %v2766_v56 = vperm.slane %v2721_v21, 5  ;;  %v2767_v46 = vperm.slane %v2721_v21, 6  ;;  %v2768_v37 = vperm.slane %v2721_v21, 7 }
 0xa54   : > { %v2889_v61 = vsub.f32 %v6397_v60, %v2761_v58  ;;  %v2890_v32 = vsub.f32 %v6401_v54, %v2762_v62  ;;  %v2891_v45 = vsub.f32 %v6405_v24, %v2763_v30  ;;  %v2892_v42 = vsub.f32 %v6409_v22, %v2764_v33 }
 0xa55   : > { %v2893_v31 = vsub.f32 %v6414_v47, %v2765_v39  ;;  %v2894_v26 = vsub.f32 %v6419_v36, %v2766_v56  ;;  %v2895_v9 = vsub.f32 %v6424_v48, %v2767_v46  ;;  %v2896_v1 = vsub.f32 %v6429_v35, %v2768_v37 }
 0xa56   : > { %v2969_v10 = vmul.f32 1.442695, %v2889_v61  ;;  %v2971_v55 = vmul.f32 1.442695, %v2890_v32  ;;  %v2973_v40 = vmul.f32 1.442695, %v2891_v45 }
 0xa57   : > { %v2975_v21 = vmul.f32 1.442695, %v2892_v42  ;;  %v2977_v60 = vmul.f32 1.442695, %v2893_v31  ;;  %v2979_v54 = vmul.f32 1.442695, %v2894_v26 }
 0xa58   : > { %4781 = vpow2.f32 %v2969_v10  ;;  %v2981_v24 = vmul.f32 1.442695, %v2895_v9  ;;  %v2983_v22 = vmul.f32 1.442695, %v2896_v1 }
 0xa59   : > { %4783 = vpow2.f32 %v2971_v55 }
 0xa5a   : > { %4785 = vpow2.f32 %v2973_v40 }
 0xa5b   : > { %4787 = vpow2.f32 %v2975_v21 }
 0xa5c   : > { %4789 = vpow2.f32 %v2977_v60 }
 0xa5d   : > { %4791 = vpow2.f32 %v2979_v54 }
 0xa5e   : > { %v6715_v36 = vpop.eup %4781  ;;  %4793 = vpow2.f32 %v2981_v24 }
 0xa5f   : > { %v6717_v30 = vpop.eup %4783  ;;  %4795 = vpow2.f32 %v2983_v22  ;;  %3154 = vst [vmem:[#allocation1] ss:$9 sm:$0xff] %v6715_v36 }
 0xa60   : > { %v2724_v47 = vpop.xlane.xlu0 %2723  ;;  %v6720_v10 = vpop.eup %4785  ;;  %3155 = vst [vmem:[#allocation1 + $0x1] ss:$9 sm:$0xff] %v6717_v30 }
 0xa61   : > { %v2769_v48 = vperm.slane %v2724_v47, 0  ;;  %v2770_v58 = vperm.slane %v2724_v47, 1  ;;  %v2771_v62 = vperm.slane %v2724_v47, 2  ;;  %v2772_v35 = vperm.slane %v2724_v47, 3  ;;  %v6725_v56 = vpop.eup %4787  ;;  %3156 = vst [vmem:[#allocation1 + $0x2] ss:$9 sm:$0xff] %v6720_v10 }
 0xa62   : > { %v2773_v55 = vperm.slane %v2724_v47, 4  ;;  %v2774_v40 = vperm.slane %v2724_v47, 5  ;;  %v2775_v1 = vperm.slane %v2724_v47, 6  ;;  %v2776_v9 = vperm.slane %v2724_v47, 7  ;;  %v6731_v32 = vpop.eup %4789  ;;  %3157 = vst [vmem:[#allocation1 + $0x3] ss:$9 sm:$0xff] %v6725_v56 }
 0xa63   : > { %v2897_v33 = vsub.f32 %v6441_v2, %v2769_v48  ;;  %v2898_v39 = vsub.f32 %v6437_v3, %v2770_v58  ;;  %v2899_v46 = vsub.f32 %v6445_v28, %v2771_v62  ;;  %v2900_v37 = vsub.f32 %v6449_v34, %v2772_v35  ;;  %v6735_v31 = vpop.eup %4791  ;;  %3158 = vst [vmem:[#allocation1 + $0x4] ss:$9 sm:$0xff] %v6731_v32 }
 0xa64   : > { %v2901_v61 = vsub.f32 %v6454_v13, %v2773_v55  ;;  %v2902_v45 = vsub.f32 %v6459_v25, %v2774_v40  ;;  %v2903_v3 = vsub.f32 %v6464_v57, %v2775_v1  ;;  %v6739_v28 = vpop.eup %4793  ;;  %3159 = vst [vmem:[#allocation1 + $0x5] ss:$9 sm:$0xff] %v6735_v31  ;;  %v2904_v34 = vsub.f32 %v6470_v8, %v2776_v9 }
 0xa65   : > { %v2985_v42 = vmul.f32 1.442695, %v2897_v33  ;;  %v2987_v2 = vmul.f32 1.442695, %v2898_v39  ;;  %v2989_v26 = vmul.f32 1.442695, %v2899_v46  ;;  %v6743_v21 = vpop.eup %4795 }
 0xa66   : > { %v2991_v13 = vmul.f32 1.442695, %v2900_v37  ;;  %3160 = vst [vmem:[#allocation1 + $0x6] ss:$9 sm:$0xff] %v6739_v28  ;;  %v2993_v25 = vmul.f32 1.442695, %v2901_v61 }
 0xa67   : > { %4797 = vpow2.f32 %v2985_v42  ;;  %3161 = vst [vmem:[#allocation1 + $0x7] ss:$9 sm:$0xff] %v6743_v21  ;;  %v2995_v60 = vmul.f32 1.442695, %v2902_v45  ;;  %v2997_v57 = vmul.f32 1.442695, %v2903_v3 }
 0xa68   : > { %4799 = vpow2.f32 %v2987_v2  ;;  %v2999_v54 = vmul.f32 1.442695, %v2904_v34 }
 0xa69   : > { %4801 = vpow2.f32 %v2989_v26 }
 0xa6a   : > { %4803 = vpow2.f32 %v2991_v13 }
 0xa6b   : > { %4805 = vpow2.f32 %v2993_v25 }
 0xa6c   : > { %4807 = vpow2.f32 %v2995_v60 }
 0xa6d   : > { %v6747_v24 = vpop.eup %4797  ;;  %4809 = vpow2.f32 %v2997_v57 }
 0xa6e   : > { %v6749_v8 = vpop.eup %4799  ;;  %4811 = vpow2.f32 %v2999_v54  ;;  %v3162_v48 = vld [vmem:[#allocation1] sm:$0xff] }
 0xa6f   : > { %v2727_v22 = vpop.xlane.xlu1 %2726  ;;  %v6751_v47 = vpop.eup %4801  ;;  %3163 = vst [vmem:[#allocation1] ss:$9 sm:$0xff] %v6747_v24  ;;  %v3222_v57 = vsel %vm901_vm3, %v3162_v48, 0.0 }
 0xa70   : > { %v2777_v58 = vperm.slane %v2727_v22, 0  ;;  %v2778_v62 = vperm.slane %v2727_v22, 1  ;;  %v2779_v35 = vperm.slane %v2727_v22, 2  ;;  %v2780_v55 = vperm.slane %v2727_v22, 3  ;;  %v6753_v40 = vpop.eup %4803  ;;  %3164 = vst [vmem:[#allocation1 + $0x1] ss:$9 sm:$0xff] %v6749_v8  ;;  %3223 = vadd.xlane.f32.xlu1 %v3222_v57 }
 0xa71   : > { %v2781_v1 = vperm.slane %v2727_v22, 4  ;;  %v2782_v9 = vperm.slane %v2727_v22, 5  ;;  %v2783_v33 = vperm.slane %v2727_v22, 6  ;;  %v2784_v39 = vperm.slane %v2727_v22, 7  ;;  %v6756_v46 = vpop.eup %4805  ;;  %3165 = vst [vmem:[#allocation1 + $0x2] ss:$9 sm:$0xff] %v6751_v47 }
 0xa72   : > { %v2905_v37 = vsub.f32 %v6478_v43, %v2777_v58  ;;  %v2906_v61 = vsub.f32 %v6482_v6, %v2778_v62  ;;  %v2907_v45 = vsub.f32 %v6488_v63, %v2779_v35  ;;  %v2908_v42 = vsub.f32 %v6493_v12, %v2780_v55  ;;  %v6763_v2 = vpop.eup %4807  ;;  %3166 = vst [vmem:[#allocation1 + $0x3] ss:$9 sm:$0xff] %v6753_v40  ;;  %v7991_v57 = vld [vmem:[#allocation87_spill] sm:$0xff] }
 0xa73   : > { %v2909_v3 = vsub.f32 %v6498_v23, %v2781_v1  ;;  %v6767_v26 = vpop.eup %4809  ;;  %v2910_v34 = vsub.f32 %v6503_v4, %v2782_v9  ;;  %3167 = vst [vmem:[#allocation1 + $0x4] ss:$9 sm:$0xff] %v6756_v46  ;;  %v2911_v12 = vsub.f32 %v6508_v51, %v2783_v33  ;;  %v2912_v63 = vsub.f32 %v6513_v41, %v2784_v39 }
 0xa74   : > { %v3001_v13 = vmul.f32 1.442695, %v2905_v37  ;;  %v3003_v43 = vmul.f32 1.442695, %v2906_v61  ;;  %v6771_v25 = vpop.eup %4811  ;;  %v3005_v6 = vmul.f32 1.442695, %v2907_v45 }
 0xa75   : > { %3168 = vst [vmem:[#allocation1 + $0x5] ss:$9 sm:$0xff] %v6763_v2  ;;  %v3007_v23 = vmul.f32 1.442695, %v2908_v42  ;;  %v3009_v60 = vmul.f32 1.442695, %v2909_v3 }
 0xa76   : > { %3169 = vst [vmem:[#allocation1 + $0x6] ss:$9 sm:$0xff] %v6767_v26  ;;  %4813 = vpow2.f32 %v3001_v13  ;;  %v3011_v4 = vmul.f32 1.442695, %v2910_v34  ;;  %v3013_v54 = vmul.f32 1.442695, %v2911_v12 }
 0xa77   : > { %3170 = vst [vmem:[#allocation1 + $0x7] ss:$9 sm:$0xff] %v6771_v25  ;;  %4815 = vpow2.f32 %v3003_v43  ;;  %v3015_v51 = vmul.f32 1.442695, %v2912_v63  ;;  %v7986_v13 = vld [vmem:[#allocation16_spill] sm:$0xff]  ;;  %v7987_v12 = vld [vmem:[#allocation85_spill] sm:$0xff] }
 0xa78   : > { %4817 = vpow2.f32 %v3005_v6 }
 0xa79   : > { %4819 = vpow2.f32 %v3007_v23  ;;  %v7989_v23 = vld [vmem:[#allocation86_spill] sm:$0xff] }
 0xa7a   : > { %4821 = vpow2.f32 %v3009_v60 }
 0xa7b   : > { %4823 = vpow2.f32 %v3011_v4 }
 0xa7c   : > { %v6780_v22 = vpop.eup %4813  ;;  %4825 = vpow2.f32 %v3013_v54 }
 0xa7d   : > { %v6782_v41 = vpop.eup %4815  ;;  %4827 = vpow2.f32 %v3015_v51 }
 0xa7e   : > { %v2730_v58 = vpop.xlane.xlu2 %2729  ;;  %v6784_v62 = vpop.eup %4817  ;;  %v3171_v35 = vld [vmem:[#allocation1] sm:$0xff] }
 0xa7f   : > { %v2785_v55 = vperm.slane %v2730_v58, 0  ;;  %v2786_v1 = vperm.slane %v2730_v58, 1  ;;  %v2787_v48 = vperm.slane %v2730_v58, 2  ;;  %v2788_v9 = vperm.slane %v2730_v58, 3  ;;  %v6786_v33 = vpop.eup %4819  ;;  %3172 = vst [vmem:[#allocation1] ss:$9 sm:$0xff] %v6780_v22 }
 0xa80   : > { %7984 = vst [vmem:[#allocation104_spill] sm:$0xff] %v6786_v33  ;;  %v2789_v39 = vperm.slane %v2730_v58, 4  ;;  %v2790_v37 = vperm.slane %v2730_v58, 5  ;;  %v2791_v61 = vperm.slane %v2730_v58, 6  ;;  %v2792_v45 = vperm.slane %v2730_v58, 7  ;;  %v6789_v42 = vpop.eup %4821 }
 0xa81   : > { %7985 = vst [vmem:[#allocation105_spill] sm:$0xff] %v6789_v42  ;;  %v2913_v3 = vsub.f32 %v6519_v38, %v2785_v55  ;;  %v2914_v34 = vsub.f32 %v6523_v17, %v2786_v1  ;;  %v2915_v43 = vsub.f32 %v7986_v13, %v2787_v48  ;;  %v2916_v6 = vsub.f32 %v7987_v12, %v2788_v9  ;;  %v6796_v63 = vpop.eup %4823  ;;  %v7993_v17 = vld [vmem:[#allocation88_spill] sm:$0xff]  ;;  %v7994_v48 = vld [vmem:[#allocation89_spill] sm:$0xff] }
 0xa82   : > { %3173 = vst [vmem:[#allocation1 + $0x1] ss:$9 sm:$0xff] %v6782_v41  ;;  %v2917_v60 = vsub.f32 %v7989_v23, %v2789_v39  ;;  %v6800_v4 = vpop.eup %4825  ;;  %v2918_v54 = vsub.f32 %v7991_v57, %v2790_v37  ;;  %v2919_v55 = vsub.f32 %v7993_v17, %v2791_v61  ;;  %v2920_v9 = vsub.f32 %v7994_v48, %v2792_v45 }
 0xa83   : > { %7988 = vst [vmem:[#allocation16_spill] sm:$0xff] %v6796_v63  ;;  %v3017_v51 = vmul.f32 1.442695, %v2913_v3  ;;  %v3019_v38 = vmul.f32 1.442695, %v2914_v34  ;;  %v6804_v58 = vpop.eup %4827  ;;  %v3225_v3 = vsel %vm901_vm3, %v3171_v35, 0.0 }
 0xa84   : > { %3174 = vst [vmem:[#allocation1 + $0x2] ss:$9 sm:$0xff] %v6784_v62  ;;  %v3021_v1 = vmul.f32 1.442695, %v2915_v43  ;;  %v3023_v39 = vmul.f32 1.442695, %v2916_v6  ;;  %3226 = vadd.xlane.f32.xlu2 %v3225_v3 }
 0xa85   : > { %7990 = vst [vmem:[#allocation85_spill] sm:$0xff] %v6800_v4  ;;  %4829 = vpow2.f32 %v3017_v51  ;;  %v3025_v13 = vmul.f32 1.442695, %v2917_v60  ;;  %v3027_v37 = vmul.f32 1.442695, %v2918_v54  ;;  %v7999_v3 = vld [vmem:[#allocation92_spill] sm:$0xff] }
 0xa86   : > { %3175 = vst [vmem:[#allocation1 + $0x3] ss:$9 sm:$0xff] %v6786_v33  ;;  %4831 = vpow2.f32 %v3019_v38  ;;  %v3029_v34 = vmul.f32 1.442695, %v2919_v55  ;;  %v3031_v61 = vmul.f32 1.442695, %v2920_v9 }
 0xa87   : > { %7992 = vst [vmem:[#allocation86_spill] sm:$0xff] %v6804_v58  ;;  %4833 = vpow2.f32 %v3021_v1  ;;  %v7997_v9 = vld [vmem:[#allocation90_spill] sm:$0xff] }
 0xa88   : > { %3176 = vst [vmem:[#allocation1 + $0x4] ss:$9 sm:$0xff] %v6789_v42  ;;  %4835 = vpow2.f32 %v3023_v39 }
 0xa89   : > { %3177 = vst [vmem:[#allocation1 + $0x5] ss:$9 sm:$0xff] %v6796_v63  ;;  %4837 = vpow2.f32 %v3025_v13  ;;  %v7998_v13 = vld [vmem:[#allocation91_spill] sm:$0xff] }
 0xa8a   : > { %3178 = vst [vmem:[#allocation1 + $0x6] ss:$9 sm:$0xff] %v6800_v4  ;;  %4839 = vpow2.f32 %v3027_v37 }
 0xa8b   : > { %3179 = vst [vmem:[#allocation1 + $0x7] ss:$9 sm:$0xff] %v6804_v58  ;;  %v6813_v43 = vpop.eup %4829  ;;  %4841 = vpow2.f32 %v3029_v34 }
 0xa8c   : > { %7995 = vst [vmem:[#allocation87_spill] sm:$0xff] %v6813_v43  ;;  %v6815_v45 = vpop.eup %4831  ;;  %4843 = vpow2.f32 %v3031_v61  ;;  %v8000_v61 = vld [vmem:[#allocation93_spill] sm:$0xff] }
 0xa8d   : > { %7996 = vst [vmem:[#allocation88_spill] sm:$0xff] %v6815_v45  ;;  %v6817_v6 = vpop.eup %4833 }
 0xa8e   : > { %v2733_v12 = vpop.xlane.xlu0 %2732  ;;  %v6819_v51 = vpop.eup %4835 }
 0xa8f   : > { %v2793_v60 = vperm.slane %v2733_v12, 0  ;;  %v2794_v57 = vperm.slane %v2733_v12, 1  ;;  %v2795_v35 = vperm.slane %v2733_v12, 2  ;;  %v2796_v54 = vperm.slane %v2733_v12, 3  ;;  %v6822_v48 = vpop.eup %4837 }
 0xa90   : > { %v2797_v38 = vperm.slane %v2733_v12, 4  ;;  %v2798_v17 = vperm.slane %v2733_v12, 5  ;;  %v2799_v55 = vperm.slane %v2733_v12, 6  ;;  %v2800_v1 = vperm.slane %v2733_v12, 7  ;;  %v6829_v4 = vpop.eup %4839  ;;  %v8002_v12 = vld [vmem:[#allocation95_spill] sm:$0xff] }
 0xa91   : > { %v2921_v39 = vsub.f32 %v7997_v9, %v2793_v60  ;;  %v2922_v37 = vsub.f32 %v7998_v13, %v2794_v57  ;;  %v2923_v34 = vsub.f32 %v7999_v3, %v2795_v35  ;;  %v2924_v58 = vsub.f32 %v8000_v61, %v2796_v54  ;;  %v6833_v42 = vpop.eup %4841  ;;  %v8004_v57 = vld [vmem:[#allocation96_spill] sm:$0xff]  ;;  %v8005_v13 = vld [vmem:[#allocation97_spill] sm:$0xff] }
 0xa92   : > { %v3180_v23 = vld [vmem:[#allocation1] sm:$0xff]  ;;  %v6837_v9 = vpop.eup %4843  ;;  %v2927_v35 = vsub.f32 %v8004_v57, %v2799_v55  ;;  %v2928_v3 = vsub.f32 %v8005_v13, %v2800_v1 }
 0xa93   : > { %3181 = vst [vmem:[#allocation1] ss:$9 sm:$0xff] %v6813_v43  ;;  %v8001_v43 = vld [vmem:[#allocation94_spill] sm:$0xff]  ;;  %v3033_v33 = vmul.f32 1.442695, %v2921_v39  ;;  %v3228_v39 = vsel %vm901_vm3, %v3180_v23, 0.0 }
 0xa94   : > { %3182 = vst [vmem:[#allocation1 + $0x1] ss:$9 sm:$0xff] %v6815_v45  ;;  %v2925_v63 = vsub.f32 %v8001_v43, %v2797_v38  ;;  %v2926_v45 = vsub.f32 %v8002_v12, %v2798_v17  ;;  %v3035_v60 = vmul.f32 1.442695, %v2922_v37  ;;  %v3037_v54 = vmul.f32 1.442695, %v2923_v34  ;;  %3229 = vadd.xlane.f32.xlu0 %v3228_v39 }
 0xa95   : > { %3183 = vst [vmem:[#allocation1 + $0x2] ss:$9 sm:$0xff] %v6817_v6  ;;  %v3039_v43 = vmul.f32 1.442695, %v2924_v58  ;;  %4845 = vpow2.f32 %v3033_v33  ;;  %v3045_v37 = vmul.f32 1.442695, %v2927_v35 }
 0xa96   : > { %3184 = vst [vmem:[#allocation1 + $0x3] ss:$9 sm:$0xff] %v6819_v51  ;;  %v3041_v38 = vmul.f32 1.442695, %v2925_v63  ;;  %4847 = vpow2.f32 %v3035_v60  ;;  %v3043_v17 = vmul.f32 1.442695, %v2926_v45 }
 0xa97   : > { %8003 = vst [vmem:[#allocation89_spill] sm:$0xff] %v6837_v9  ;;  %4849 = vpow2.f32 %v3037_v54  ;;  %v3047_v55 = vmul.f32 1.442695, %v2928_v3 }
 0xa98   : > { %3185 = vst [vmem:[#allocation1 + $0x4] ss:$9 sm:$0xff] %v6822_v48  ;;  %4851 = vpow2.f32 %v3039_v43  ;;  %v8008_v43 = vld [vmem:[#allocation98_spill] sm:$0xff] }
 0xa99   : > { %3186 = vst [vmem:[#allocation1 + $0x5] ss:$9 sm:$0xff] %v6829_v4  ;;  %4853 = vpow2.f32 %v3041_v38 }
 0xa9a   : > { %3187 = vst [vmem:[#allocation1 + $0x6] ss:$9 sm:$0xff] %v6833_v42  ;;  %4855 = vpow2.f32 %v3043_v17 }
 0xa9b   : > { %3188 = vst [vmem:[#allocation1 + $0x7] ss:$9 sm:$0xff] %v6837_v9  ;;  %v6846_v34 = vpop.eup %4845  ;;  %4857 = vpow2.f32 %v3045_v37 }
 0xa9c   : > { %8006 = vst [vmem:[#allocation90_spill] sm:$0xff] %v6846_v34  ;;  %v6848_v58 = vpop.eup %4847  ;;  %4859 = vpow2.f32 %v3047_v55 }
 0xa9d   : > { %8007 = vst [vmem:[#allocation91_spill] sm:$0xff] %v6848_v58  ;;  %v2736_v33 = vpop.xlane.xlu1 %2735  ;;  %v6850_v63 = vpop.eup %4849 }
 0xa9e   : > { %v2801_v45 = vperm.slane %v2736_v33, 0  ;;  %v2802_v61 = vperm.slane %v2736_v33, 1  ;;  %v2803_v23 = vperm.slane %v2736_v33, 2  ;;  %v2804_v12 = vperm.slane %v2736_v33, 3  ;;  %v6852_v60 = vpop.eup %4851 }
 0xa9f   : > { %v2805_v57 = vperm.slane %v2736_v33, 4  ;;  %v2806_v35 = vperm.slane %v2736_v33, 5  ;;  %v2807_v54 = vperm.slane %v2736_v33, 6  ;;  %v2808_v13 = vperm.slane %v2736_v33, 7  ;;  %v6855_v3 = vpop.eup %4853 }
 0xaa0   : > { %v2929_v38 = vsub.f32 %v8008_v43, %v2801_v45  ;;  %v2930_v17 = vsub.f32 %v6605_v49, %v2802_v61  ;;  %v2931_v39 = vsub.f32 %v6612_v19, %v2803_v23  ;;  %v2932_v37 = vsub.f32 %v6618_v16, %v2804_v12  ;;  %v6862_v55 = vpop.eup %4855 }
 0xaa1   : > { %v6866_v9 = vpop.eup %4857  ;;  %v2934_v33 = vsub.f32 %v6630_v59, %v2806_v35  ;;  %v2935_v19 = vsub.f32 %v6636_v44, %v2807_v54  ;;  %v2936_v49 = vsub.f32 %v6642_v14, %v2808_v13 }
 0xaa2   : > { %v3189_v1 = vld [vmem:[#allocation1] sm:$0xff]  ;;  %v3051_v45 = vmul.f32 1.442695, %v2930_v17  ;;  %v6870_v43 = vpop.eup %4859  ;;  %v3053_v16 = vmul.f32 1.442695, %v2931_v39 }
 0xaa3   : > { %3190 = vst [vmem:[#allocation1] ss:$9 sm:$0xff] %v6846_v34  ;;  %v2933_v34 = vsub.f32 %v6624_v0, %v2805_v57  ;;  %v3055_v0 = vmul.f32 1.442695, %v2932_v37  ;;  %v3059_v59 = vmul.f32 1.442695, %v2934_v33 }
 0xaa4   : > { %3191 = vst [vmem:[#allocation1 + $0x1] ss:$9 sm:$0xff] %v6848_v58  ;;  %v3049_v58 = vmul.f32 1.442695, %v2929_v38  ;;  %v3231_v23 = vsel %vm901_vm3, %v3189_v1, 0.0 }
 0xaa5   : > { %3192 = vst [vmem:[#allocation1 + $0x2] ss:$9 sm:$0xff] %v6850_v63  ;;  %v3057_v61 = vmul.f32 1.442695, %v2933_v34  ;;  %v3061_v12 = vmul.f32 1.442695, %v2935_v19  ;;  %3232 = vadd.xlane.f32.xlu1 %v3231_v23 }
 0xaa6   : > { %3193 = vst [vmem:[#allocation1 + $0x3] ss:$9 sm:$0xff] %v6852_v60  ;;  %4861 = vpow2.f32 %v3049_v58  ;;  %v3063_v44 = vmul.f32 1.442695, %v2936_v49 }
 0xaa7   : > { %3194 = vst [vmem:[#allocation1 + $0x4] ss:$9 sm:$0xff] %v6855_v3  ;;  %4863 = vpow2.f32 %v3051_v45 }
 0xaa8   : > { %3195 = vst [vmem:[#allocation1 + $0x5] ss:$9 sm:$0xff] %v6862_v55  ;;  %4865 = vpow2.f32 %v3053_v16 }
 0xaa9   : > { %3196 = vst [vmem:[#allocation1 + $0x6] ss:$9 sm:$0xff] %v6866_v9  ;;  %4867 = vpow2.f32 %v3055_v0 }
 0xaaa   : > { %3197 = vst [vmem:[#allocation1 + $0x7] ss:$9 sm:$0xff] %v6870_v43  ;;  %4869 = vpow2.f32 %v3057_v61 }
 0xaab   : > { %4871 = vpow2.f32 %v3059_v59 }
 0xaac   : > { %v6879_v57 = vpop.eup %4861  ;;  %4873 = vpow2.f32 %v3061_v12  ;;  %v3218_v34 = vpop.xlane.xlu2 %3217 }
 0xaad   : > { %v6881_v14 = vpop.eup %4863  ;;  %4875 = vpow2.f32 %v3063_v44 }
 0xaae   : > { %v6883_v58 = vpop.eup %4865  ;;  %4877 = vrcp.f32 %v3218_v34 }
 0xaaf   : > { %v6885_v54 = vpop.eup %4867 }
 0xab0   : > { %v6889_v13 = vpop.eup %4869 }
 0xab1   : > { %v3198_v35 = vld [vmem:[#allocation1] sm:$0xff]  ;;  %v6892_v38 = vpop.eup %4871 }
 0xab2   : > { %3199 = vst [vmem:[#allocation1] ss:$9 sm:$0xff] %v6879_v57  ;;  %v3234_v1 = vsel %vm901_vm3, %v3198_v35, 0.0  ;;  %v6895_v17 = vpop.eup %4873 }
 0xab3   : > { %3200 = vst [vmem:[#allocation1 + $0x1] ss:$9 sm:$0xff] %v6881_v14  ;;  %3235 = vadd.xlane.f32.xlu2 %v3234_v1  ;;  %v6898_v39 = vpop.eup %4875  ;;  %v8011_v1 = vld [vmem:[#allocation81_spill] sm:$0xff] }
 0xab4   : > { %3201 = vst [vmem:[#allocation1 + $0x2] ss:$9 sm:$0xff] %v6883_v58  ;;  %v4878_v37 = vpop.eup %4877 }
 0xab5   : > { %8009 = vst [vmem:[#allocation92_spill] sm:$0xff] %v6895_v17  ;;  %v3256_v33 = vperm.slane %v4878_v37, 0  ;;  %v3257_v45 = vperm.slane %v4878_v37, 1  ;;  %v3258_v19 = vperm.slane %v4878_v37, 2  ;;  %v3259_v16 = vperm.slane %v4878_v37, 3 }
 0xab6   : > { %3202 = vst [vmem:[#allocation1 + $0x3] ss:$9 sm:$0xff] %v6885_v54  ;;  %v3260_v49 = vperm.slane %v4878_v37, 4  ;;  %v3261_v23 = vperm.slane %v4878_v37, 5  ;;  %v3262_v44 = vperm.slane %v4878_v37, 6 }
 0xab7   : > { %8010 = vst [vmem:[#allocation93_spill] sm:$0xff] %v6898_v39  ;;  %v6905_v0 = vmul.f32 %v6648_v53, %v3256_v33  ;;  %v6908_v12 = vmul.f32 %v6650_v18, %v3257_v45  ;;  %v6911_v34 = vmul.f32 %v6655_v7, %v3258_v19  ;;  %v3263_v53 = vperm.slane %v4878_v37, 7  ;;  %v8015_v37 = vld [vmem:[#allocation83_spill] sm:$0xff] }
 0xab8   : > { %3203 = vst [vmem:[#allocation1 + $0x4] ss:$9 sm:$0xff] %v6889_v13  ;;  %v6918_v33 = vmul.f32 %v6659_v5, %v3259_v16  ;;  %v6922_v18 = vmul.f32 %v6663_v50, %v3260_v49  ;;  %v6926_v7 = vmul.f32 %v6667_v52, %v3261_v23  ;;  %v8014_v52 = vld [vmem:[#allocation79_spill] sm:$0xff]  ;;  %v8017_v16 = vld [vmem:[#allocation77_spill] sm:$0xff] }
 0xab9   : > { %3204 = vst [vmem:[#allocation1 + $0x5] ss:$9 sm:$0xff] %v6892_v38  ;;  %v6935_v5 = vmul.f32 %v6675_v11, %v3263_v53  ;;  %v4566_v45 = vpack.i.bf16 %v8015_v37, %v8014_v52 }
 0xaba   : > { %3205 = vst [vmem:[#allocation1 + $0x6] ss:$9 sm:$0xff] %v6895_v17 }
 0xabb   : > { %3206 = vst [vmem:[#allocation1 + $0x7] ss:$9 sm:$0xff] %v6898_v39  ;;  %v3221_v61 = vpop.xlane.xlu0 %3220  ;;  %v8012_v39 = vld [vmem:[#allocation80_spill] sm:$0xff] }
 0xabc   : > { %4879 = vrcp.f32 %v3221_v61  ;;  %v4561_v17 = vpack.i.bf16 %v8012_v39, %v8011_v1  ;;  %v6931_v39 = vmul.f32 %v6671_v20, %v3262_v44 }
 0xabe   : > { %4562 = vrot.lane.b32.xlu1 %v4561_v17, %s8013_s26  ;;  %v8016_v17 = vld [vmem:[#allocation78_spill] sm:$0xff] }
 0xabf   : > { %v4576_v20 = vpack.i.bf16 %v8017_v16, %v8016_v17  ;;  %v8021_v16 = vld [vmem:[#allocation101_spill] sm:$0xff] }
 0xac2   : > { %v3207_v59 = vld [vmem:[#allocation1] sm:$0xff]  ;;  %v4880_v50 = vpop.eup %4879 }
 0xac3   : > { %3464 = vst [vmem:[#allocation1] ss:$9 sm:$0xff] %v6905_v0  ;;  %v3237_v35 = vsel %vm901_vm3, %v3207_v59, 0.0  ;;  %v3264_v19 = vperm.slane %v4880_v50, 0  ;;  %v3265_v49 = vperm.slane %v4880_v50, 1  ;;  %v3266_v61 = vperm.slane %v4880_v50, 2 }
 0xac4   : > { %3466 = vst [vmem:[#allocation1 + $0x1] ss:$9 sm:$0xff] %v6908_v12  ;;  %3238 = vadd.xlane.f32.xlu0 %v3237_v35  ;;  %v3267_v11 = vperm.slane %v4880_v50, 3  ;;  %v3268_v59 = vperm.slane %v4880_v50, 4  ;;  %v3269_v35 = vperm.slane %v4880_v50, 5  ;;  %v3270_v53 = vperm.slane %v4880_v50, 6 }
 0xac5   : > { %3468 = vst [vmem:[#allocation1 + $0x2] ss:$9 sm:$0xff] %v6911_v34  ;;  %v6947_v23 = vmul.f32 %v6681_v29, %v3264_v19  ;;  %v6952_v1 = vmul.f32 %v6683_v27, %v3265_v49  ;;  %v6955_v52 = vmul.f32 %v6687_v15, %v3266_v61  ;;  %v3271_v37 = vperm.slane %v4880_v50, 7  ;;  %v8019_v29 = vld [vmem:[#allocation100_spill] sm:$0xff]  ;;  %v8023_v15 = vld [vmem:[#allocation82_spill] sm:$0xff] }
 0xac6   : > { %3470 = vst [vmem:[#allocation1 + $0x3] ss:$9 sm:$0xff] %v6918_v33  ;;  %4577 = vrot.lane.b32.xlu1 %v4576_v20, %s8013_s26  ;;  %v6963_v19 = vmul.f32 %v8019_v29, %v3268_v59  ;;  %v6967_v27 = vmul.f32 %v8021_v16, %v3269_v35  ;;  %v8024_v20 = vld [vmem:[#allocation84_spill] sm:$0xff]  ;;  %v8025_v61 = vld [vmem:[#allocation102_spill] sm:$0xff] }
 0xac7   : > { %3472 = vst [vmem:[#allocation1 + $0x4] ss:$9 sm:$0xff] %v6922_v18  ;;  %v4571_v49 = vpack.i.bf16 %v8024_v20, %v8023_v15  ;;  %v6973_v50 = vmul.f32 %v8025_v61, %v3270_v53 }
 0xac8   : > { %3474 = vst [vmem:[#allocation1 + $0x5] ss:$9 sm:$0xff] %v6926_v7 }
 0xac9   : > { %3476 = vst [vmem:[#allocation1 + $0x6] ss:$9 sm:$0xff] %v6931_v39 }
 0xaca   : > { %3478 = vst [vmem:[#allocation1 + $0x7] ss:$9 sm:$0xff] %v6935_v5 }
 0xacb   : > { %4567 = vrot.lane.b32.xlu2 %v4566_v45, %s8013_s26  ;;  %v8018_v45 = vld [vmem:[#allocation99_spill] sm:$0xff]  ;;  %8020 = vst [vmem:[#allocation94_spill] sm:$0xff] %v6963_v19 }
 0xacc   : > { %v6959_v17 = vmul.f32 %v8018_v45, %v3267_v11  ;;  %8022 = vst [vmem:[#allocation95_spill] sm:$0xff] %v6967_v27  ;;  %v8027_v11 = vld [vmem:[#allocation103_spill] sm:$0xff] }
 0xacd   : > { %8026 = vst [vmem:[#allocation96_spill] sm:$0xff] %v6973_v50  ;;  %v6977_v45 = vmul.f32 %v8027_v11, %v3271_v37 }
 0xacf   : > { %8028 = vst [vmem:[#allocation97_spill] sm:$0xff] %v6977_v45 }
 0xad1   : > { %v6949_v44 = vld [vmem:[#allocation1] sm:$0xff] }
 0xad2   : > { %3480 = vst [vmem:[#allocation1] ss:$9 sm:$0xff] %v6947_v23 }
 0xad3   : > { %3481 = vst [vmem:[#allocation1 + $0x1] ss:$9 sm:$0xff] %v6952_v1 }
 0xad4   : > { %3482 = vst [vmem:[#allocation1 + $0x2] ss:$9 sm:$0xff] %v6955_v52 }
 0xad5   : > { %3483 = vst [vmem:[#allocation1 + $0x3] ss:$9 sm:$0xff] %v6959_v17 }
 0xad6   : > { %3484 = vst [vmem:[#allocation1 + $0x4] ss:$9 sm:$0xff] %v6963_v19 }
 0xad7   : > { %3485 = vst [vmem:[#allocation1 + $0x5] ss:$9 sm:$0xff] %v6967_v27 }
 0xad8   : > { %3486 = vst [vmem:[#allocation1 + $0x6] ss:$9 sm:$0xff] %v6973_v50  ;;  %4572 = vrot.lane.b32.xlu0 %v4571_v49, %s8013_s26 }
 0xad9   : > { %3487 = vst [vmem:[#allocation1 + $0x7] ss:$9 sm:$0xff] %v6977_v45 }
 0xae0   : > { %v6992_v45 = vld [vmem:[#allocation1] sm:$0xff] }
 0xae3   : > { %v3224_v59 = vpop.xlane.xlu1 %3223 }
 0xae4   : > { %4881 = vrcp.f32 %v3224_v59 }
 0xaea   : > { %v4882_v35 = vpop.eup %4881 }
 0xaeb   : > { %v3272_v29 = vperm.slane %v4882_v35, 0  ;;  %v3273_v16 = vperm.slane %v4882_v35, 1  ;;  %v3274_v53 = vperm.slane %v4882_v35, 2  ;;  %v3275_v15 = vperm.slane %v4882_v35, 3 }
 0xaec   : > { %v3276_v20 = vperm.slane %v4882_v35, 4  ;;  %v3277_v61 = vperm.slane %v4882_v35, 5  ;;  %v3278_v19 = vperm.slane %v4882_v35, 6  ;;  %v3279_v59 = vperm.slane %v4882_v35, 7 }
 0xaed   : > { %v6984_v37 = vmul.f32 %v6715_v36, %v3272_v29  ;;  %v6987_v11 = vmul.f32 %v6717_v30, %v3273_v16  ;;  %v6990_v49 = vmul.f32 %v6720_v10, %v3274_v53  ;;  %v6995_v50 = vmul.f32 %v6725_v56, %v3275_v15 }
 0xaee   : > { %v6998_v27 = vmul.f32 %v6731_v32, %v3276_v20  ;;  %v7002_v36 = vmul.f32 %v6735_v31, %v3277_v61  ;;  %v7006_v30 = vmul.f32 %v6739_v28, %v3278_v19  ;;  %v7010_v10 = vmul.f32 %v6743_v21, %v3279_v59 }
 0xaef   : > { %3538 = vst [vmem:[#allocation1] ss:$9 sm:$0xff] %v6984_v37 }
 0xaf0   : > { %3540 = vst [vmem:[#allocation1 + $0x1] ss:$9 sm:$0xff] %v6987_v11 }
 0xaf1   : > { %3542 = vst [vmem:[#allocation1 + $0x2] ss:$9 sm:$0xff] %v6990_v49 }
 0xaf2   : > { %8029 = vst [vmem:[#allocation98_spill] sm:$0xff] %v7010_v10 }
 0xaf3   : > { %3544 = vst [vmem:[#allocation1 + $0x3] ss:$9 sm:$0xff] %v6995_v50 }
 0xaf4   : > { %3546 = vst [vmem:[#allocation1 + $0x4] ss:$9 sm:$0xff] %v6998_v27 }
 0xaf5   : > { %3548 = vst [vmem:[#allocation1 + $0x5] ss:$9 sm:$0xff] %v7002_v36 }
 0xaf6   : > { %3550 = vst [vmem:[#allocation1 + $0x6] ss:$9 sm:$0xff] %v7006_v30 }
 0xaf7   : > { %v3227_v56 = vpop.xlane.xlu2 %3226  ;;  %3552 = vst [vmem:[#allocation1 + $0x7] ss:$9 sm:$0xff] %v7010_v10 }
 0xaf8   : > { %4883 = vrcp.f32 %v3227_v56 }
 0xafe   : > { %v4884_v32 = vpop.eup %4883  ;;  %v7026_v61 = vld [vmem:[#allocation1] sm:$0xff] }
 0xaff   : > { %v3280_v31 = vperm.slane %v4884_v32, 0  ;;  %v3281_v28 = vperm.slane %v4884_v32, 1  ;;  %v3282_v19 = vperm.slane %v4884_v32, 2  ;;  %v3283_v35 = vperm.slane %v4884_v32, 3 }
 0xb00   : > { %v3284_v29 = vperm.slane %v4884_v32, 4  ;;  %v3285_v21 = vperm.slane %v4884_v32, 5  ;;  %v3286_v16 = vperm.slane %v4884_v32, 6  ;;  %v3287_v59 = vperm.slane %v4884_v32, 7 }
 0xb01   : > { %v7018_v53 = vmul.f32 %v6747_v24, %v3280_v31  ;;  %v7021_v15 = vmul.f32 %v6749_v8, %v3281_v28  ;;  %v7024_v20 = vmul.f32 %v6751_v47, %v3282_v19  ;;  %v7029_v56 = vmul.f32 %v6753_v40, %v3283_v35 }
 0xb02   : > { %v7032_v10 = vmul.f32 %v6756_v46, %v3284_v29  ;;  %v7036_v24 = vmul.f32 %v6763_v2, %v3285_v21  ;;  %v7040_v8 = vmul.f32 %v6767_v26, %v3286_v16  ;;  %v7044_v47 = vmul.f32 %v6771_v25, %v3287_v59 }
 0xb03   : > { %3554 = vst [vmem:[#allocation1] ss:$9 sm:$0xff] %v7018_v53 }
 0xb04   : > { %8030 = vst [vmem:[#allocation81_spill] sm:$0xff] %v7032_v10 }
 0xb05   : > { %8031 = vst [vmem:[#allocation80_spill] sm:$0xff] %v7036_v24 }
 0xb06   : > { %3555 = vst [vmem:[#allocation1 + $0x1] ss:$9 sm:$0xff] %v7021_v15 }
 0xb07   : > { %8032 = vst [vmem:[#allocation79_spill] sm:$0xff] %v7040_v8  ;;  %v3230_v40 = vpop.xlane.xlu0 %3229 }
 0xb08   : > { %3556 = vst [vmem:[#allocation1 + $0x2] ss:$9 sm:$0xff] %v7024_v20  ;;  %4885 = vrcp.f32 %v3230_v40  ;;  %v8035_v40 = vld [vmem:[#allocation104_spill] sm:$0xff] }
 0xb09   : > { %8033 = vst [vmem:[#allocation83_spill] sm:$0xff] %v7044_v47 }
 0xb0a   : > { %3557 = vst [vmem:[#allocation1 + $0x3] ss:$9 sm:$0xff] %v7029_v56 }
 0xb0b   : > { %3558 = vst [vmem:[#allocation1 + $0x4] ss:$9 sm:$0xff] %v7032_v10  ;;  %v8039_v10 = vld [vmem:[#allocation16_spill] sm:$0xff] }
 0xb0c   : > { %3559 = vst [vmem:[#allocation1 + $0x5] ss:$9 sm:$0xff] %v7036_v24 }
 0xb0d   : > { %3560 = vst [vmem:[#allocation1 + $0x6] ss:$9 sm:$0xff] %v7040_v8  ;;  %v8037_v8 = vld [vmem:[#allocation105_spill] sm:$0xff] }
 0xb0e   : > { %3561 = vst [vmem:[#allocation1 + $0x7] ss:$9 sm:$0xff] %v7044_v47  ;;  %v4886_v46 = vpop.eup %4885 }
 0xb0f   : > { %v3288_v2 = vperm.slane %v4886_v46, 0  ;;  %v3289_v26 = vperm.slane %v4886_v46, 1  ;;  %v3290_v32 = vperm.slane %v4886_v46, 2  ;;  %v3291_v31 = vperm.slane %v4886_v46, 3 }
 0xb10   : > { %v3292_v28 = vperm.slane %v4886_v46, 4  ;;  %v3293_v25 = vperm.slane %v4886_v46, 5  ;;  %v3294_v19 = vperm.slane %v4886_v46, 6  ;;  %v3295_v59 = vperm.slane %v4886_v46, 7 }
 0xb11   : > { %v7052_v35 = vmul.f32 %v6780_v22, %v3288_v2  ;;  %v7055_v29 = vmul.f32 %v6782_v41, %v3289_v26  ;;  %v7058_v21 = vmul.f32 %v6784_v62, %v3290_v32  ;;  %v7063_v47 = vmul.f32 %v8035_v40, %v3291_v31  ;;  %v8041_v41 = vld [vmem:[#allocation85_spill] sm:$0xff]  ;;  %v8043_v62 = vld [vmem:[#allocation86_spill] sm:$0xff] }
 0xb12   : > { %v7066_v24 = vmul.f32 %v8037_v8, %v3292_v28  ;;  %v7070_v22 = vmul.f32 %v8039_v10, %v3293_v25  ;;  %v7074_v2 = vmul.f32 %v8041_v41, %v3294_v19  ;;  %v7078_v46 = vmul.f32 %v8043_v62, %v3295_v59  ;;  %v8045_v41 = vld [vmem:[#allocation87_spill] sm:$0xff] }
 0xb13   : > { %8034 = vst [vmem:[#allocation78_spill] sm:$0xff] %v7058_v21 }
 0xb14   : > { %8036 = vst [vmem:[#allocation77_spill] sm:$0xff] %v7063_v47 }
 0xb15   : > { %v7060_v16 = vld [vmem:[#allocation1] sm:$0xff]  ;;  %8038 = vst [vmem:[#allocation99_spill] sm:$0xff] %v7066_v24 }
 0xb16   : > { %3612 = vst [vmem:[#allocation1] ss:$9 sm:$0xff] %v7052_v35 }
 0xb17   : > { %8040 = vst [vmem:[#allocation100_spill] sm:$0xff] %v7070_v22 }
 0xb18   : > { %3614 = vst [vmem:[#allocation1 + $0x1] ss:$9 sm:$0xff] %v7055_v29  ;;  %v3233_v26 = vpop.xlane.xlu1 %3232 }
 0xb19   : > { %8042 = vst [vmem:[#allocation101_spill] sm:$0xff] %v7074_v2  ;;  %4887 = vrcp.f32 %v3233_v26 }
 0xb1a   : > { %3616 = vst [vmem:[#allocation1 + $0x2] ss:$9 sm:$0xff] %v7058_v21 }
 0xb1b   : > { %8044 = vst [vmem:[#allocation82_spill] sm:$0xff] %v7078_v46 }
 0xb1c   : > { %3618 = vst [vmem:[#allocation1 + $0x3] ss:$9 sm:$0xff] %v7063_v47 }
 0xb1d   : > { %3620 = vst [vmem:[#allocation1 + $0x4] ss:$9 sm:$0xff] %v7066_v24  ;;  %v8046_v24 = vld [vmem:[#allocation88_spill] sm:$0xff] }
 0xb1e   : > { %3622 = vst [vmem:[#allocation1 + $0x5] ss:$9 sm:$0xff] %v7070_v22 }
 0xb1f   : > { %3624 = vst [vmem:[#allocation1 + $0x6] ss:$9 sm:$0xff] %v7074_v2  ;;  %v4888_v10 = vpop.eup %4887 }
 0xb20   : > { %3626 = vst [vmem:[#allocation1 + $0x7] ss:$9 sm:$0xff] %v7078_v46  ;;  %v3296_v8 = vperm.slane %v4888_v10, 0  ;;  %v3297_v32 = vperm.slane %v4888_v10, 1  ;;  %v3298_v31 = vperm.slane %v4888_v10, 2  ;;  %v3299_v28 = vperm.slane %v4888_v10, 3 }
 0xb21   : > { %v3300_v25 = vperm.slane %v4888_v10, 4  ;;  %v3301_v19 = vperm.slane %v4888_v10, 5  ;;  %v3302_v40 = vperm.slane %v4888_v10, 6  ;;  %v3303_v46 = vperm.slane %v4888_v10, 7 }
 0xb22   : > { %v7086_v62 = vmul.f32 %v8045_v41, %v3296_v8  ;;  %v7089_v26 = vmul.f32 %v8046_v24, %v3297_v32  ;;  %v7092_v22 = vmul.f32 %v6817_v6, %v3298_v31  ;;  %v7097_v47 = vmul.f32 %v6819_v51, %v3299_v28  ;;  %v8050_v24 = vld [vmem:[#allocation89_spill] sm:$0xff]  ;;  %v8052_v28 = vld [vmem:[#allocation90_spill] sm:$0xff] }
 0xb23   : > { %v7100_v21 = vmul.f32 %v6822_v48, %v3300_v25  ;;  %v7104_v8 = vmul.f32 %v6829_v4, %v3301_v19  ;;  %v7108_v6 = vmul.f32 %v6833_v42, %v3302_v40  ;;  %v7112_v10 = vmul.f32 %v8050_v24, %v3303_v46 }
 0xb25   : > { %8047 = vst [vmem:[#allocation84_spill] sm:$0xff] %v7100_v21 }
 0xb26   : > { %v3236_v59 = vpop.xlane.xlu2 %3235  ;;  %8048 = vst [vmem:[#allocation102_spill] sm:$0xff] %v7104_v8 }
 0xb27   : > { %v7094_v2 = vld [vmem:[#allocation1] sm:$0xff]  ;;  %4889 = vrcp.f32 %v3236_v59  ;;  %8049 = vst [vmem:[#allocation103_spill] sm:$0xff] %v7108_v6 }
 0xb28   : > { %3628 = vst [vmem:[#allocation1] ss:$9 sm:$0xff] %v7086_v62  ;;  %v8053_v59 = vld [vmem:[#allocation91_spill] sm:$0xff] }
 0xb29   : > { %3629 = vst [vmem:[#allocation1 + $0x1] ss:$9 sm:$0xff] %v7089_v26 }
 0xb2a   : > { %3630 = vst [vmem:[#allocation1 + $0x2] ss:$9 sm:$0xff] %v7092_v22 }
 0xb2b   : > { %8051 = vst [vmem:[#allocation104_spill] sm:$0xff] %v7112_v10 }
 0xb2c   : > { %3631 = vst [vmem:[#allocation1 + $0x3] ss:$9 sm:$0xff] %v7097_v47 }
 0xb2d   : > { %3632 = vst [vmem:[#allocation1 + $0x4] ss:$9 sm:$0xff] %v7100_v21  ;;  %v4890_v51 = vpop.eup %4889 }
 0xb2e   : > { %3633 = vst [vmem:[#allocation1 + $0x5] ss:$9 sm:$0xff] %v7104_v8  ;;  %v3304_v4 = vperm.slane %v4890_v51, 0  ;;  %v3305_v48 = vperm.slane %v4890_v51, 1  ;;  %v3306_v42 = vperm.slane %v4890_v51, 2  ;;  %v3307_v32 = vperm.slane %v4890_v51, 3 }
 0xb2f   : > { %3634 = vst [vmem:[#allocation1 + $0x6] ss:$9 sm:$0xff] %v7108_v6  ;;  %v3308_v31 = vperm.slane %v4890_v51, 4  ;;  %v3309_v19 = vperm.slane %v4890_v51, 5  ;;  %v3310_v41 = vperm.slane %v4890_v51, 6 }
 0xb30   : > { %3635 = vst [vmem:[#allocation1 + $0x7] ss:$9 sm:$0xff] %v7112_v10  ;;  %v7120_v25 = vmul.f32 %v8052_v28, %v3304_v4  ;;  %v7123_v40 = vmul.f32 %v8053_v59, %v3305_v48  ;;  %v7126_v24 = vmul.f32 %v6850_v63, %v3306_v42  ;;  %v3311_v10 = vperm.slane %v4890_v51, 7 }
 0xb31   : > { %v7131_v8 = vmul.f32 %v6852_v60, %v3307_v32  ;;  %v7134_v21 = vmul.f32 %v6855_v3, %v3308_v31  ;;  %v7138_v4 = vmul.f32 %v6862_v55, %v3309_v19  ;;  %v7142_v63 = vmul.f32 %v6866_v9, %v3310_v41  ;;  %v4568_v55 = vpop.permute.xlu2 %4567  ;;  %v4563_v9 = vpop.permute.xlu1 %4562 }
 0xb32   : > { %v7146_v51 = vmul.f32 %v6870_v43, %v3311_v10  ;;  %v4565_v42 = vunpack.i.h.bf16 %v4563_v9  ;;  %v4564_v32 = vunpack.i.l.bf16 %v4563_v9  ;;  %v4570_v10 = vunpack.i.h.bf16 %v4568_v55 }
 0xb33   : > { %8054 = vst [vmem:[#allocation105_spill] sm:$0xff] %v7142_v63  ;;  %v4569_v28 = vunpack.i.l.bf16 %v4568_v55 }
 0xb34   : > { %8055 = vst [vmem:[#allocation16_spill] sm:$0xff] %v7146_v51  ;;  %3587 = vmatpush.msra.mxu2 %v4564_v32  ;;  %3661 = vmatpush.msrb.mxu3 %v4565_v42 }
 0xb36   : > { %3588 = vmatpush.msra.mxu2 %v4569_v28  ;;  %3662 = vmatpush.msrb.mxu3 %v4570_v10  ;;  %v8062_v10 = vld [vmem:[#allocation11_spill] sm:$0xff]  ;;  %v8064_v28 = vld [vmem:[#allocation13_spill] sm:$0xff] }
 0xb37   : > { %v3239_v46 = vpop.xlane.xlu0 %3238  ;;  %v7128_v6 = vld [vmem:[#allocation1] sm:$0xff]  ;;  %4443 = vmatmul.msk.f32.vlgmr.msra.gmra.mxu2 %vm901_vm3, %v7026_v61  ;;  %4445 = vmatmul.msk.f32.vlgmr.msrb.gmra.mxu3 %vm901_vm3, %v7094_v2  ;;  %v8057_v2 = vld [vmem:[#allocation93_spill] sm:$0xff] }
 0xb38   : > { %4891 = vrcp.f32 %v3239_v46  ;;  %3686 = vst [vmem:[#allocation1] ss:$9 sm:$0xff] %v7120_v25 }
 0xb39   : > { %3688 = vst [vmem:[#allocation1 + $0x1] ss:$9 sm:$0xff] %v7123_v40 }
 0xb3a   : > { %3690 = vst [vmem:[#allocation1 + $0x2] ss:$9 sm:$0xff] %v7126_v24 }
 0xb3b   : > { %3692 = vst [vmem:[#allocation1 + $0x3] ss:$9 sm:$0xff] %v7131_v8 }
 0xb3c   : > { %3694 = vst [vmem:[#allocation1 + $0x4] ss:$9 sm:$0xff] %v7134_v21 }
 0xb3d   : > { %3696 = vst [vmem:[#allocation1 + $0x5] ss:$9 sm:$0xff] %v7138_v4 }
 0xb3e   : > { %v4892_v60 = vpop.eup %4891  ;;  %3698 = vst [vmem:[#allocation1 + $0x6] ss:$9 sm:$0xff] %v7142_v63 }
 0xb3f   : > { %3700 = vst [vmem:[#allocation1 + $0x7] ss:$9 sm:$0xff] %v7146_v51  ;;  %v3312_v3 = vperm.slane %v4892_v60, 0  ;;  %v3313_v48 = vperm.slane %v4892_v60, 1  ;;  %v3314_v31 = vperm.slane %v4892_v60, 2  ;;  %v3315_v43 = vperm.slane %v4892_v60, 3  ;;  %4444 = vmatmul.msk.f32.gmra.mxu2 %vm901_vm3, %v7060_v16  ;;  %4446 = vmatmul.msk.f32.gmra.mxu3 %vm901_vm3, %v7128_v6 }
 0xb40   : > { %v3316_v46 = vperm.slane %v4892_v60, 4  ;;  %v3317_v59 = vperm.slane %v4892_v60, 5  ;;  %v3318_v51 = vperm.slane %v4892_v60, 6  ;;  %v3319_v9 = vperm.slane %v4892_v60, 7  ;;  %v8061_v16 = vld [vmem:[#allocation31_spill] sm:$0xff]  ;;  %v8063_v6 = vld [vmem:[#allocation10_spill] sm:$0xff] }
 0xb41   : > { %v7154_v19 = vmul.f32 %v6879_v57, %v3312_v3  ;;  %v7157_v41 = vmul.f32 %v6881_v14, %v3313_v48  ;;  %v7160_v63 = vmul.f32 %v6883_v58, %v3314_v31  ;;  %v7167_v57 = vmul.f32 %v6885_v54, %v3315_v43  ;;  %v4578_v3 = vpop.permute.xlu1 %4577  ;;  %v8056_v48 = vld [vmem:[#allocation92_spill] sm:$0xff]  ;;  %v8060_v43 = vld [vmem:[#allocation30_spill] sm:$0xff] }
 0xb42   : > { %v7170_v14 = vmul.f32 %v6889_v13, %v3316_v46  ;;  %v7174_v58 = vmul.f32 %v6892_v38, %v3317_v59  ;;  %v4579_v61 = vunpack.i.l.bf16 %v4578_v3  ;;  %v7178_v42 = vmul.f32 %v8056_v48, %v3318_v51  ;;  %v8058_v31 = vld [vmem:[#allocation28_spill] sm:$0xff]  ;;  %v8071_v48 = vld [vmem:[#allocation34_spill] sm:$0xff] }
 0xb43   : > { %v7182_v54 = vmul.f32 %v8057_v2, %v3319_v9  ;;  %v4580_v13 = vunpack.i.h.bf16 %v4578_v3  ;;  %v8065_v46 = vld [vmem:[#allocation12_spill] sm:$0xff]  ;;  %v8068_v9 = vld [vmem:[#allocation38_spill] sm:$0xff]  ;;  %v8072_v2 = vld [vmem:[#allocation35_spill] sm:$0xff] }
 0xb44   : > { %3513 = vmatpush.msra.mxu1 %v4579_v61  ;;  %v8069_v3 = vld [vmem:[#allocation32_spill] sm:$0xff]  ;;  %v8070_v61 = vld [vmem:[#allocation33_spill] sm:$0xff] }
 0xb46   : > { %v3701_v55 = vld [vmem:[#allocation1] sm:$0xff]  ;;  %3514 = vmatpush.msra.mxu1 %v4580_v13  ;;  %v8073_v13 = vld [vmem:[#allocation36_spill] sm:$0xff] }
 0xb47   : > { %3702 = vst [vmem:[#allocation1] ss:$9 sm:$0xff] %v7154_v19  ;;  %4441 = vmatmul.msk.f32.vlgmr.msra.gmra.mxu1 %vm901_vm3, %v6949_v44  ;;  %v8059_v44 = vld [vmem:[#allocation29_spill] sm:$0xff] }
 0xb48   : > { %3703 = vst [vmem:[#allocation1 + $0x1] ss:$9 sm:$0xff] %v7157_v41 }
 0xb49   : > { %3704 = vst [vmem:[#allocation1 + $0x2] ss:$9 sm:$0xff] %v7160_v63 }
 0xb4a   : > { %3705 = vst [vmem:[#allocation1 + $0x3] ss:$9 sm:$0xff] %v7167_v57  ;;  %v4573_v60 = vpop.permute.xlu0 %4572 }
 0xb4b   : > { %3706 = vst [vmem:[#allocation1 + $0x4] ss:$9 sm:$0xff] %v7170_v14  ;;  %v4574_v38 = vunpack.i.l.bf16 %v4573_v60  ;;  %v4575_v51 = vunpack.i.h.bf16 %v4573_v60 }
 0xb4c   : > { %3707 = vst [vmem:[#allocation1 + $0x5] ss:$9 sm:$0xff] %v7174_v58 }
 0xb4d   : > { %3708 = vst [vmem:[#allocation1 + $0x6] ss:$9 sm:$0xff] %v7178_v42  ;;  %3735 = vmatpush.msrb.mxu0 %v4574_v38  ;;  %v8074_v38 = vld [vmem:[#allocation15_spill] sm:$0xff] }
 0xb4e   : > { %3709 = vst [vmem:[#allocation1 + $0x7] ss:$9 sm:$0xff] %v7182_v54 }
 0xb4f   : > { %3736 = vmatpush.msrb.mxu0 %v4575_v51  ;;  %4442 = vmatmul.msk.f32.gmra.mxu1 %vm901_vm3, %v6992_v45  ;;  %v8066_v45 = vld [vmem:[#allocation8_spill] sm:$0xff]  ;;  %v8075_v51 = vld [vmem:[#allocation14_spill] sm:$0xff] }
 0xb50   : > { %4447 = vmatmul.msk.f32.vlgmr.msrb.gmra.mxu0 %vm901_vm3, %v3701_v55  ;;  %v8067_v55 = vld [vmem:[#allocation9_spill] sm:$0xff] }
 0xb55   : > { %v3710_v32 = vld [vmem:[#allocation1] sm:$0xff] }
 0xb56   : > { %3974 = vst [vmem:[#allocation1] ss:$9 sm:$0xff] %v8058_v31  ;;  %v8077_v31 = vld [vmem:[#allocation40_spill] sm:$0xff] }
 0xb57   : > { %3976 = vst [vmem:[#allocation1 + $0x1] ss:$9 sm:$0xff] %v8059_v44  ;;  %v8078_v44 = vld [vmem:[#allocation41_spill] sm:$0xff] }
 0xb58   : > { %3978 = vst [vmem:[#allocation1 + $0x2] ss:$9 sm:$0xff] %v8060_v43  ;;  %4448 = vmatmul.msk.f32.gmra.mxu0 %vm901_vm3, %v3710_v32  ;;  %v8076_v32 = vld [vmem:[#allocation39_spill] sm:$0xff]  ;;  %v8079_v43 = vld [vmem:[#allocation42_spill] sm:$0xff] }
 0xb59   : > { %3980 = vst [vmem:[#allocation1 + $0x3] ss:$9 sm:$0xff] %v8061_v16  ;;  %v8080_v16 = vld [vmem:[#allocation43_spill] sm:$0xff] }
 0xb5a   : > { %3982 = vst [vmem:[#allocation1 + $0x4] ss:$9 sm:$0xff] %v8062_v10  ;;  %v8081_v10 = vld [vmem:[#allocation44_spill] sm:$0xff] }
 0xb5b   : > { %3984 = vst [vmem:[#allocation1 + $0x5] ss:$9 sm:$0xff] %v8063_v6 }
 0xb5c   : > { %3986 = vst [vmem:[#allocation1 + $0x6] ss:$9 sm:$0xff] %v8064_v28  ;;  %v8082_v28 = vld [vmem:[#allocation45_spill] sm:$0xff] }
 0xb5d   : > { %3988 = vst [vmem:[#allocation1 + $0x7] ss:$9 sm:$0xff] %v8065_v46  ;;  %v8083_v46 = vld [vmem:[#allocation46_spill] sm:$0xff] }
 0xb64   : > { %v7207_v59 = vld [vmem:[#allocation1] sm:$0xff] }
 0xb65   : > { %3990 = vst [vmem:[#allocation1] ss:$9 sm:$0xff] %v8066_v45  ;;  %v8084_v45 = vld [vmem:[#allocation47_spill] sm:$0xff] }
 0xb66   : > { %3991 = vst [vmem:[#allocation1 + $0x1] ss:$9 sm:$0xff] %v8067_v55  ;;  %v8085_v55 = vld [vmem:[#allocation48_spill] sm:$0xff] }
 0xb67   : > { %3992 = vst [vmem:[#allocation1 + $0x2] ss:$9 sm:$0xff] %v8068_v9  ;;  %v8086_v9 = vld [vmem:[#allocation49_spill] sm:$0xff] }
 0xb68   : > { %3993 = vst [vmem:[#allocation1 + $0x3] ss:$9 sm:$0xff] %v8069_v3  ;;  %v8087_v3 = vld [vmem:[#allocation50_spill] sm:$0xff] }
 0xb69   : > { %3994 = vst [vmem:[#allocation1 + $0x4] ss:$9 sm:$0xff] %v8070_v61  ;;  %v8088_v61 = vld [vmem:[#allocation51_spill] sm:$0xff] }
 0xb6a   : > { %3995 = vst [vmem:[#allocation1 + $0x5] ss:$9 sm:$0xff] %v8071_v48  ;;  %v8089_v48 = vld [vmem:[#allocation52_spill] sm:$0xff] }
 0xb6b   : > { %3996 = vst [vmem:[#allocation1 + $0x6] ss:$9 sm:$0xff] %v8072_v2 }
 0xb6c   : > { %3997 = vst [vmem:[#allocation1 + $0x7] ss:$9 sm:$0xff] %v8073_v13  ;;  %v8090_v13 = vld [vmem:[#allocation53_spill] sm:$0xff] }
 0xb73   : > { %v7217_v60 = vld [vmem:[#allocation1] sm:$0xff] }
 0xb74   : > { %4001 = vst [vmem:[#allocation1] ss:$9 sm:$0xff] %v8074_v38  ;;  %v8091_v38 = vld [vmem:[#allocation54_spill] sm:$0xff] }
 0xb75   : > { %4003 = vst [vmem:[#allocation1 + $0x1] ss:$9 sm:$0xff] %v8075_v51  ;;  %v8092_v51 = vld [vmem:[#allocation55_spill] sm:$0xff] }
 0xb76   : > { %4005 = vst [vmem:[#allocation1 + $0x2] ss:$9 sm:$0xff] %v8076_v32  ;;  %v8093_v32 = vld [vmem:[#allocation37_spill] sm:$0xff] }
 0xb77   : > { %4007 = vst [vmem:[#allocation1 + $0x3] ss:$9 sm:$0xff] %v8077_v31  ;;  %v8094_v31 = vld [vmem:[#allocation17_spill] sm:$0xff] }
 0xb78   : > { %4009 = vst [vmem:[#allocation1 + $0x4] ss:$9 sm:$0xff] %v8078_v44  ;;  %v8095_v44 = vld [vmem:[#allocation18_spill] sm:$0xff] }
 0xb79   : > { %4011 = vst [vmem:[#allocation1 + $0x5] ss:$9 sm:$0xff] %v8079_v43  ;;  %v8096_v43 = vld [vmem:[#allocation19_spill] sm:$0xff] }
 0xb7a   : > { %4013 = vst [vmem:[#allocation1 + $0x6] ss:$9 sm:$0xff] %v8080_v16  ;;  %v8097_v16 = vld [vmem:[#allocation20_spill] sm:$0xff] }
 0xb7b   : > { %4015 = vst [vmem:[#allocation1 + $0x7] ss:$9 sm:$0xff] %v8081_v10 }
 0xb82   : > { %v7227_v6 = vld [vmem:[#allocation1] sm:$0xff] }
 0xb83   : > { %4017 = vst [vmem:[#allocation1] ss:$9 sm:$0xff] %v8082_v28  ;;  %v8098_v28 = vld [vmem:[#allocation21_spill] sm:$0xff] }
 0xb84   : > { %4018 = vst [vmem:[#allocation1 + $0x1] ss:$9 sm:$0xff] %v8083_v46  ;;  %v8099_v46 = vld [vmem:[#allocation22_spill] sm:$0xff] }
 0xb85   : > { %4019 = vst [vmem:[#allocation1 + $0x2] ss:$9 sm:$0xff] %v8084_v45  ;;  %v8100_v45 = vld [vmem:[#allocation56_spill] sm:$0xff] }
 0xb86   : > { %4020 = vst [vmem:[#allocation1 + $0x3] ss:$9 sm:$0xff] %v8085_v55  ;;  %v8101_v55 = vld [vmem:[#allocation57_spill] sm:$0xff] }
 0xb87   : > { %4021 = vst [vmem:[#allocation1 + $0x4] ss:$9 sm:$0xff] %v8086_v9  ;;  %v8102_v9 = vld [vmem:[#allocation58_spill] sm:$0xff] }
 0xb88   : > { %4022 = vst [vmem:[#allocation1 + $0x5] ss:$9 sm:$0xff] %v8087_v3  ;;  %v8103_v3 = vld [vmem:[#allocation59_spill] sm:$0xff] }
 0xb89   : > { %4023 = vst [vmem:[#allocation1 + $0x6] ss:$9 sm:$0xff] %v8088_v61  ;;  %v8104_v61 = vld [vmem:[#allocation60_spill] sm:$0xff] }
 0xb8a   : > { %4024 = vst [vmem:[#allocation1 + $0x7] ss:$9 sm:$0xff] %v8089_v48  ;;  %v8105_v48 = vld [vmem:[#allocation23_spill] sm:$0xff] }
 0xb91   : > { %v7237_v2 = vld [vmem:[#allocation1] sm:$0xff] }
 0xb92   : > { %4032 = vst [vmem:[#allocation1] ss:$9 sm:$0xff] %v8090_v13 }
 0xb93   : > { %4034 = vst [vmem:[#allocation1 + $0x1] ss:$9 sm:$0xff] %v8091_v38  ;;  %v8106_v38 = vld [vmem:[#allocation24_spill] sm:$0xff] }
 0xb94   : > { %4036 = vst [vmem:[#allocation1 + $0x2] ss:$9 sm:$0xff] %v8092_v51  ;;  %v8107_v51 = vld [vmem:[#allocation25_spill] sm:$0xff] }
 0xb95   : > { %4038 = vst [vmem:[#allocation1 + $0x3] ss:$9 sm:$0xff] %v8093_v32  ;;  %v8108_v32 = vld [vmem:[#allocation61_spill] sm:$0xff] }
 0xb96   : > { %4040 = vst [vmem:[#allocation1 + $0x4] ss:$9 sm:$0xff] %v8094_v31  ;;  %v8109_v31 = vld [vmem:[#allocation62_spill] sm:$0xff] }
 0xb97   : > { %4042 = vst [vmem:[#allocation1 + $0x5] ss:$9 sm:$0xff] %v8095_v44  ;;  %v8110_v44 = vld [vmem:[#allocation63_spill] sm:$0xff] }
 0xb98   : > { %4044 = vst [vmem:[#allocation1 + $0x6] ss:$9 sm:$0xff] %v8096_v43  ;;  %v8111_v43 = vld [vmem:[#allocation64_spill] sm:$0xff] }
 0xb99   : > { %4046 = vst [vmem:[#allocation1 + $0x7] ss:$9 sm:$0xff] %v8097_v16  ;;  %v8112_v16 = vld [vmem:[#allocation65_spill] sm:$0xff] }
 0xba0   : > { %v7247_v10 = vld [vmem:[#allocation1] sm:$0xff] }
 0xba1   : > { %4048 = vst [vmem:[#allocation1] ss:$9 sm:$0xff] %v8098_v28  ;;  %v8113_v28 = vld [vmem:[#allocation66_spill] sm:$0xff] }
 0xba2   : > { %4049 = vst [vmem:[#allocation1 + $0x1] ss:$9 sm:$0xff] %v8099_v46 }
 0xba3   : > { %4050 = vst [vmem:[#allocation1 + $0x2] ss:$9 sm:$0xff] %v8100_v45  ;;  %v8114_v45 = vld [vmem:[#allocation67_spill] sm:$0xff] }
 0xba4   : > { %4051 = vst [vmem:[#allocation1 + $0x3] ss:$9 sm:$0xff] %v8101_v55  ;;  %v8115_v55 = vld [vmem:[#allocation68_spill] sm:$0xff] }
 0xba5   : > { %4052 = vst [vmem:[#allocation1 + $0x4] ss:$9 sm:$0xff] %v8102_v9  ;;  %v8116_v9 = vld [vmem:[#allocation69_spill] sm:$0xff] }
 0xba6   : > { %4053 = vst [vmem:[#allocation1 + $0x5] ss:$9 sm:$0xff] %v8103_v3  ;;  %v8117_v3 = vld [vmem:[#allocation70_spill] sm:$0xff] }
 0xba7   : > { %4054 = vst [vmem:[#allocation1 + $0x6] ss:$9 sm:$0xff] %v8104_v61  ;;  %v8118_v61 = vld [vmem:[#allocation71_spill] sm:$0xff] }
 0xba8   : > { %4055 = vst [vmem:[#allocation1 + $0x7] ss:$9 sm:$0xff] %v8105_v48  ;;  %v8119_v48 = vld [vmem:[#allocation72_spill] sm:$0xff] }
 0xbaf   : > { %v7257_v13 = vld [vmem:[#allocation1] sm:$0xff] }
 0xbb0   : > { %4063 = vst [vmem:[#allocation1] ss:$9 sm:$0xff] %v8106_v38  ;;  %v8120_v38 = vld [vmem:[#allocation26_spill] sm:$0xff] }
 0xbb1   : > { %4065 = vst [vmem:[#allocation1 + $0x1] ss:$9 sm:$0xff] %v8107_v51  ;;  %v8121_v51 = vld [vmem:[#allocation27_spill] sm:$0xff] }
 0xbb2   : > { %4067 = vst [vmem:[#allocation1 + $0x2] ss:$9 sm:$0xff] %v8108_v32 }
 0xbb3   : > { %4069 = vst [vmem:[#allocation1 + $0x3] ss:$9 sm:$0xff] %v8109_v31 }
 0xbb4   : > { %4071 = vst [vmem:[#allocation1 + $0x4] ss:$9 sm:$0xff] %v8110_v44 }
 0xbb5   : > { %4073 = vst [vmem:[#allocation1 + $0x5] ss:$9 sm:$0xff] %v8111_v43 }
 0xbb6   : > { %4075 = vst [vmem:[#allocation1 + $0x6] ss:$9 sm:$0xff] %v8112_v16 }
 0xbb7   : > { %4077 = vst [vmem:[#allocation1 + $0x7] ss:$9 sm:$0xff] %v8113_v28 }
 0xbba   : > { %v3590_v32 = vpop.f32.mrf.mxu2  ;;  %v3664_v31 = vpop.f32.mrf.mxu3 }
 0xbbb   : > { %3754 = vrot.lane.b32.xlu2 %v3664_v31, %s8122_s28  ;;  %3746 = vrot.lane.b32.xlu0 %v3590_v32, %s8123_s14 }
 0xbbe   : > { %v7267_v46 = vld [vmem:[#allocation1] sm:$0xff] }
 0xbbf   : > { %4079 = vst [vmem:[#allocation1] ss:$9 sm:$0xff] %v8114_v45 }
 0xbc0   : > { %4080 = vst [vmem:[#allocation1 + $0x1] ss:$9 sm:$0xff] %v8115_v55 }
 0xbc1   : > { %4081 = vst [vmem:[#allocation1 + $0x2] ss:$9 sm:$0xff] %v8116_v9 }
 0xbc2   : > { %4082 = vst [vmem:[#allocation1 + $0x3] ss:$9 sm:$0xff] %v8117_v3  ;;  %v3593_v16 = vpop.f32.mrf.mxu2  ;;  %v3667_v28 = vpop.f32.mrf.mxu3  ;;  %v8147_v3 = vld [vmem:[#allocation76_spill] sm:$0xff] }
 0xbc3   : > { %4083 = vst [vmem:[#allocation1 + $0x4] ss:$9 sm:$0xff] %v8118_v61  ;;  %3748 = vrot.lane.b32.xlu0 %v3593_v16, %s8123_s14  ;;  %3756 = vrot.lane.b32.xlu2 %v3667_v28, %s8122_s28 }
 0xbc4   : > { %4084 = vst [vmem:[#allocation1 + $0x5] ss:$9 sm:$0xff] %v8119_v48 }
 0xbc5   : > { %4085 = vst [vmem:[#allocation1 + $0x6] ss:$9 sm:$0xff] %v8120_v38 }
 0xbc6   : > { %4086 = vst [vmem:[#allocation1 + $0x7] ss:$9 sm:$0xff] %v8121_v51  ;;  %v8148_v51 = vld [vmem:[#allocation73_spill] sm:$0xff] }
 0xbcd   : > { %v7279_v44 = vld [vmem:[#allocation1] sm:$0xff]  ;;  %v3738_v43 = vpop.f32.mrf.mxu0 }
 0xbce   : > { %4094 = vst [vmem:[#allocation1] ss:$9 sm:$0xff] %v6905_v0  ;;  %3762 = vrot.lane.b32.xlu1 %v3738_v43, %s8124_s16 }
 0xbcf   : > { %4096 = vst [vmem:[#allocation1 + $0x1] ss:$9 sm:$0xff] %v6908_v12 }
 0xbd0   : > { %4098 = vst [vmem:[#allocation1 + $0x2] ss:$9 sm:$0xff] %v6911_v34  ;;  %v8125_v34 = vld [vmem:[#allocation94_spill] sm:$0xff] }
 0xbd1   : > { %4100 = vst [vmem:[#allocation1 + $0x3] ss:$9 sm:$0xff] %v6918_v33  ;;  %v8126_v33 = vld [vmem:[#allocation95_spill] sm:$0xff] }
 0xbd2   : > { %4102 = vst [vmem:[#allocation1 + $0x4] ss:$9 sm:$0xff] %v6922_v18  ;;  %v8127_v18 = vld [vmem:[#allocation96_spill] sm:$0xff] }
 0xbd3   : > { %4104 = vst [vmem:[#allocation1 + $0x5] ss:$9 sm:$0xff] %v6926_v7  ;;  %v8128_v7 = vld [vmem:[#allocation97_spill] sm:$0xff] }
 0xbd4   : > { %4106 = vst [vmem:[#allocation1 + $0x6] ss:$9 sm:$0xff] %v6931_v39 }
 0xbd5   : > { %4108 = vst [vmem:[#allocation1 + $0x7] ss:$9 sm:$0xff] %v6935_v5  ;;  %v3741_v0 = vpop.f32.mrf.mxu0  ;;  %v8129_v5 = vld [vmem:[#allocation98_spill] sm:$0xff] }
 0xbd6   : > { %3764 = vrot.lane.b32.xlu1 %v3741_v0, %s8124_s16  ;;  %s8152_s16 = smov 112  }
 0xbdc   : > { %v7293_v12 = vld [vmem:[#allocation1] sm:$0xff] }
 0xbdd   : > { %4110 = vst [vmem:[#allocation1] ss:$9 sm:$0xff] %v6947_v23 }
 0xbde   : > { %4111 = vst [vmem:[#allocation1 + $0x1] ss:$9 sm:$0xff] %v6952_v1  ;;  %v8130_v1 = vld [vmem:[#allocation81_spill] sm:$0xff] }
 0xbdf   : > { %4112 = vst [vmem:[#allocation1 + $0x2] ss:$9 sm:$0xff] %v6955_v52  ;;  %v8131_v52 = vld [vmem:[#allocation80_spill] sm:$0xff] }
 0xbe0   : > { %4113 = vst [vmem:[#allocation1 + $0x3] ss:$9 sm:$0xff] %v6959_v17  ;;  %v8132_v17 = vld [vmem:[#allocation79_spill] sm:$0xff] }
 0xbe1   : > { %4114 = vst [vmem:[#allocation1 + $0x4] ss:$9 sm:$0xff] %v8125_v34 }
 0xbe2   : > { %4115 = vst [vmem:[#allocation1 + $0x5] ss:$9 sm:$0xff] %v8126_v33 }
 0xbe3   : > { %4116 = vst [vmem:[#allocation1 + $0x6] ss:$9 sm:$0xff] %v8127_v18 }
 0xbe4   : > { %4117 = vst [vmem:[#allocation1 + $0x7] ss:$9 sm:$0xff] %v8128_v7  ;;  %v4452_v7 = vld [vmem:[%s7608_s4 + $0x38] sm:$0xff] }
 0xbe5   : > { %3860 = vmatpush.msrb.mxu1 %v4452_v7 }
 0xbeb   : > { %v7303_v39 = vld [vmem:[#allocation1] sm:$0xff] }
 0xbec   : > { %4125 = vst [vmem:[#allocation1] ss:$9 sm:$0xff] %v6984_v37  ;;  %v8134_v37 = vld [vmem:[#allocation78_spill] sm:$0xff] }
 0xbed   : > { %4127 = vst [vmem:[#allocation1 + $0x1] ss:$9 sm:$0xff] %v6987_v11  ;;  %v8135_v11 = vld [vmem:[#allocation77_spill] sm:$0xff] }
 0xbee   : > { %4129 = vst [vmem:[#allocation1 + $0x2] ss:$9 sm:$0xff] %v6990_v49  ;;  %v8136_v49 = vld [vmem:[#allocation99_spill] sm:$0xff] }
 0xbef   : > { %4131 = vst [vmem:[#allocation1 + $0x3] ss:$9 sm:$0xff] %v6995_v50 }
 0xbf0   : > { %4133 = vst [vmem:[#allocation1 + $0x4] ss:$9 sm:$0xff] %v6998_v27  ;;  %v8133_v27 = vld [vmem:[#allocation83_spill] sm:$0xff] }
 0xbf1   : > { %4135 = vst [vmem:[#allocation1 + $0x5] ss:$9 sm:$0xff] %v7002_v36  ;;  %v8137_v36 = vld [vmem:[#allocation100_spill] sm:$0xff] }
 0xbf2   : > { %4137 = vst [vmem:[#allocation1 + $0x6] ss:$9 sm:$0xff] %v7006_v30  ;;  %v8138_v30 = vld [vmem:[#allocation101_spill] sm:$0xff] }
 0xbf3   : > { %4139 = vst [vmem:[#allocation1 + $0x7] ss:$9 sm:$0xff] %v8129_v5  ;;  %v4451_v5 = vld [vmem:[%s7608_s4 + $0x30] sm:$0xff] }
 0xbf4   : > { %3861 = vmatpush.msrb.mxu1 %v4451_v5 }
 0xbfa   : > { %v7313_v23 = vld [vmem:[#allocation1] sm:$0xff] }
 0xbfb   : > { %4141 = vst [vmem:[#allocation1] ss:$9 sm:$0xff] %v7018_v53  ;;  %v8139_v53 = vld [vmem:[#allocation82_spill] sm:$0xff] }
 0xbfc   : > { %4142 = vst [vmem:[#allocation1 + $0x1] ss:$9 sm:$0xff] %v7021_v15 }
 0xbfd   : > { %4143 = vst [vmem:[#allocation1 + $0x2] ss:$9 sm:$0xff] %v7024_v20  ;;  %v8140_v20 = vld [vmem:[#allocation84_spill] sm:$0xff] }
 0xbfe   : > { %4144 = vst [vmem:[#allocation1 + $0x3] ss:$9 sm:$0xff] %v7029_v56  ;;  %v8141_v56 = vld [vmem:[#allocation102_spill] sm:$0xff] }
 0xbff   : > { %4145 = vst [vmem:[#allocation1 + $0x4] ss:$9 sm:$0xff] %v8130_v1 }
 0xc00   : > { %4146 = vst [vmem:[#allocation1 + $0x5] ss:$9 sm:$0xff] %v8131_v52  ;;  %v4449_v52 = vld [vmem:[%s7608_s4 + $0x20] sm:$0xff] }
 0xc01   : > { %4147 = vst [vmem:[#allocation1 + $0x6] ss:$9 sm:$0xff] %v8132_v17 }
 0xc02   : > { %4148 = vst [vmem:[#allocation1 + $0x7] ss:$9 sm:$0xff] %v8133_v27 }
 0xc09   : > { %v7323_v50 = vld [vmem:[#allocation1] sm:$0xff] }
 0xc0a   : > { %4156 = vst [vmem:[#allocation1] ss:$9 sm:$0xff] %v7052_v35  ;;  %v8142_v35 = vld [vmem:[#allocation103_spill] sm:$0xff] }
 0xc0b   : > { %4158 = vst [vmem:[#allocation1 + $0x1] ss:$9 sm:$0xff] %v7055_v29  ;;  %v8143_v29 = vld [vmem:[#allocation104_spill] sm:$0xff] }
 0xc0c   : > { %4160 = vst [vmem:[#allocation1 + $0x2] ss:$9 sm:$0xff] %v8134_v37 }
 0xc0d   : > { %4162 = vst [vmem:[#allocation1 + $0x3] ss:$9 sm:$0xff] %v8135_v11 }
 0xc0e   : > { %4164 = vst [vmem:[#allocation1 + $0x4] ss:$9 sm:$0xff] %v8136_v49 }
 0xc0f   : > { %4166 = vst [vmem:[#allocation1 + $0x5] ss:$9 sm:$0xff] %v8137_v36 }
 0xc10   : > { %4168 = vst [vmem:[#allocation1 + $0x6] ss:$9 sm:$0xff] %v8138_v30 }
 0xc11   : > { %4170 = vst [vmem:[#allocation1 + $0x7] ss:$9 sm:$0xff] %v8139_v53 }
 0xc18   : > { %v7333_v15 = vld [vmem:[#allocation1] sm:$0xff] }
 0xc19   : > { %4172 = vst [vmem:[#allocation1] ss:$9 sm:$0xff] %v7086_v62 }
 0xc1a   : > { %4173 = vst [vmem:[#allocation1 + $0x1] ss:$9 sm:$0xff] %v7089_v26  ;;  %v3516_v26 = vpop.f32.mrf.mxu1 }
 0xc1b   : > { %4174 = vst [vmem:[#allocation1 + $0x2] ss:$9 sm:$0xff] %v7092_v22  ;;  %v8145_v22 = vld [vmem:[#allocation16_spill] sm:$0xff] }
 0xc1c   : > { %4175 = vst [vmem:[#allocation1 + $0x3] ss:$9 sm:$0xff] %v7097_v47  ;;  %v8144_v47 = vld [vmem:[#allocation105_spill] sm:$0xff] }
 0xc1d   : > { %4176 = vst [vmem:[#allocation1 + $0x4] ss:$9 sm:$0xff] %v8140_v20 }
 0xc1e   : > { %4177 = vst [vmem:[#allocation1 + $0x5] ss:$9 sm:$0xff] %v8141_v56  ;;  %v4471_v56 = vld [vmem:[%s7610_s6 + $0xf8] sm:$0xff] }
 0xc1f   : > { %4178 = vst [vmem:[#allocation1 + $0x6] ss:$9 sm:$0xff] %v8142_v35  ;;  %v4470_v35 = vld [vmem:[%s7610_s6 + $0xf0] sm:$0xff]  ;;  %3891 = vmatpush.msrb.mxu2 %v4471_v56 }
 0xc20   : > { %4179 = vst [vmem:[#allocation1 + $0x7] ss:$9 sm:$0xff] %v8143_v29 }
 0xc21   : > { %3892 = vmatpush.msrb.mxu2 %v4470_v35 }
 0xc27   : > { %v7343_v45 = vld [vmem:[#allocation1] sm:$0xff] }
 0xc28   : > { %4187 = vst [vmem:[#allocation1] ss:$9 sm:$0xff] %v7120_v25 }
 0xc29   : > { %4189 = vst [vmem:[#allocation1 + $0x1] ss:$9 sm:$0xff] %v7123_v40 }
 0xc2a   : > { %4191 = vst [vmem:[#allocation1 + $0x2] ss:$9 sm:$0xff] %v7126_v24 }
 0xc2b   : > { %4193 = vst [vmem:[#allocation1 + $0x3] ss:$9 sm:$0xff] %v7131_v8 }
 0xc2c   : > { %4195 = vst [vmem:[#allocation1 + $0x4] ss:$9 sm:$0xff] %v7134_v21  ;;  %v3755_v21 = vpop.permute.xlu2 %3754 }
 0xc2d   : > { %4197 = vst [vmem:[#allocation1 + $0x5] ss:$9 sm:$0xff] %v7138_v4  ;;  %v3747_v8 = vpop.permute.xlu0 %3746 }
 0xc2e   : > { %4199 = vst [vmem:[#allocation1 + $0x6] ss:$9 sm:$0xff] %v8144_v47  ;;  %v3768_v25 = vsel %vm419_vm1, %v3516_v26, %v3747_v8  ;;  %v4469_v26 = vld [vmem:[%s7610_s6 + $0xe8] sm:$0xff] }
 0xc2f   : > { %4201 = vst [vmem:[#allocation1 + $0x7] ss:$9 sm:$0xff] %v8145_v22  ;;  %v3770_v24 = vsel %vm901_vm3, %v3768_v25, %v3755_v21  ;;  %3893 = vmatpush.msrb.mxu2 %v4469_v26 }
 0xc36   : > { %v7353_v62 = vld [vmem:[#allocation1] sm:$0xff] }
 0xc37   : > { %4203 = vst [vmem:[#allocation1] ss:$9 sm:$0xff] %v7154_v19  ;;  %v8146_v19 = vld [vmem:[#allocation75_spill] sm:$0xff] }
 0xc38   : > { %4204 = vst [vmem:[#allocation1 + $0x1] ss:$9 sm:$0xff] %v7157_v41 }
 0xc39   : > { %4205 = vst [vmem:[#allocation1 + $0x2] ss:$9 sm:$0xff] %v7160_v63  ;;  %v3749_v63 = vpop.permute.xlu0 %3748 }
 0xc3a   : > { %4206 = vst [vmem:[#allocation1 + $0x3] ss:$9 sm:$0xff] %v7167_v57  ;;  %v3519_v57 = vpop.f32.mrf.mxu1 }
 0xc3b   : > { %4207 = vst [vmem:[#allocation1 + $0x4] ss:$9 sm:$0xff] %v7170_v14 }
 0xc3c   : > { %4208 = vst [vmem:[#allocation1 + $0x5] ss:$9 sm:$0xff] %v7174_v58  ;;  %v3769_v58 = vsel %vm419_vm1, %v3519_v57, %v3749_v63 }
 0xc3d   : > { %4209 = vst [vmem:[#allocation1 + $0x6] ss:$9 sm:$0xff] %v7178_v42  ;;  %v3757_v42 = vpop.permute.xlu2 %3756 }
 0xc3e   : > { %4210 = vst [vmem:[#allocation1 + $0x7] ss:$9 sm:$0xff] %v7182_v54  ;;  %v3771_v9 = vsel %vm901_vm3, %v3769_v58, %v3757_v42 }
 0xc40   : > { %v3763_v40 = vpop.permute.xlu1 %3762 }
 0xc41   : > { %v3772_v4 = vsel %vm1961_vm4, %v3770_v24, %v3763_v40  ;;  %v4468_v40 = vld [vmem:[%s7610_s6 + $0xe0] sm:$0xff]  ;;  %v7422_v24 = vld [vmem:[%s7611_s7 + $0x8] sm:$0x1f] }
 0xc42   : > { %v3774_v41 = vadd.f32 %v3772_v4, %v8146_v19  ;;  %v4467_v19 = vld [vmem:[%s7610_s6 + $0xd8] sm:$0xff]  ;;  %3894 = vmatpush.msrb.mxu2 %v4468_v40  ;;  %v3820_v57 = vperm.slane %v7422_v24, 1 }
 0xc44   : > { %v3776_v14 = vsel %vm369_vm0, %v3774_v41, 0.0  ;;  %3895 = vmatpush.msrb.mxu2 %v4467_v19 }
 0xc45   : > { %3777 = vadd.xlane.f32.xlu0 %v3776_v14  ;;  %v4466_v14 = vld [vmem:[%s7610_s6 + $0xd0] sm:$0xff] }
 0xc46   : > { %3896 = vmatpush.msrb.mxu2 %v4466_v14 }
 0xc48   : > { %v3765_v55 = vpop.permute.xlu1 %3764 }
 0xc49   : > { %v3773_v54 = vsel %vm1961_vm4, %v3771_v9, %v3765_v55  ;;  %v4465_v55 = vld [vmem:[%s7610_s6 + $0xc8] sm:$0xff] }
 0xc4a   : > { %v3775_v61 = vadd.f32 %v3773_v54, %v8147_v3  ;;  %v3829_v3 = vperm.slane %v7422_v24, 2  ;;  %3897 = vmatpush.msrb.mxu2 %v4465_v55 }
 0xc4c   : > { %v3779_v48 = vsel %vm369_vm0, %v3775_v61, 0.0 }
 0xc4d   : > { %3780 = vadd.xlane.f32.xlu2 %v3779_v48  ;;  %v4464_v48 = vld [vmem:[%s7610_s6 + $0xc0] sm:$0xff] }
 0xc4e   : > { %3898 = vmatpush.msrb.mxu2 %v4464_v48 }
 0xcb8   : > { %v3778_v38 = vpop.xlane.xlu0 %3777 }
 0xcb9   : > { %v3782_v32 = vmul.f32 %v3778_v38, %v8148_v51 }
 0xcbb   : > { %v7374_v31 = vsub.f32 %v3774_v41, %v3782_v32 }
 0xcbd   : > { %v3786_v43 = vmul.f32 %v7374_v31, %v7374_v31  ;;  %v3821_v54 = vmul.f32 %v3820_v57, %v7374_v31  ;;  %v4462_v31 = vld [vmem:[%s7610_s6 + $0xb0] sm:$0xff] }
 0xcbf   : > { %v3788_v16 = vsel %vm369_vm0, %v3786_v43, 0.0 }
 0xcc0   : > { %v3781_v28 = vpop.xlane.xlu2 %3780  ;;  %3789 = vadd.xlane.f32.xlu1 %v3788_v16  ;;  %v4463_v16 = vld [vmem:[%s7610_s6 + $0xb8] sm:$0xff] }
 0xcc1   : > { %v3783_v0 = vmul.f32 %v3781_v28, %v8148_v51  ;;  %3899 = vmatpush.msrb.mxu2 %v4463_v16 }
 0xcc3   : > { %v7380_v34 = vsub.f32 %v3775_v61, %v3783_v0  ;;  %v4461_v0 = vld [vmem:[%s7610_s6 + $0xa8] sm:$0xff]  ;;  %3900 = vmatpush.msrb.mxu2 %v4462_v31 }
 0xcc5   : > { %v3787_v33 = vmul.f32 %v7380_v34, %v7380_v34  ;;  %3901 = vmatpush.msrb.mxu2 %v4461_v0 }
 0xcc7   : > { %v3791_v18 = vsel %vm369_vm0, %v3787_v33, 0.0  ;;  %v3822_v33 = vmul.f32 %v3820_v57, %v7380_v34  ;;  %v4458_v34 = vld [vmem:[%s7610_s6 + $0x90] sm:$0xff] }
 0xcc8   : > { %3792 = vadd.xlane.f32.xlu0 %v3791_v18  ;;  %v4460_v18 = vld [vmem:[%s7610_s6 + $0xa0] sm:$0xff] }
 0xcc9   : > { %3902 = vmatpush.msrb.mxu2 %v4460_v18 }
 0xcdc   : > { %4028 = vrot.lane.b32.xlu0 %v7237_v2, %s8122_s28  ;;  %v4450_v2 = vld [vmem:[%s7608_s4 + $0x28] sm:$0xff] }
 0xcdd   : > { %3862 = vmatpush.msrb.mxu1 %v4450_v2  ;;  %v4459_v2 = vld [vmem:[%s7610_s6 + $0x98] sm:$0xff] }
 0xcde   : > { %3903 = vmatpush.msrb.mxu2 %v4459_v2 }
 0xcdf   : > { %3863 = vmatpush.msrb.mxu1 %v4449_v52  ;;  %v4456_v52 = vld [vmem:[%s7610_s6 + $0x80] sm:$0xff] }
 0xce0   : > { %3904 = vmatpush.msrb.mxu2 %v4458_v34 }
 0xce4   : > { %4059 = vrot.lane.b32.xlu0 %v7257_v13, %s5017_s22 }
 0xcec   : > { %4119 = vrot.lane.b32.xlu0 %v7293_v12, %s8013_s26  ;;  %v8149_v12 = vld [vmem:[#allocation74_spill] sm:$0xff] }
 0xcf4   : > { %4152 = vrot.lane.b32.xlu0 %v7323_v50, %s7799_s27  ;;  %s5019_s27 = smov 48  }
 0xd33   : > { %v3790_v13 = vpop.xlane.xlu1 %3789 }
 0xd34   : > { %v3794_v1 = vmul.f32 %v3790_v13, %v8149_v12 }
 0xd36   : > { %4893 = vrsqrt.f32 %v3794_v1  ;;  %vm3803_vm15 = vcmp.eq.f32.partialorder %v3794_v1, inf  ;;  %v3806_v22 = vand.u32 2147483648, %v3794_v1  ;;  %vm3805_vm1 = vcmp.eq.f32.partialorder %v3794_v1, 0.0 }
 0xd3b   : > { %v3793_v17 = vpop.xlane.xlu0 %3792 }
 0xd3c   : > { %v4894_v27 = vpop.eup %4893  ;;  %v3795_v50 = vmul.f32 %v3793_v17, %v8149_v12  ;;  %v4584_v17 = vld [vmem:[%s7609_s5 + $0x1] ss:$0 sm:$0xff] }
 0xd3d   : > { %v3797_v37 = vmul.f32 %v4894_v27, %v3794_v1 }
 0xd3e   : > { %4895 = vrsqrt.f32 %v3795_v50  ;;  %vm3815_vm2 = vcmp.eq.f32.partialorder %v3795_v50, inf  ;;  %v3818_v42 = vand.u32 2147483648, %v3795_v50  ;;  %vm3817_vm4 = vcmp.eq.f32.partialorder %v3795_v50, 0.0 }
 0xd3f   : > { %v3798_v11 = vmul.f32 %v4894_v27, %v3797_v37 }
 0xd41   : > { %v3799_v49 = vmul.f32 0.5, %v3798_v11 }
 0xd43   : > { %v3800_v36 = vsub.f32 1.5, %v3799_v49 }
 0xd44   : > { %v4896_v30 = vpop.eup %4895 }
 0xd45   : > { %v3801_v53 = vmul.f32 %v4894_v27, %v3800_v36  ;;  %v3809_v20 = vmul.f32 %v4896_v30, %v3795_v50 }
 0xd47   : > { %v3802_v29 = vmul.f32 %v3801_v53, %v3794_v1  ;;  %v3810_v47 = vmul.f32 %v4896_v30, %v3809_v20 }
 0xd49   : > { %v3804_v8 = vsel %vm3803_vm15, %v3794_v1, %v3802_v29  ;;  %v3811_v21 = vmul.f32 0.5, %v3810_v47  ;;  %v4457_v1 = vld [vmem:[%s7610_s6 + $0x88] sm:$0xff] }
 0xd4a   : > { %v3807_v25 = vsel %vm3805_vm1, %v3806_v22, %v3804_v8  ;;  %3905 = vmatpush.msrb.mxu2 %v4457_v1  ;;  %v4211_v8 = vld [vmem:[#allocation1] sm:$0xff] }
 0xd4b   : > { %v3823_v4 = vadd.f32 1e-08, %v3807_v25  ;;  %v3812_v63 = vsub.f32 1.5, %v3811_v21 }
 0xd4c   : > { %3906 = vmatpush.msrb.mxu2 %v4456_v52 }
 0xd4d   : > { %4897 = vrcp.f32 %v3823_v4  ;;  %v3813_v41 = vmul.f32 %v4896_v30, %v3812_v63  ;;  %v3890_v30 = vperm.slane %v7422_v24, 0 }
 0xd4e   : > { %v4029_v4 = vpop.permute.xlu0 %4028 }
 0xd4f   : > { %v3814_v58 = vmul.f32 %v3813_v41, %v3795_v50 }
 0xd51   : > { %v3816_v9 = vsel %vm3815_vm2, %v3795_v50, %v3814_v58 }
 0xd52   : > { %v3819_v61 = vsel %vm3817_vm4, %v3818_v42, %v3816_v9 }
 0xd53   : > { %v4898_v38 = vpop.eup %4897  ;;  %v3824_v32 = vadd.f32 1e-08, %v3819_v61 }
 0xd54   : > { %v3827_v43 = vmul.f32 %v4898_v38, %v3821_v54  ;;  %v4219_v38 = vsel %vm901_vm3, %v7217_v60, %v4029_v4 }
 0xd55   : > { %4899 = vrcp.f32 %v3824_v32 }
 0xd56   : > { %v3830_v28 = vadd.f32 %v3829_v3, %v3827_v43  ;;  %v4060_v63 = vpop.permute.xlu0 %4059 }
 0xd57   : > { %v4221_v43 = vsel %vm369_vm0, %v4219_v38, %v4060_v63 }
 0xd58   : > { %4454 = vmatmul.msk.f32.vlgmr.msrb.gmra.mxu1 %vm369_vm0, %v3830_v28 }
 0xd5b   : > { %v4900_v7 = vpop.eup %4899 }
 0xd5c   : > { %v3828_v5 = vmul.f32 %v4900_v7, %v3822_v33 }
 0xd5e   : > { %v3831_v13 = vadd.f32 %v3829_v3, %v3828_v5 }
 0xd60   : > { %4455 = vmatmul.msk.f32.gmra.mxu1 %vm369_vm0, %v3831_v13 }
 0xdd5   : > { %v3865_v27 = vpop.f32.mrf.mxu1 }
 0xdd6   : > { %v3866_v50 = vadd.f32 %v4584_v17, %v3865_v27 }
 0xdd8   : > { %v3871_v37 = vmax.f32 %v3866_v50, 0.0 }
 0xdda   : > { %3907 = vmatmul.f32.vlgmr.msrb.gmra.mxu2 %v3871_v37 }
 0xddd   : > { %v3868_v11 = vpop.f32.mrf.mxu1 }
 0xdde   : > { %v3869_v49 = vadd.f32 %v4584_v17, %v3868_v11 }
 0xde0   : > { %v3872_v36 = vmax.f32 %v3869_v49, 0.0 }
 0xde2   : > { %3910 = vmatmul.f32.gmra.mxu2 %v3872_v36 }
 0xe5d   : > { %v3908_v53 = vpop.f32.mrf.mxu2 }
 0xe5e   : > { %v3909_v20 = vadd.f32 %v3908_v53, %v3890_v30 }
 0xe60   : > { %v3914_v56 = vadd.f32 %v3909_v20, %v3830_v28 }
 0xe62   : > { %v3916_v35 = vsel %vm369_vm0, %v3914_v56, 0.0 }
 0xe63   : > { %3917 = vadd.xlane.f32.xlu2 %v3916_v35 }
 0xe65   : > { %v3911_v29 = vpop.f32.mrf.mxu2 }
 0xe66   : > { %v3912_v47 = vadd.f32 %v3911_v29, %v3890_v30 }
 0xe68   : > { %v3915_v22 = vadd.f32 %v3912_v47, %v3831_v13 }
 0xe6a   : > { %v3919_v26 = vsel %vm369_vm0, %v3915_v22, 0.0 }
 0xe6b   : > { %3920 = vadd.xlane.f32.xlu1 %v3919_v26 }
 0xe7b   : > { %4057 = vrot.lane.b32.xlu2 %v7247_v10, %s5017_s22 }
 0xe83   : > { %4090 = vrot.lane.b32.xlu2 %v7279_v44, %s5019_s27 }
 0xe84   : > { %4026 = vrot.lane.b32.xlu1 %v7227_v6, %s8122_s28  ;;  %s7800_s28 = sshll.u32 %s5092_s13, 4 }
 0xe85   : > { %s4273_s23 = scalar_lea.hbm %s7613_s9, %s7800_s28  ;;  %s4931_s28 = scalar_lea.hbm %s7613_s9, 32 }
 0xe8b   : > { %4150 = vrot.lane.b32.xlu2 %v7313_v23, %s8150_s21  ;;  %s4276_s21 = sshll.u32 %s4273_s23, 4  ;;  %s4277_s21 = int_to_ptr.hbm [resolvable:$true] %s4276_s21 }
 0xe8c   : > { %4088 = vrot.lane.b32.xlu1 %v7267_v46, %s5019_s27 }
 0xe94   : > { %4121 = vrot.lane.b32.xlu1 %v7303_v39, %s8013_s26  ;;  %s7508_s26 = sand.u32 1, %s4997_s10  }
 0xe95   : > { %s7801_s22 = sshll.u32 %s7508_s26, 4 }
 0xe96   : > { %s347_s24 = scalar_lea.vmem [#allocation4], %s7801_s22 }
 0xe97   : > { %s4274_s27 = sshll.u32 %s347_s24, 4  ;;  %s7530_s27 = int_to_ptr.vmem [resolvable:$true] %s4274_s27 }
 0xe9c   : > { %4181 = vrot.lane.b32.xlu1 %v7333_v15, %s8151_s29 }
 0xea4   : > { %4214 = vrot.lane.b32.xlu1 %v4211_v8, %s8152_s16 }
 0xed6   : > { %v3918_v10 = vpop.xlane.xlu2 %3917 }
 0xed7   : > { %v3922_v44 = vmul.f32 %v3918_v10, %v8148_v51 }
 0xed9   : > { %v7486_v21 = vsub.f32 %v3914_v56, %v3922_v44 }
 0xedb   : > { %v3926_v6 = vmul.f32 %v7486_v21, %v7486_v21 }
 0xedd   : > { %v3928_v23 = vsel %vm369_vm0, %v3926_v6, 0.0 }
 0xede   : > { %3929 = vadd.xlane.f32.xlu0 %v3928_v23  ;;  %v3921_v46 = vpop.xlane.xlu1 %3920  ;;  %v4058_v41 = vpop.permute.xlu2 %4057 }
 0xedf   : > { %v3923_v39 = vmul.f32 %v3921_v46, %v8148_v51  ;;  %v4120_v51 = vpop.permute.xlu0 %4119 }
 0xee1   : > { %v7492_v25 = vsub.f32 %v3915_v22, %v3923_v39 }
 0xee3   : > { %v3927_v15 = vmul.f32 %v7492_v25, %v7492_v25 }
 0xee5   : > { %v3931_v40 = vsel %vm369_vm0, %v3927_v15, 0.0 }
 0xee6   : > { %3932 = vadd.xlane.f32.xlu2 %v3931_v40  ;;  %v4091_v14 = vpop.permute.xlu2 %4090 }
 0xee7   : > { %v4153_v58 = vpop.permute.xlu0 %4152  ;;  %v4224_v16 = vsel %vm4222_vm5, %v4221_v43, %v4091_v14 }
 0xeee   : > { %v4151_v55 = vpop.permute.xlu2 %4150 }
 0xef2   : > { %4212 = vrot.lane.b32.xlu0 %v7353_v62, %s8152_s16  ;;  %s4925_s16 = sshra.s32 %s4277_s21, 4  ;;  %s4926_s16 = int_to_ptr.hbm [resolvable:$true] %s4925_s16 }
 0xef3   : > { %s4927_s25 = scalar_lea.hbm %s4926_s16, 16  ;;  %p4932_p0 = scmp.lt.s32.totalorder %s4926_s16, %s7613_s9 }
 0xef4   : > { %p4928_p11 = scmp.ne.s32.totalorder %s4926_s16, %s4927_s25  ;;  %p4933_p1 = scmp.lt.s32.totalorder %s4931_s28, %s4927_s25 }
 0xef6   : > { %v4027_v19 = vpop.permute.xlu1 %4026  ;;  %p4929_p12 = pnand %p4928_p11, %p5109_p5  ;;  %p4934_p2 = por %p4933_p1, %p4932_p0 }
 0xef8   : > { %p4930_p13 = pneg %p4929_p12 }
 0xefa   : > { %p4935_p3 = pnand %p4934_p2, %p4930_p13 }
 0xefe   : > { %4183 = vrot.lane.b32.xlu2 %v7343_v45, %s8151_s29  ;;  %v4089_v57 = vpop.permute.xlu1 %4088  ;;  %v4218_v45 = vsel %vm901_vm3, %v7207_v59, %v4027_v19  ;;  %vm4228_vm3 = vcmask 654336   ;;  %s4245_s29 = scalar_lea.sflag [#allocation5], %s7508_s26 }
 0xeff   : > { %v4220_v59 = vsel %vm369_vm0, %v4218_v45, %v4058_v41 }
 0xf00   : > { %v4223_v28 = vsel %vm4222_vm5, %v4220_v59, %v4089_v57 }
 0xf01   : > { %v4226_v0 = vsel %vm4225_vm6, %v4223_v28, %v4120_v51 }
 0xf02   : > { %v4229_v34 = vsel %vm4228_vm3, %v4226_v0, %v4151_v55 }
 0xf06   : > { %v4122_v42 = vpop.permute.xlu1 %4121 }
 0xf0e   : > { %v4182_v62 = vpop.permute.xlu1 %4181 }
 0xf0f   : > { %v4232_v27 = vsel %vm4231_vm8, %v4229_v34, %v4182_v62 }
 0xf16   : > { %v4215_v2 = vpop.permute.xlu1 %4214 }
 0xf51   : > { %v3930_v9 = vpop.xlane.xlu0 %3929 }
 0xf52   : > { %v7502_v54 = vmul.f32 %v3930_v9, %v8149_v12 }
 0xf54   : > { %4901 = vrsqrt.f32 %v7502_v54  ;;  %vm3943_vm9 = vcmp.eq.f32.partialorder %v7502_v54, inf  ;;  %v3946_v36 = vand.u32 2147483648, %v7502_v54  ;;  %vm3945_vm10 = vcmp.eq.f32.partialorder %v7502_v54, 0.0 }
 0xf59   : > { %v3933_v3 = vpop.xlane.xlu2 %3932 }
 0xf5a   : > { %v4902_v61 = vpop.eup %4901  ;;  %v7511_v48 = vmul.f32 %v3933_v3, %v8149_v12  ;;  %v4227_v12 = vsel %vm4225_vm6, %v4224_v16, %v4122_v42 }
 0xf5b   : > { %v3937_v32 = vmul.f32 %v4902_v61, %v7502_v54  ;;  %v4230_v7 = vsel %vm4228_vm3, %v4227_v12, %v4153_v58 }
 0xf5c   : > { %4903 = vrsqrt.f32 %v7511_v48 }
 0xf5d   : > { %v3938_v31 = vmul.f32 %v4902_v61, %v3937_v32 }
 0xf5f   : > { %v3939_v60 = vmul.f32 0.5, %v3938_v31 }
 0xf61   : > { %v3940_v33 = vsub.f32 1.5, %v3939_v60  ;;  %v4184_v18 = vpop.permute.xlu2 %4183 }
 0xf62   : > { %v4904_v5 = vpop.eup %4903  ;;  %v4233_v13 = vsel %vm4231_vm8, %v4230_v7, %v4184_v18 }
 0xf63   : > { %v3941_v1 = vmul.f32 %v4902_v61, %v3940_v33  ;;  %v3949_v52 = vmul.f32 %v4904_v5, %v7511_v48  ;;  %v4236_v17 = vsel %vm4234_vm7, %v4233_v13, %v4215_v2 }
 0xf64   : > { %4238 = vst [vmem:[%s347_s24 + $0x8] sm:$0xff] %v4236_v17  ;;  %v4213_v50 = vpop.permute.xlu0 %4212 }
 0xf65   : > { %v3942_v37 = vmul.f32 %v3941_v1, %v7502_v54  ;;  %v3950_v11 = vmul.f32 %v4904_v5, %v3949_v52  ;;  %v4235_v49 = vsel %vm4234_vm7, %v4232_v27, %v4213_v50 }
 0xf66   : > { %4237 = vst [vmem:[%s347_s24] sm:$0xff] %v4235_v49 }
 0xf67   : > { %v3944_v30 = vsel %vm3943_vm9, %v7502_v54, %v3942_v37  ;;  %v3951_v53 = vmul.f32 0.5, %v3950_v11 }
 0xf68   : > { %4938 = shalt.err (!%p4935_p3)
}
 0xf69   : > { %s5020_s24 = smov 128   ;;  %v3947_v20 = vsel %vm3945_vm10, %v3946_v36, %v3944_v30  ;;  %v3952_v56 = vsub.f32 1.5, %v3951_v53  ;;  %v3960_v47 = vperm.slane %v7422_v24, 3  ;;  %vm3955_vm11 = vcmp.eq.f32.partialorder %v7511_v48, inf  ;;  %s8153_s0 = sshll.u32 %s7508_s26, 4 }
 0xf6a   : > { %4484 = dma.vmem_to_hbm [thread:$0]  (%p5109_p5), %s7530_s27, 256, %s4277_s21, %s4245_s29, %s5020_s24, %s5020_s24, %s8123_s14   ;;  %v3963_v35 = vadd.f32 1e-08, %v3947_v20  ;;  %v3958_v26 = vand.u32 2147483648, %v7511_v48  ;;  %vm3957_vm12 = vcmp.eq.f32.partialorder %v7511_v48, 0.0  ;;  %v3969_v6 = vperm.slane %v7422_v24, 4 }
 0xf6b   : > { %v3953_v29 = vmul.f32 %v4904_v5, %v3952_v56  ;;  %v3961_v10 = vmul.f32 %v3960_v47, %v7486_v21  ;;  %s340_s28 = scalar_lea.vmem [#allocation2], %s8153_s0  ;;  %s8154_s22 = sshll.u32 %s5092_s13, 4  ;;  %v3962_v21 = vmul.f32 %v3960_v47, %v7492_v25 }
 0xf6c   : > { %4905 = vrcp.f32 %v3963_v35  ;;  %s4256_s29 = scalar_lea.hbm %s7612_s8, %s8154_s22  ;;  %s4257_s16 = sshll.u32 %s340_s28, 4  ;;  %s4258_s16 = int_to_ptr.vmem [resolvable:$true] %s4257_s16 }
 0xf6d   : > { %v3954_v22 = vmul.f32 %v3953_v29, %v7511_v48  ;;  %s4259_s25 = sshll.u32 %s4256_s29, 4  ;;  %s4240_s17 = scalar_lea.sflag [#allocation3], %s7508_s26  ;;  %s4260_s25 = int_to_ptr.hbm [resolvable:$true] %s4259_s25 }
 0xf6e   : > { %s4953_s23 = sshra.s32 %s4260_s25, 4  ;;  %s4959_s27 = scalar_lea.hbm %s7612_s8, 32  ;;  %s4954_s23 = int_to_ptr.hbm [resolvable:$true] %s4953_s23 }
 0xf6f   : > { %v3956_v8 = vsel %vm3955_vm11, %v7511_v48, %v3954_v22  ;;  %s4955_s13 = scalar_lea.hbm %s4954_s23, 16  ;;  %p4960_p9 = scmp.lt.s32.totalorder %s4954_s23, %s7612_s8 }
 0xf70   : > { %v3959_v44 = vsel %vm3957_vm12, %v3958_v26, %v3956_v8  ;;  %p4956_p4 = scmp.ne.s32.totalorder %s4954_s23, %s4955_s13  ;;  %p4961_p10 = scmp.lt.s32.totalorder %s4959_s27, %s4955_s13 }
 0xf71   : > { %v3964_v46 = vadd.f32 1e-08, %v3959_v44 }
 0xf72   : > { %v4906_v23 = vpop.eup %4905  ;;  %p4957_p7 = pnand %p4956_p4, %p5109_p5  ;;  %p4962_p11 = por %p4961_p10, %p4960_p9 }
 0xf73   : > { %v3967_v39 = vmul.f32 %v4906_v23, %v3961_v10  ;;  %4907 = vrcp.f32 %v3964_v46 }
 0xf74   : > { %p4958_p8 = pneg %p4957_p7 }
 0xf75   : > { %v3970_v15 = vadd.f32 %v3969_v6, %v3967_v39 }
 0xf76   : > { %p4963_p12 = pnand %p4962_p11, %p4958_p8 }
 0xf77   : > { %3972 = vst.msk [vmem:[%s340_s28] sm:$0xff] %vm369_vm0, %v3970_v15 }
 0xf79   : > { %v4908_v40 = vpop.eup %4907 }
 0xf7a   : > { %v3968_v24 = vmul.f32 %v4908_v40, %v3962_v21 }
 0xf7c   : > { %v3971_v4 = vadd.f32 %v3969_v6, %v3968_v24 }
 0xf7e   : > { %3973 = vst.msk [vmem:[%s340_s28 + $0x8] sm:$0xff] %vm369_vm0, %v3971_v4 }
 0xf7f   : > { %4966 = shalt.err (!%p4963_p12)
}
 0xf80   : > { %4483 = dma.vmem_to_hbm [thread:$0]  (%p5109_p5), %s4258_s16, 256, %s4260_s25, %s4240_s17, %s5020_s24, %s5020_s24, %s8123_s14  }
 0xf81 PF: > { %p4494_p13 = scmp.ge.s32.totalorder %s5005_s12, 2  ;;  %s4291_s26 = sand.u32 1, %s4993_s30  }
 0xf82   : > { %s4292_s28 = scalar_lea.sflag [#allocation3], %s4291_s26 }
 0xf83   : > { %p4488_p0 = pnand %p4494_p13, %p5113_p6 }
 0xf85   : > { %p4489_p1 = pneg %p4488_p0 }
 0xf87   : > { %4984 = dma.done.wait (%p4489_p1), %s4292_s28, 256  }
 0xf88   : > { %4986 = vsyncadd (%p4489_p1), %s4292_s28, 4294967040  ;;  %s4302_s23 = scalar_lea.sflag [#allocation5], %s4291_s26 }
 0xf89   : > { %4988 = dma.done.wait (%p4489_p1), %s4302_s23, 256  }
 0xf8a   : > { %4990 = vsyncadd (%p4489_p1), %s4302_s23, 4294967040  ;;  %p23_p5 = scmp.ge.s32.totalorder %s5096_s15, 4   ;;  %s8155_s30 = smov %s4997_s10 }
 0xf8b   : > { %s8156_s10 = smov %s5001_s11  ;;  %s8157_s11 = smov %s5107_s18 }
 0xf8c   : > { %s8158_s12 = smov %s5096_s15  ;;  %25 = sbr.rel (!%p23_p5) target bundleno = 7 (0x7), region = 253 }
 0xf91   :  { %4308 = vsyncpa [#allocation3], 1 }
 0xf92   :  { %4310 = vsyncpa [#allocation3 + $0x1], 1 }
 0xf93   :  { %4311 = vsyncpa [#allocation5], 1 }
 0xf94   :  { %4313 = vsyncpa [#allocation5 + $0x1], 1 }

</bundles_post_ra>
